<compile_context>
chip_gen: v7x
topology: tpu7x:2x2x1
jax: 0.10.0
libtpu: 0.0.40
codegen_flags: <defaults>
</compile_context>

<pallas_src>
import math
import jax
import jax.numpy as jnp
from jax.experimental import pallas as pl
from jax.experimental.pallas import tpu as pltpu

# ------------------------- config (small synthetic) -------------------------
VOCAB      = 128
HIDDEN     = 32
NUM_HEADS  = 2
HEAD_DIM   = HIDDEN // NUM_HEADS
FFN        = 64
SEQ        = 8
BATCH      = 2
NUM_LAYERS = 1
TOKENS     = BATCH * SEQ

PAD_ID      = 0
MASK_ID     = 1
GEN_WEIGHT  = 1.0
DISC_WEIGHT = 50.0
TEMPERATURE = 1.0
NEG_INF     = -1e9
# TODO(synk): focal_loss_with_logits hyperparameters are not given in the
# reference source; gamma=2.0 and no alpha-weighting are assumed.

LAYER_KEYS = ("wqkv", "bqkv", "wo", "bo", "ln1_g", "ln1_b",
              "w1", "b1", "w2", "b2", "ln2_g", "ln2_b")


# ---------------------------- in-kernel helpers ------------------------------
def _layer_norm(x, g, b, eps=1e-12):
    mu = jnp.mean(x, axis=-1, keepdims=True)
    var = jnp.mean((x - mu) ** 2, axis=-1, keepdims=True)
    return (x - mu) * jax.lax.rsqrt(var + eps) * g + b


def _gelu(x):
    # tanh-approximation GELU (keeps all transcendentals on the EUP path;
    # avoids erf lowering inside the Mosaic kernel)
    c = math.sqrt(2.0 / math.pi)
    return 0.5 * x * (1.0 + jnp.tanh(c * (x + 0.044715 * x * x * x)))


def _embed(ids, word, pos, type0, ln_g, ln_b):
    """ids: (T,1) i32; word: (V,H).  One-hot matmul gather (V=128 lane-dense)."""
    col = jax.lax.broadcasted_iota(jnp.int32, (TOKENS, VOCAB), 1)
    onehot = (col == ids).astype(jnp.float32)
    we = jnp.dot(onehot, word, preferred_element_type=jnp.float32)        # (T,H)
    pe = jnp.broadcast_to(pos[None, :, :],
                          (BATCH, SEQ, HIDDEN)).reshape(TOKENS, HIDDEN)
    x = we + pe + type0
    return _layer_norm(x, ln_g, ln_b)


def _encoder_layer(x, bias, wqkv, bqkv, wo, bo, ln1g, ln1b,
                   w1, b1, w2, b2, ln2g, ln2b):
    """x: (T,H); bias: (B,S) additive mask (0 or -1e9) over key positions."""
    # fused QKV projection: one MXU pass instead of three
    qkv = jnp.dot(x, wqkv, preferred_element_type=jnp.float32) + bqkv     # (T,3H)
    scale = 1.0 / math.sqrt(HEAD_DIM)
    q = qkv[:, 0:HIDDEN] * scale          # fold 1/sqrt(Dh) into q once
    k = qkv[:, HIDDEN:2 * HIDDEN]
    v = qkv[:, 2 * HIDDEN:3 * HIDDEN]
    bias_k = bias[:, None, :]                                             # (B,1,S)

    attn = None
    for h in range(NUM_HEADS):            # static unroll; head split in-kernel
        sl = slice(h * HEAD_DIM, (h + 1) * HEAD_DIM)
        qh = q[:, sl].reshape(BATCH, SEQ, HEAD_DIM)
        kh = k[:, sl].reshape(BATCH, SEQ, HEAD_DIM)
        vh = v[:, sl].reshape(BATCH, SEQ, HEAD_DIM)
        s = jnp.einsum("bqd,bkd->bqk", qh, kh,
                       preferred_element_type=jnp.float32) + bias_k
        s = s - jnp.max(s, axis=-1, keepdims=True)
        e = jnp.exp(s)
        p = e * pl.reciprocal(jnp.sum(e, axis=-1, keepdims=True), approx=True)
        ch = jnp.einsum("bqk,bkd->bqd", p, vh,
                        preferred_element_type=jnp.float32)
        ch = ch.reshape(TOKENS, HEAD_DIM)
        # fold the output projection per-head (avoids a lane concat)
        part = jnp.dot(ch, wo[sl, :], preferred_element_type=jnp.float32)
        attn = part if attn is None else attn + part
    attn = attn + bo

    x = _layer_norm(x + attn, ln1g, ln1b)
    ff = _gelu(jnp.dot(x, w1, preferred_element_type=jnp.float32) + b1)
    ff = jnp.dot(ff, w2, preferred_element_type=jnp.float32) + b2
    x = _layer_norm(x + ff, ln2g, ln2b)
    return x


# ------------------------------ fused kernels --------------------------------
def _generator_kernel(*refs):
    (ids_ref, labels_ref, amask_ref,
     word_ref, pos_ref, type0_ref, eln_g_ref, eln_b_ref,
     wqkv_ref, bqkv_ref, wo_ref, bo_ref, ln1g_ref, ln1b_ref,
     w1_ref, b1_ref, w2_ref, b2_ref, ln2g_ref, ln2b_ref,
     hw_ref, hb_ref, hlng_ref, hlnb_ref, decb_ref,
     logits_ref, loss_ref) = refs

    word = word_ref[...]                                                  # (V,H)
    x = _embed(ids_ref[...], word, pos_ref[...], type0_ref[...],
               eln_g_ref[...], eln_b_ref[...])
    bias = (1.0 - amask_ref[...]) * NEG_INF                               # (B,S)
    for l in range(NUM_LAYERS):
        x = _encoder_layer(x, bias,
                           wqkv_ref[l], bqkv_ref[l], wo_ref[l], bo_ref[l],
                           ln1g_ref[l], ln1b_ref[l],
                           w1_ref[l], b1_ref[l], w2_ref[l], b2_ref[l],
                           ln2g_ref[l], ln2b_ref[l])

    # MLM head: dense -> gelu -> LayerNorm -> tied decoder (h @ word^T + b)
    g = _gelu(jnp.dot(x, hw_ref[...], preferred_element_type=jnp.float32)
              + hb_ref[...])
    g = _layer_norm(g, hlng_ref[...], hlnb_ref[...])
    logits = jax.lax.dot_general(
        g, word, (((1,), (1,)), ((), ())),
        preferred_element_type=jnp.float32) + decb_ref[...]               # (T,V)
    logits_ref[...] = logits                                              # lane-dense

    # fused MLM cross-entropy (ignore_index = -100), logits stay in VMEM
    labels = labels_ref[...]                                              # (T,1) i32
    m = jnp.max(logits, axis=-1, keepdims=True)
    lse = m + jnp.log(jnp.sum(jnp.exp(logits - m), axis=-1, keepdims=True))
    col = jax.lax.broadcasted_iota(jnp.int32, logits.shape, 1)
    onehot = (col == labels).astype(jnp.float32)
    picked = jnp.sum(onehot * logits, axis=-1, keepdims=True)
    valid = (labels != -100).astype(jnp.float32)
    nll_sum = jnp.sum((lse - picked) * valid, axis=(0, 1), keepdims=True)  # (1,1)
    cnt = jnp.sum(valid, axis=(0, 1), keepdims=True)
    loss_ref[...] = nll_sum * pl.reciprocal(jnp.maximum(cnt, 1.0), approx=True)


def _discriminator_kernel(*refs):
    (ids_ref, dlab_ref, npad_ref, amask_ref,
     word_ref, pos_ref, type0_ref, eln_g_ref, eln_b_ref,
     wqkv_ref, bqkv_ref, wo_ref, bo_ref, ln1g_ref, ln1b_ref,
     w1_ref, b1_ref, w2_ref, b2_ref, ln2g_ref, ln2b_ref,
     hw_ref, hb_ref, clsw_ref, clsb_ref,
     dlogits_ref, dloss_ref) = refs

    word = word_ref[...]
    x = _embed(ids_ref[...], word, pos_ref[...], type0_ref[...],
               eln_g_ref[...], eln_b_ref[...])
    bias = (1.0 - amask_ref[...]) * NEG_INF
    for l in range(NUM_LAYERS):
        x = _encoder_layer(x, bias,
                           wqkv_ref[l], bqkv_ref[l], wo_ref[l], bo_ref[l],
                           ln1g_ref[l], ln1b_ref[l],
                           w1_ref[l], b1_ref[l], w2_ref[l], b2_ref[l],
                           ln2g_ref[l], ln2b_ref[l])

    # discriminator head: dense -> gelu -> N=1 logit as a VPU row reduction
    d = _gelu(jnp.dot(x, hw_ref[...], preferred_element_type=jnp.float32)
              + hb_ref[...])
    logit = jnp.sum(d * clsw_ref[...], axis=-1, keepdims=True) + clsb_ref[...]
    dlogits_ref[...] = logit                                              # (T,1)

    # fused focal loss (gamma=2), masked mean over non-PAD positions
    t = dlab_ref[...]
    msk = npad_ref[...]
    bce = (jnp.maximum(logit, 0.0) - logit * t
           + jnp.log(1.0 + jnp.exp(-jnp.abs(logit))))
    p = pl.reciprocal(1.0 + jnp.exp(-logit), approx=True)
    p_t = p * t + (1.0 - p) * (1.0 - t)
    mod = (1.0 - p_t) * (1.0 - p_t)
    loss = bce * mod * msk
    s = jnp.sum(loss, axis=(0, 1), keepdims=True)
    cnt = jnp.sum(msk, axis=(0, 1), keepdims=True)
    dloss_ref[...] = s * pl.reciprocal(jnp.maximum(cnt, 1.0), approx=True)


# ------------------------------ call wrappers ---------------------------------
def _vspec(shape):
    zeros = (0,) * len(shape)
    return pl.BlockSpec(tuple(shape), lambda i, _z=zeros: _z)


def _fused_call(kernel, inputs, out_shapes):
    return pl.pallas_call(
        kernel,
        grid=(1,),
        in_specs=[_vspec(x.shape) for x in inputs],
        out_shape=tuple(out_shapes),
        out_specs=tuple(_vspec(s.shape) for s in out_shapes),
        compiler_params=pltpu.CompilerParams(
            dimension_semantics=("arbitrary",)),
    )(*inputs)


def run_generator(ids_flat, labels_flat, amask, emb, layers, head):
    inputs = [ids_flat, labels_flat, amask,
              emb["word"], emb["pos"], emb["type0"], emb["ln_g"], emb["ln_b"]]
    inputs += [layers[k] for k in LAYER_KEYS]
    inputs += [head["w"], head["b"], head["ln_g"], head["ln_b"], head["dec_b"]]
    out_shapes = (jax.ShapeDtypeStruct((TOKENS, VOCAB), jnp.float32),
                  jax.ShapeDtypeStruct((1, 1), jnp.float32))
    return _fused_call(_generator_kernel, inputs, out_shapes)


def run_discriminator(ids_flat, dlab_flat, npad_flat, amask, emb, layers, head):
    inputs = [ids_flat, dlab_flat, npad_flat, amask,
              emb["word"], emb["pos"], emb["type0"], emb["ln_g"], emb["ln_b"]]
    inputs += [layers[k] for k in LAYER_KEYS]
    inputs += [head["w"], head["b"], head["cls_w"], head["cls_b"]]
    out_shapes = (jax.ShapeDtypeStruct((TOKENS, 1), jnp.float32),
                  jax.ShapeDtypeStruct((1, 1), jnp.float32))
    return _fused_call(_discriminator_kernel, inputs, out_shapes)


# ------------------------------- ELECTRA forward -------------------------------
def electra_forward(input_ids, attention_mask, labels, original_input_ids,
                    emb, gen_layers, gen_head, disc_layers, disc_head, gumbel_key):
    ids_flat = input_ids.reshape(TOKENS, 1).astype(jnp.int32)
    labels_flat = labels.reshape(TOKENS, 1).astype(jnp.int32)
    amask = attention_mask.astype(jnp.float32)                           # (B,S)

    # generator + fused MLM cross-entropy
    logits_flat, mlm_loss = run_generator(
        ids_flat, labels_flat, amask, emb, gen_layers, gen_head)
    logits = logits_flat.reshape(BATCH, SEQ, VOCAB)

    # gumbel-max sampling (no-grad path in torch -> stop_gradient here)
    g = jax.random.gumbel(gumbel_key, logits.shape, dtype=jnp.float32)
    sampled = jnp.argmax(logits / TEMPERATURE + g, axis=-1).astype(input_ids.dtype)
    sampled = jax.lax.stop_gradient(sampled)
    disc_input = jnp.where(labels != -100, sampled, input_ids)

    disc_labels = (original_input_ids != disc_input).astype(jnp.float32)
    non_pad = (input_ids != PAD_ID).astype(jnp.float32)

    # discriminator + fused focal loss (embeddings tied: same `emb`)
    dlogits_flat, disc_loss = run_discriminator(
        disc_input.reshape(TOKENS, 1).astype(jnp.int32),
        disc_labels.reshape(TOKENS, 1),
        non_pad.reshape(TOKENS, 1),
        amask, emb, disc_layers, disc_head)
    disc_logits = dlogits_flat.reshape(BATCH, SEQ)                       # reshape_as

    loss = GEN_WEIGHT * mlm_loss[0, 0] + DISC_WEIGHT * disc_loss[0, 0]
    return loss, logits, disc_logits


# ------------------------------ parameter init -------------------------------
def init_all_params(key):
    keys = iter(jax.random.split(key, 512))

    def nrm(shape, scale=0.02):
        return scale * jax.random.normal(next(keys), shape, dtype=jnp.float32)

    emb = dict(
        word=nrm((VOCAB, HIDDEN)),
        pos=nrm((SEQ, HIDDEN)),
        type0=nrm((1, HIDDEN)),
        ln_g=jnp.ones((1, HIDDEN), jnp.float32),
        ln_b=jnp.zeros((1, HIDDEN), jnp.float32),
    )

    def make_layer_stack():
        def stack(fn):
            return jnp.stack([fn() for _ in range(NUM_LAYERS)], axis=0)
        return dict(
            wqkv=stack(lambda: nrm((HIDDEN, 3 * HIDDEN))),   # fused Q|K|V weight
            bqkv=stack(lambda: jnp.zeros((1, 3 * HIDDEN), jnp.float32)),
            wo=stack(lambda: nrm((HIDDEN, HIDDEN))),
            bo=stack(lambda: jnp.zeros((1, HIDDEN), jnp.float32)),
            ln1_g=stack(lambda: jnp.ones((1, HIDDEN), jnp.float32)),
            ln1_b=stack(lambda: jnp.zeros((1, HIDDEN), jnp.float32)),
            w1=stack(lambda: nrm((HIDDEN, FFN))),
            b1=stack(lambda: jnp.zeros((1, FFN), jnp.float32)),
            w2=stack(lambda: nrm((FFN, HIDDEN))),
            b2=stack(lambda: jnp.zeros((1, HIDDEN), jnp.float32)),
            ln2_g=stack(lambda: jnp.ones((1, HIDDEN), jnp.float32)),
            ln2_b=stack(lambda: jnp.zeros((1, HIDDEN), jnp.float32)),
        )

    gen_layers = make_layer_stack()
    disc_layers = make_layer_stack()
    gen_head = dict(
        w=nrm((HIDDEN, HIDDEN)), b=jnp.zeros((1, HIDDEN), jnp.float32),
        ln_g=jnp.ones((1, HIDDEN), jnp.float32),
        ln_b=jnp.zeros((1, HIDDEN), jnp.float32),
        dec_b=jnp.zeros((1, VOCAB), jnp.float32),
    )
    disc_head = dict(
        w=nrm((HIDDEN, HIDDEN)), b=jnp.zeros((1, HIDDEN), jnp.float32),
        cls_w=nrm((1, HIDDEN)), cls_b=jnp.zeros((1, 1), jnp.float32),
    )
    return emb, gen_layers, gen_head, disc_layers, disc_head


# ----------------------------------- main ------------------------------------
if __name__ == "__main__":
    root = jax.random.PRNGKey(0)
    k_param, k_tok, k_gumbel = jax.random.split(root, 3)

    emb, gen_layers, gen_head, disc_layers, disc_head = init_all_params(k_param)

    # deterministic synthetic batch
    original = jax.random.randint(k_tok, (BATCH, SEQ), 5, VOCAB, dtype=jnp.int32)
    pad = jnp.zeros((BATCH, SEQ), dtype=bool).at[1, SEQ - 2:].set(True)
    original = jnp.where(pad, PAD_ID, original)

    mlm_mask = (
        jnp.zeros((BATCH, SEQ), dtype=bool).at[:, 1].set(True).at[:, 3].set(True)
    ) & (~pad)

    input_ids = jnp.where(mlm_mask, MASK_ID, original)
    labels = jnp.where(mlm_mask, original, -100).astype(jnp.int32)
    attention_mask = (~pad).astype(jnp.int32)
    original_input_ids = original

    fwd = jax.jit(electra_forward)
    loss, logits, disc_logits = fwd(
        input_ids, attention_mask, labels, original_input_ids,
        emb, gen_layers, gen_head, disc_layers, disc_head, k_gumbel,
    )
    jax.block_until_ready((loss, logits, disc_logits))

    assert logits.shape == (BATCH, SEQ, VOCAB)
    assert disc_logits.shape == (BATCH, SEQ)
    assert loss.shape == () and not bool(jnp.isnan(loss))
    print("KERNEL_OK")
</pallas_src>

<mosaic_0001>
module attributes {stable_mosaic.version = 11 : i64} {
  func.func @_generator_kernel(%arg0: i32, %arg1: memref<16x1xi32, #tpu.memory_space<vmem>>, %arg2: memref<16x1xi32, #tpu.memory_space<vmem>>, %arg3: memref<2x8xf32, #tpu.memory_space<vmem>>, %arg4: memref<128x32xf32, #tpu.memory_space<vmem>>, %arg5: memref<8x32xf32, #tpu.memory_space<vmem>>, %arg6: memref<1x32xf32, #tpu.memory_space<vmem>>, %arg7: memref<1x32xf32, #tpu.memory_space<vmem>>, %arg8: memref<1x32xf32, #tpu.memory_space<vmem>>, %arg9: memref<1x32x96xf32, #tpu.memory_space<vmem>>, %arg10: memref<1x1x96xf32, #tpu.memory_space<vmem>>, %arg11: memref<1x32x32xf32, #tpu.memory_space<vmem>>, %arg12: memref<1x1x32xf32, #tpu.memory_space<vmem>>, %arg13: memref<1x1x32xf32, #tpu.memory_space<vmem>>, %arg14: memref<1x1x32xf32, #tpu.memory_space<vmem>>, %arg15: memref<1x32x64xf32, #tpu.memory_space<vmem>>, %arg16: memref<1x1x64xf32, #tpu.memory_space<vmem>>, %arg17: memref<1x64x32xf32, #tpu.memory_space<vmem>>, %arg18: memref<1x1x32xf32, #tpu.memory_space<vmem>>, %arg19: memref<1x1x32xf32, #tpu.memory_space<vmem>>, %arg20: memref<1x1x32xf32, #tpu.memory_space<vmem>>, %arg21: memref<32x32xf32, #tpu.memory_space<vmem>>, %arg22: memref<1x32xf32, #tpu.memory_space<vmem>>, %arg23: memref<1x32xf32, #tpu.memory_space<vmem>>, %arg24: memref<1x32xf32, #tpu.memory_space<vmem>>, %arg25: memref<1x128xf32, #tpu.memory_space<vmem>>, %arg26: memref<16x128xf32, #tpu.memory_space<vmem>>, %arg27: memref<1x1xf32, #tpu.memory_space<vmem>>) attributes {dimension_semantics = [#tpu.dimension_semantics<arbitrary>], iteration_bounds = array<i64: 1>, scalar_prefetch = 0 : i64, scratch_operands = 0 : i64, tpu.core_type = #tpu.core_type<tc>, window_params = [{pipeline_mode = #tpu.pipeline_mode<synchronous>, transform_indices = @transform_0, window_bounds = array<i64: 16, 1>}, {pipeline_mode = #tpu.pipeline_mode<synchronous>, transform_indices = @transform_1, window_bounds = array<i64: 16, 1>}, {pipeline_mode = #tpu.pipeline_mode<synchronous>, transform_indices = @transform_2, window_bounds = array<i64: 2, 8>}, {pipeline_mode = #tpu.pipeline_mode<synchronous>, transform_indices = @transform_3, window_bounds = array<i64: 128, 32>}, {pipeline_mode = #tpu.pipeline_mode<synchronous>, transform_indices = @transform_4, window_bounds = array<i64: 8, 32>}, {pipeline_mode = #tpu.pipeline_mode<synchronous>, transform_indices = @transform_5, window_bounds = array<i64: 1, 32>}, {pipeline_mode = #tpu.pipeline_mode<synchronous>, transform_indices = @transform_6, window_bounds = array<i64: 1, 32>}, {pipeline_mode = #tpu.pipeline_mode<synchronous>, transform_indices = @transform_7, window_bounds = array<i64: 1, 32>}, {pipeline_mode = #tpu.pipeline_mode<synchronous>, transform_indices = @transform_8, window_bounds = array<i64: 1, 32, 96>}, {pipeline_mode = #tpu.pipeline_mode<synchronous>, transform_indices = @transform_9, window_bounds = array<i64: 1, 1, 96>}, {pipeline_mode = #tpu.pipeline_mode<synchronous>, transform_indices = @transform_10, window_bounds = array<i64: 1, 32, 32>}, {pipeline_mode = #tpu.pipeline_mode<synchronous>, transform_indices = @transform_11, window_bounds = array<i64: 1, 1, 32>}, {pipeline_mode = #tpu.pipeline_mode<synchronous>, transform_indices = @transform_12, window_bounds = array<i64: 1, 1, 32>}, {pipeline_mode = #tpu.pipeline_mode<synchronous>, transform_indices = @transform_13, window_bounds = array<i64: 1, 1, 32>}, {pipeline_mode = #tpu.pipeline_mode<synchronous>, transform_indices = @transform_14, window_bounds = array<i64: 1, 32, 64>}, {pipeline_mode = #tpu.pipeline_mode<synchronous>, transform_indices = @transform_15, window_bounds = array<i64: 1, 1, 64>}, {pipeline_mode = #tpu.pipeline_mode<synchronous>, transform_indices = @transform_16, window_bounds = array<i64: 1, 64, 32>}, {pipeline_mode = #tpu.pipeline_mode<synchronous>, transform_indices = @transform_17, window_bounds = array<i64: 1, 1, 32>}, {pipeline_mode = #tpu.pipeline_mode<synchronous>, transform_indices = @transform_18, window_bounds = array<i64: 1, 1, 32>}, {pipeline_mode = #tpu.pipeline_mode<synchronous>, transform_indices = @transform_19, window_bounds = array<i64: 1, 1, 32>}, {pipeline_mode = #tpu.pipeline_mode<synchronous>, transform_indices = @transform_20, window_bounds = array<i64: 32, 32>}, {pipeline_mode = #tpu.pipeline_mode<synchronous>, transform_indices = @transform_21, window_bounds = array<i64: 1, 32>}, {pipeline_mode = #tpu.pipeline_mode<synchronous>, transform_indices = @transform_22, window_bounds = array<i64: 1, 32>}, {pipeline_mode = #tpu.pipeline_mode<synchronous>, transform_indices = @transform_23, window_bounds = array<i64: 1, 32>}, {pipeline_mode = #tpu.pipeline_mode<synchronous>, transform_indices = @transform_24, window_bounds = array<i64: 1, 128>}, {pipeline_mode = #tpu.pipeline_mode<synchronous>, transform_indices = @transform_25, window_bounds = array<i64: 16, 128>}, {pipeline_mode = #tpu.pipeline_mode<synchronous>, transform_indices = @transform_26, window_bounds = array<i64: 1, 1>}]} {
    %c0 = arith.constant 0 : index
    %c0_0 = arith.constant 0 : index
    %0 = vector.load %arg4[%c0, %c0_0] : memref<128x32xf32, #tpu.memory_space<vmem>>, vector<128x32xf32>
    %c0_1 = arith.constant 0 : index
    %c0_2 = arith.constant 0 : index
    %1 = vector.load %arg1[%c0_1, %c0_2] : memref<16x1xi32, #tpu.memory_space<vmem>>, vector<16x1xi32>
    %c0_3 = arith.constant 0 : index
    %c0_4 = arith.constant 0 : index
    %2 = vector.load %arg5[%c0_3, %c0_4] : memref<8x32xf32, #tpu.memory_space<vmem>>, vector<8x32xf32>
    %c0_5 = arith.constant 0 : index
    %c0_6 = arith.constant 0 : index
    %3 = vector.load %arg6[%c0_5, %c0_6] : memref<1x32xf32, #tpu.memory_space<vmem>>, vector<1x32xf32>
    %c0_7 = arith.constant 0 : index
    %c0_8 = arith.constant 0 : index
    %4 = vector.load %arg7[%c0_7, %c0_8] : memref<1x32xf32, #tpu.memory_space<vmem>>, vector<1x32xf32>
    %c0_9 = arith.constant 0 : index
    %c0_10 = arith.constant 0 : index
    %5 = vector.load %arg8[%c0_9, %c0_10] : memref<1x32xf32, #tpu.memory_space<vmem>>, vector<1x32xf32>
    %6 = tpu.iota {dimensions = array<i32: 1>} : vector<16x128xi32>
    %7 = vector.broadcast %1 : vector<16x1xi32> to vector<16x128xi32>
    %8 = arith.cmpi eq, %6, %7 : vector<16x128xi32>
    %9 = arith.extui %8 : vector<16x128xi1> to vector<16x128xi32>
    %10 = arith.sitofp %9 : vector<16x128xi32> to vector<16x128xf32>
    %cst = arith.constant dense<0.000000e+00> : vector<16x32xf32>
    %11 = tpu.matmul %10, %0, %cst {dimension_numbers = #tpu.dot_dimension_numbers<[1], [0], [0], [1], [0, 0, 1, 1], [], []>} : vector<16x128xf32>, vector<128x32xf32>, vector<16x32xf32> -> vector<16x32xf32>
    %12 = vector.shape_cast %2 : vector<8x32xf32> to vector<1x8x32xf32>
    %13 = vector.shape_cast %12 : vector<1x8x32xf32> to vector<1x8x32xf32>
    %14 = vector.broadcast %13 : vector<1x8x32xf32> to vector<2x8x32xf32>
    %15 = vector.shape_cast %14 : vector<2x8x32xf32> to vector<16x32xf32>
    %16 = arith.addf %11, %15 : vector<16x32xf32>
    %17 = vector.broadcast %3 : vector<1x32xf32> to vector<16x32xf32>
    %18 = arith.addf %16, %17 : vector<16x32xf32>
    %cst_11 = arith.constant dense<0.000000e+00> : vector<16xf32>
    %19 = vector.multi_reduction <add>, %18, %cst_11 [1] : vector<16x32xf32> to vector<16xf32>
    %20 = vector.shape_cast %19 : vector<16xf32> to vector<16x1xf32>
    %cst_12 = arith.constant 3.200000e+01 : f32
    %21 = vector.broadcast %cst_12 : f32 to vector<16x1xf32>
    %22 = arith.divf %20, %21 : vector<16x1xf32>
    %23 = vector.broadcast %22 : vector<16x1xf32> to vector<16x32xf32>
    %24 = arith.subf %18, %23 : vector<16x32xf32>
    %25 = arith.mulf %24, %24 : vector<16x32xf32>
    %cst_13 = arith.constant dense<0.000000e+00> : vector<16xf32>
    %26 = vector.multi_reduction <add>, %25, %cst_13 [1] : vector<16x32xf32> to vector<16xf32>
    %27 = vector.shape_cast %26 : vector<16xf32> to vector<16x1xf32>
    %cst_14 = arith.constant 3.200000e+01 : f32
    %28 = vector.broadcast %cst_14 : f32 to vector<16x1xf32>
    %29 = arith.divf %27, %28 : vector<16x1xf32>
    %30 = vector.broadcast %22 : vector<16x1xf32> to vector<16x32xf32>
    %31 = arith.subf %18, %30 : vector<16x32xf32>
    %cst_15 = arith.constant 9.99999996E-13 : f32
    %32 = vector.broadcast %cst_15 : f32 to vector<16x1xf32>
    %33 = arith.addf %29, %32 : vector<16x1xf32>
    %34 = math.rsqrt %33 : vector<16x1xf32>
    %35 = vector.broadcast %34 : vector<16x1xf32> to vector<16x32xf32>
    %36 = arith.mulf %31, %35 : vector<16x32xf32>
    %37 = vector.broadcast %4 : vector<1x32xf32> to vector<16x32xf32>
    %38 = arith.mulf %36, %37 : vector<16x32xf32>
    %39 = vector.broadcast %5 : vector<1x32xf32> to vector<16x32xf32>
    %40 = arith.addf %38, %39 : vector<16x32xf32>
    %c0_16 = arith.constant 0 : index
    %c0_17 = arith.constant 0 : index
    %41 = vector.load %arg3[%c0_16, %c0_17] : memref<2x8xf32, #tpu.memory_space<vmem>>, vector<2x8xf32>
    %cst_18 = arith.constant 1.000000e+00 : f32
    %42 = vector.broadcast %cst_18 : f32 to vector<2x8xf32>
    %43 = arith.subf %42, %41 : vector<2x8xf32>
    %cst_19 = arith.constant -1.000000e+09 : f32
    %44 = vector.broadcast %cst_19 : f32 to vector<2x8xf32>
    %45 = arith.mulf %43, %44 : vector<2x8xf32>
    %c0_20 = arith.constant 0 : index
    %c0_21 = arith.constant 0 : index
    %c0_22 = arith.constant 0 : index
    %46 = vector.load %arg9[%c0_20, %c0_21, %c0_22] : memref<1x32x96xf32, #tpu.memory_space<vmem>>, vector<1x32x96xf32>
    %47 = vector.shape_cast %46 : vector<1x32x96xf32> to vector<32x96xf32>
    %c0_23 = arith.constant 0 : index
    %c0_24 = arith.constant 0 : index
    %c0_25 = arith.constant 0 : index
    %48 = vector.load %arg10[%c0_23, %c0_24, %c0_25] : memref<1x1x96xf32, #tpu.memory_space<vmem>>, vector<1x1x96xf32>
    %49 = vector.shape_cast %48 : vector<1x1x96xf32> to vector<1x96xf32>
    %c0_26 = arith.constant 0 : index
    %c0_27 = arith.constant 0 : index
    %c0_28 = arith.constant 0 : index
    %50 = vector.load %arg11[%c0_26, %c0_27, %c0_28] : memref<1x32x32xf32, #tpu.memory_space<vmem>>, vector<1x32x32xf32>
    %51 = vector.shape_cast %50 : vector<1x32x32xf32> to vector<32x32xf32>
    %c0_29 = arith.constant 0 : index
    %c0_30 = arith.constant 0 : index
    %c0_31 = arith.constant 0 : index
    %52 = vector.load %arg12[%c0_29, %c0_30, %c0_31] : memref<1x1x32xf32, #tpu.memory_space<vmem>>, vector<1x1x32xf32>
    %53 = vector.shape_cast %52 : vector<1x1x32xf32> to vector<1x32xf32>
    %c0_32 = arith.constant 0 : index
    %c0_33 = arith.constant 0 : index
    %c0_34 = arith.constant 0 : index
    %54 = vector.load %arg13[%c0_32, %c0_33, %c0_34] : memref<1x1x32xf32, #tpu.memory_space<vmem>>, vector<1x1x32xf32>
    %55 = vector.shape_cast %54 : vector<1x1x32xf32> to vector<1x32xf32>
    %c0_35 = arith.constant 0 : index
    %c0_36 = arith.constant 0 : index
    %c0_37 = arith.constant 0 : index
    %56 = vector.load %arg14[%c0_35, %c0_36, %c0_37] : memref<1x1x32xf32, #tpu.memory_space<vmem>>, vector<1x1x32xf32>
    %57 = vector.shape_cast %56 : vector<1x1x32xf32> to vector<1x32xf32>
    %c0_38 = arith.constant 0 : index
    %c0_39 = arith.constant 0 : index
    %c0_40 = arith.constant 0 : index
    %58 = vector.load %arg15[%c0_38, %c0_39, %c0_40] : memref<1x32x64xf32, #tpu.memory_space<vmem>>, vector<1x32x64xf32>
    %59 = vector.shape_cast %58 : vector<1x32x64xf32> to vector<32x64xf32>
    %c0_41 = arith.constant 0 : index
    %c0_42 = arith.constant 0 : index
    %c0_43 = arith.constant 0 : index
    %60 = vector.load %arg16[%c0_41, %c0_42, %c0_43] : memref<1x1x64xf32, #tpu.memory_space<vmem>>, vector<1x1x64xf32>
    %61 = vector.shape_cast %60 : vector<1x1x64xf32> to vector<1x64xf32>
    %c0_44 = arith.constant 0 : index
    %c0_45 = arith.constant 0 : index
    %c0_46 = arith.constant 0 : index
    %62 = vector.load %arg17[%c0_44, %c0_45, %c0_46] : memref<1x64x32xf32, #tpu.memory_space<vmem>>, vector<1x64x32xf32>
    %63 = vector.shape_cast %62 : vector<1x64x32xf32> to vector<64x32xf32>
    %c0_47 = arith.constant 0 : index
    %c0_48 = arith.constant 0 : index
    %c0_49 = arith.constant 0 : index
    %64 = vector.load %arg18[%c0_47, %c0_48, %c0_49] : memref<1x1x32xf32, #tpu.memory_space<vmem>>, vector<1x1x32xf32>
    %65 = vector.shape_cast %64 : vector<1x1x32xf32> to vector<1x32xf32>
    %c0_50 = arith.constant 0 : index
    %c0_51 = arith.constant 0 : index
    %c0_52 = arith.constant 0 : index
    %66 = vector.load %arg19[%c0_50, %c0_51, %c0_52] : memref<1x1x32xf32, #tpu.memory_space<vmem>>, vector<1x1x32xf32>
    %67 = vector.shape_cast %66 : vector<1x1x32xf32> to vector<1x32xf32>
    %c0_53 = arith.constant 0 : index
    %c0_54 = arith.constant 0 : index
    %c0_55 = arith.constant 0 : index
    %68 = vector.load %arg20[%c0_53, %c0_54, %c0_55] : memref<1x1x32xf32, #tpu.memory_space<vmem>>, vector<1x1x32xf32>
    %69 = vector.shape_cast %68 : vector<1x1x32xf32> to vector<1x32xf32>
    %cst_56 = arith.constant dense<0.000000e+00> : vector<16x96xf32>
    %70 = tpu.matmul %40, %47, %cst_56 {dimension_numbers = #tpu.dot_dimension_numbers<[1], [0], [0], [1], [0, 0, 1, 1], [], []>} : vector<16x32xf32>, vector<32x96xf32>, vector<16x96xf32> -> vector<16x96xf32>
    %71 = vector.broadcast %49 : vector<1x96xf32> to vector<16x96xf32>
    %72 = arith.addf %70, %71 : vector<16x96xf32>
    %73 = vector.extract_strided_slice %72 {offsets = [0, 0], sizes = [16, 32], strides = [1, 1]} : vector<16x96xf32> to vector<16x32xf32>
    %cst_57 = arith.constant 2.500000e-01 : f32
    %74 = vector.broadcast %cst_57 : f32 to vector<16x32xf32>
    %75 = arith.mulf %73, %74 : vector<16x32xf32>
    %76 = vector.extract_strided_slice %72 {offsets = [0, 32], sizes = [16, 32], strides = [1, 1]} : vector<16x96xf32> to vector<16x32xf32>
    %77 = vector.extract_strided_slice %72 {offsets = [0, 64], sizes = [16, 32], strides = [1, 1]} : vector<16x96xf32> to vector<16x32xf32>
    %78 = vector.shape_cast %45 : vector<2x8xf32> to vector<2x1x8xf32>
    %79 = vector.extract_strided_slice %75 {offsets = [0, 0], sizes = [16, 16], strides = [1, 1]} : vector<16x32xf32> to vector<16x16xf32>
    %80 = vector.shape_cast %79 : vector<16x16xf32> to vector<2x8x16xf32>
    %81 = vector.extract_strided_slice %76 {offsets = [0, 0], sizes = [16, 16], strides = [1, 1]} : vector<16x32xf32> to vector<16x16xf32>
    %82 = vector.shape_cast %81 : vector<16x16xf32> to vector<2x8x16xf32>
    %83 = vector.extract_strided_slice %77 {offsets = [0, 0], sizes = [16, 16], strides = [1, 1]} : vector<16x32xf32> to vector<16x16xf32>
    %84 = vector.shape_cast %83 : vector<16x16xf32> to vector<2x8x16xf32>
    "tpu.trace_start"() <{level = 10 : i32, message = "bqd,bkd->bqk"}> : () -> ()
    %cst_58 = arith.constant dense<0.000000e+00> : vector<2x8x8xf32>
    %85 = tpu.matmul %80, %82, %cst_58 {dimension_numbers = #tpu.dot_dimension_numbers<[2], [2], [1], [1], [0, 0, 0, 1, 1, 1], [0], [0]>} : vector<2x8x16xf32>, vector<2x8x16xf32>, vector<2x8x8xf32> -> vector<2x8x8xf32>
    "tpu.trace_stop"() : () -> ()
    %86 = vector.broadcast %78 : vector<2x1x8xf32> to vector<2x8x8xf32>
    %87 = arith.addf %85, %86 : vector<2x8x8xf32>
    %cst_59 = arith.constant dense<0xFF800000> : vector<2x8xf32>
    %88 = vector.multi_reduction <maximumf>, %87, %cst_59 [2] : vector<2x8x8xf32> to vector<2x8xf32>
    %89 = vector.shape_cast %88 : vector<2x8xf32> to vector<2x8x1xf32>
    %90 = vector.broadcast %89 : vector<2x8x1xf32> to vector<2x8x8xf32>
    %91 = arith.subf %87, %90 : vector<2x8x8xf32>
    %92 = math.exp %91 : vector<2x8x8xf32>
    %cst_60 = arith.constant dense<0.000000e+00> : vector<2x8xf32>
    %93 = vector.multi_reduction <add>, %92, %cst_60 [2] : vector<2x8x8xf32> to vector<2x8xf32>
    %94 = vector.shape_cast %93 : vector<2x8xf32> to vector<2x8x1xf32>
    %95 = tpu.reciprocal %94 {approx = true} : vector<2x8x1xf32> -> vector<2x8x1xf32>
    %96 = vector.broadcast %95 : vector<2x8x1xf32> to vector<2x8x8xf32>
    %97 = arith.mulf %92, %96 : vector<2x8x8xf32>
    "tpu.trace_start"() <{level = 10 : i32, message = "bqk,bkd->bqd"}> : () -> ()
    %cst_61 = arith.constant dense<0.000000e+00> : vector<2x8x16xf32>
    %98 = tpu.matmul %97, %84, %cst_61 {dimension_numbers = #tpu.dot_dimension_numbers<[2], [1], [1], [2], [0, 0, 0, 1, 1, 2], [0], [0]>} : vector<2x8x8xf32>, vector<2x8x16xf32>, vector<2x8x16xf32> -> vector<2x8x16xf32>
    "tpu.trace_stop"() : () -> ()
    %99 = vector.shape_cast %98 : vector<2x8x16xf32> to vector<16x16xf32>
    %100 = vector.extract_strided_slice %51 {offsets = [0, 0], sizes = [16, 32], strides = [1, 1]} : vector<32x32xf32> to vector<16x32xf32>
    %cst_62 = arith.constant dense<0.000000e+00> : vector<16x32xf32>
    %101 = tpu.matmul %99, %100, %cst_62 {dimension_numbers = #tpu.dot_dimension_numbers<[1], [0], [0], [1], [0, 0, 1, 1], [], []>} : vector<16x16xf32>, vector<16x32xf32>, vector<16x32xf32> -> vector<16x32xf32>
    %102 = vector.extract_strided_slice %75 {offsets = [0, 16], sizes = [16, 16], strides = [1, 1]} : vector<16x32xf32> to vector<16x16xf32>
    %103 = vector.shape_cast %102 : vector<16x16xf32> to vector<2x8x16xf32>
    %104 = vector.extract_strided_slice %76 {offsets = [0, 16], sizes = [16, 16], strides = [1, 1]} : vector<16x32xf32> to vector<16x16xf32>
    %105 = vector.shape_cast %104 : vector<16x16xf32> to vector<2x8x16xf32>
    %106 = vector.extract_strided_slice %77 {offsets = [0, 16], sizes = [16, 16], strides = [1, 1]} : vector<16x32xf32> to vector<16x16xf32>
    %107 = vector.shape_cast %106 : vector<16x16xf32> to vector<2x8x16xf32>
    "tpu.trace_start"() <{level = 10 : i32, message = "bqd,bkd->bqk"}> : () -> ()
    %cst_63 = arith.constant dense<0.000000e+00> : vector<2x8x8xf32>
    %108 = tpu.matmul %103, %105, %cst_63 {dimension_numbers = #tpu.dot_dimension_numbers<[2], [2], [1], [1], [0, 0, 0, 1, 1, 1], [0], [0]>} : vector<2x8x16xf32>, vector<2x8x16xf32>, vector<2x8x8xf32> -> vector<2x8x8xf32>
    "tpu.trace_stop"() : () -> ()
    %109 = vector.broadcast %78 : vector<2x1x8xf32> to vector<2x8x8xf32>
    %110 = arith.addf %108, %109 : vector<2x8x8xf32>
    %cst_64 = arith.constant dense<0xFF800000> : vector<2x8xf32>
    %111 = vector.multi_reduction <maximumf>, %110, %cst_64 [2] : vector<2x8x8xf32> to vector<2x8xf32>
    %112 = vector.shape_cast %111 : vector<2x8xf32> to vector<2x8x1xf32>
    %113 = vector.broadcast %112 : vector<2x8x1xf32> to vector<2x8x8xf32>
    %114 = arith.subf %110, %113 : vector<2x8x8xf32>
    %115 = math.exp %114 : vector<2x8x8xf32>
    %cst_65 = arith.constant dense<0.000000e+00> : vector<2x8xf32>
    %116 = vector.multi_reduction <add>, %115, %cst_65 [2] : vector<2x8x8xf32> to vector<2x8xf32>
    %117 = vector.shape_cast %116 : vector<2x8xf32> to vector<2x8x1xf32>
    %118 = tpu.reciprocal %117 {approx = true} : vector<2x8x1xf32> -> vector<2x8x1xf32>
    %119 = vector.broadcast %118 : vector<2x8x1xf32> to vector<2x8x8xf32>
    %120 = arith.mulf %115, %119 : vector<2x8x8xf32>
    "tpu.trace_start"() <{level = 10 : i32, message = "bqk,bkd->bqd"}> : () -> ()
    %cst_66 = arith.constant dense<0.000000e+00> : vector<2x8x16xf32>
    %121 = tpu.matmul %120, %107, %cst_66 {dimension_numbers = #tpu.dot_dimension_numbers<[2], [1], [1], [2], [0, 0, 0, 1, 1, 2], [0], [0]>} : vector<2x8x8xf32>, vector<2x8x16xf32>, vector<2x8x16xf32> -> vector<2x8x16xf32>
    "tpu.trace_stop"() : () -> ()
    %122 = vector.shape_cast %121 : vector<2x8x16xf32> to vector<16x16xf32>
    %123 = vector.extract_strided_slice %51 {offsets = [16, 0], sizes = [16, 32], strides = [1, 1]} : vector<32x32xf32> to vector<16x32xf32>
    %cst_67 = arith.constant dense<0.000000e+00> : vector<16x32xf32>
    %124 = tpu.matmul %122, %123, %cst_67 {dimension_numbers = #tpu.dot_dimension_numbers<[1], [0], [0], [1], [0, 0, 1, 1], [], []>} : vector<16x16xf32>, vector<16x32xf32>, vector<16x32xf32> -> vector<16x32xf32>
    %125 = arith.addf %101, %124 : vector<16x32xf32>
    %126 = vector.broadcast %53 : vector<1x32xf32> to vector<16x32xf32>
    %127 = arith.addf %125, %126 : vector<16x32xf32>
    %128 = arith.addf %40, %127 : vector<16x32xf32>
    %cst_68 = arith.constant dense<0.000000e+00> : vector<16xf32>
    %129 = vector.multi_reduction <add>, %128, %cst_68 [1] : vector<16x32xf32> to vector<16xf32>
    %130 = vector.shape_cast %129 : vector<16xf32> to vector<16x1xf32>
    %cst_69 = arith.constant 3.200000e+01 : f32
    %131 = vector.broadcast %cst_69 : f32 to vector<16x1xf32>
    %132 = arith.divf %130, %131 : vector<16x1xf32>
    %133 = vector.broadcast %132 : vector<16x1xf32> to vector<16x32xf32>
    %134 = arith.subf %128, %133 : vector<16x32xf32>
    %135 = arith.mulf %134, %134 : vector<16x32xf32>
    %cst_70 = arith.constant dense<0.000000e+00> : vector<16xf32>
    %136 = vector.multi_reduction <add>, %135, %cst_70 [1] : vector<16x32xf32> to vector<16xf32>
    %137 = vector.shape_cast %136 : vector<16xf32> to vector<16x1xf32>
    %cst_71 = arith.constant 3.200000e+01 : f32
    %138 = vector.broadcast %cst_71 : f32 to vector<16x1xf32>
    %139 = arith.divf %137, %138 : vector<16x1xf32>
    %140 = vector.broadcast %132 : vector<16x1xf32> to vector<16x32xf32>
    %141 = arith.subf %128, %140 : vector<16x32xf32>
    %cst_72 = arith.constant 9.99999996E-13 : f32
    %142 = vector.broadcast %cst_72 : f32 to vector<16x1xf32>
    %143 = arith.addf %139, %142 : vector<16x1xf32>
    %144 = math.rsqrt %143 : vector<16x1xf32>
    %145 = vector.broadcast %144 : vector<16x1xf32> to vector<16x32xf32>
    %146 = arith.mulf %141, %145 : vector<16x32xf32>
    %147 = vector.broadcast %55 : vector<1x32xf32> to vector<16x32xf32>
    %148 = arith.mulf %146, %147 : vector<16x32xf32>
    %149 = vector.broadcast %57 : vector<1x32xf32> to vector<16x32xf32>
    %150 = arith.addf %148, %149 : vector<16x32xf32>
    %cst_73 = arith.constant dense<0.000000e+00> : vector<16x64xf32>
    %151 = tpu.matmul %150, %59, %cst_73 {dimension_numbers = #tpu.dot_dimension_numbers<[1], [0], [0], [1], [0, 0, 1, 1], [], []>} : vector<16x32xf32>, vector<32x64xf32>, vector<16x64xf32> -> vector<16x64xf32>
    %152 = vector.broadcast %61 : vector<1x64xf32> to vector<16x64xf32>
    %153 = arith.addf %151, %152 : vector<16x64xf32>
    %cst_74 = arith.constant 5.000000e-01 : f32
    %154 = vector.broadcast %cst_74 : f32 to vector<16x64xf32>
    %155 = arith.mulf %154, %153 : vector<16x64xf32>
    %cst_75 = arith.constant 4.471500e-02 : f32
    %156 = vector.broadcast %cst_75 : f32 to vector<16x64xf32>
    %157 = arith.mulf %156, %153 : vector<16x64xf32>
    %158 = arith.mulf %157, %153 : vector<16x64xf32>
    %159 = arith.mulf %158, %153 : vector<16x64xf32>
    %160 = arith.addf %153, %159 : vector<16x64xf32>
    %cst_76 = arith.constant 0.797884583 : f32
    %161 = vector.broadcast %cst_76 : f32 to vector<16x64xf32>
    %162 = arith.mulf %161, %160 : vector<16x64xf32>
    %163 = math.tanh %162 : vector<16x64xf32>
    %cst_77 = arith.constant 1.000000e+00 : f32
    %164 = vector.broadcast %cst_77 : f32 to vector<16x64xf32>
    %165 = arith.addf %164, %163 : vector<16x64xf32>
    %166 = arith.mulf %155, %165 : vector<16x64xf32>
    %cst_78 = arith.constant dense<0.000000e+00> : vector<16x32xf32>
    %167 = tpu.matmul %166, %63, %cst_78 {dimension_numbers = #tpu.dot_dimension_numbers<[1], [0], [0], [1], [0, 0, 1, 1], [], []>} : vector<16x64xf32>, vector<64x32xf32>, vector<16x32xf32> -> vector<16x32xf32>
    %168 = vector.broadcast %65 : vector<1x32xf32> to vector<16x32xf32>
    %169 = arith.addf %167, %168 : vector<16x32xf32>
    %170 = arith.addf %150, %169 : vector<16x32xf32>
    %cst_79 = arith.constant dense<0.000000e+00> : vector<16xf32>
    %171 = vector.multi_reduction <add>, %170, %cst_79 [1] : vector<16x32xf32> to vector<16xf32>
    %172 = vector.shape_cast %171 : vector<16xf32> to vector<16x1xf32>
    %cst_80 = arith.constant 3.200000e+01 : f32
    %173 = vector.broadcast %cst_80 : f32 to vector<16x1xf32>
    %174 = arith.divf %172, %173 : vector<16x1xf32>
    %175 = vector.broadcast %174 : vector<16x1xf32> to vector<16x32xf32>
    %176 = arith.subf %170, %175 : vector<16x32xf32>
    %177 = arith.mulf %176, %176 : vector<16x32xf32>
    %cst_81 = arith.constant dense<0.000000e+00> : vector<16xf32>
    %178 = vector.multi_reduction <add>, %177, %cst_81 [1] : vector<16x32xf32> to vector<16xf32>
    %179 = vector.shape_cast %178 : vector<16xf32> to vector<16x1xf32>
    %cst_82 = arith.constant 3.200000e+01 : f32
    %180 = vector.broadcast %cst_82 : f32 to vector<16x1xf32>
    %181 = arith.divf %179, %180 : vector<16x1xf32>
    %182 = vector.broadcast %174 : vector<16x1xf32> to vector<16x32xf32>
    %183 = arith.subf %170, %182 : vector<16x32xf32>
    %cst_83 = arith.constant 9.99999996E-13 : f32
    %184 = vector.broadcast %cst_83 : f32 to vector<16x1xf32>
    %185 = arith.addf %181, %184 : vector<16x1xf32>
    %186 = math.rsqrt %185 : vector<16x1xf32>
    %187 = vector.broadcast %186 : vector<16x1xf32> to vector<16x32xf32>
    %188 = arith.mulf %183, %187 : vector<16x32xf32>
    %189 = vector.broadcast %67 : vector<1x32xf32> to vector<16x32xf32>
    %190 = arith.mulf %188, %189 : vector<16x32xf32>
    %191 = vector.broadcast %69 : vector<1x32xf32> to vector<16x32xf32>
    %192 = arith.addf %190, %191 : vector<16x32xf32>
    %c0_84 = arith.constant 0 : index
    %c0_85 = arith.constant 0 : index
    %193 = vector.load %arg21[%c0_84, %c0_85] : memref<32x32xf32, #tpu.memory_space<vmem>>, vector<32x32xf32>
    %cst_86 = arith.constant dense<0.000000e+00> : vector<16x32xf32>
    %194 = tpu.matmul %192, %193, %cst_86 {dimension_numbers = #tpu.dot_dimension_numbers<[1], [0], [0], [1], [0, 0, 1, 1], [], []>} : vector<16x32xf32>, vector<32x32xf32>, vector<16x32xf32> -> vector<16x32xf32>
    %c0_87 = arith.constant 0 : index
    %c0_88 = arith.constant 0 : index
    %195 = vector.load %arg22[%c0_87, %c0_88] : memref<1x32xf32, #tpu.memory_space<vmem>>, vector<1x32xf32>
    %196 = vector.broadcast %195 : vector<1x32xf32> to vector<16x32xf32>
    %197 = arith.addf %194, %196 : vector<16x32xf32>
    %cst_89 = arith.constant 5.000000e-01 : f32
    %198 = vector.broadcast %cst_89 : f32 to vector<16x32xf32>
    %199 = arith.mulf %198, %197 : vector<16x32xf32>
    %cst_90 = arith.constant 4.471500e-02 : f32
    %200 = vector.broadcast %cst_90 : f32 to vector<16x32xf32>
    %201 = arith.mulf %200, %197 : vector<16x32xf32>
    %202 = arith.mulf %201, %197 : vector<16x32xf32>
    %203 = arith.mulf %202, %197 : vector<16x32xf32>
    %204 = arith.addf %197, %203 : vector<16x32xf32>
    %cst_91 = arith.constant 0.797884583 : f32
    %205 = vector.broadcast %cst_91 : f32 to vector<16x32xf32>
    %206 = arith.mulf %205, %204 : vector<16x32xf32>
    %207 = math.tanh %206 : vector<16x32xf32>
    %cst_92 = arith.constant 1.000000e+00 : f32
    %208 = vector.broadcast %cst_92 : f32 to vector<16x32xf32>
    %209 = arith.addf %208, %207 : vector<16x32xf32>
    %210 = arith.mulf %199, %209 : vector<16x32xf32>
    %c0_93 = arith.constant 0 : index
    %c0_94 = arith.constant 0 : index
    %211 = vector.load %arg23[%c0_93, %c0_94] : memref<1x32xf32, #tpu.memory_space<vmem>>, vector<1x32xf32>
    %c0_95 = arith.constant 0 : index
    %c0_96 = arith.constant 0 : index
    %212 = vector.load %arg24[%c0_95, %c0_96] : memref<1x32xf32, #tpu.memory_space<vmem>>, vector<1x32xf32>
    %cst_97 = arith.constant dense<0.000000e+00> : vector<16xf32>
    %213 = vector.multi_reduction <add>, %210, %cst_97 [1] : vector<16x32xf32> to vector<16xf32>
    %214 = vector.shape_cast %213 : vector<16xf32> to vector<16x1xf32>
    %cst_98 = arith.constant 3.200000e+01 : f32
    %215 = vector.broadcast %cst_98 : f32 to vector<16x1xf32>
    %216 = arith.divf %214, %215 : vector<16x1xf32>
    %217 = vector.broadcast %216 : vector<16x1xf32> to vector<16x32xf32>
    %218 = arith.subf %210, %217 : vector<16x32xf32>
    %219 = arith.mulf %218, %218 : vector<16x32xf32>
    %cst_99 = arith.constant dense<0.000000e+00> : vector<16xf32>
    %220 = vector.multi_reduction <add>, %219, %cst_99 [1] : vector<16x32xf32> to vector<16xf32>
    %221 = vector.shape_cast %220 : vector<16xf32> to vector<16x1xf32>
    %cst_100 = arith.constant 3.200000e+01 : f32
    %222 = vector.broadcast %cst_100 : f32 to vector<16x1xf32>
    %223 = arith.divf %221, %222 : vector<16x1xf32>
    %224 = vector.broadcast %216 : vector<16x1xf32> to vector<16x32xf32>
    %225 = arith.subf %210, %224 : vector<16x32xf32>
    %cst_101 = arith.constant 9.99999996E-13 : f32
    %226 = vector.broadcast %cst_101 : f32 to vector<16x1xf32>
    %227 = arith.addf %223, %226 : vector<16x1xf32>
    %228 = math.rsqrt %227 : vector<16x1xf32>
    %229 = vector.broadcast %228 : vector<16x1xf32> to vector<16x32xf32>
    %230 = arith.mulf %225, %229 : vector<16x32xf32>
    %231 = vector.broadcast %211 : vector<1x32xf32> to vector<16x32xf32>
    %232 = arith.mulf %230, %231 : vector<16x32xf32>
    %233 = vector.broadcast %212 : vector<1x32xf32> to vector<16x32xf32>
    %234 = arith.addf %232, %233 : vector<16x32xf32>
    %cst_102 = arith.constant dense<0.000000e+00> : vector<16x128xf32>
    %235 = tpu.matmul %234, %0, %cst_102 {dimension_numbers = #tpu.dot_dimension_numbers<[1], [1], [0], [0], [0, 0, 1, 0], [], []>} : vector<16x32xf32>, vector<128x32xf32>, vector<16x128xf32> -> vector<16x128xf32>
    %c0_103 = arith.constant 0 : index
    %c0_104 = arith.constant 0 : index
    %236 = vector.load %arg25[%c0_103, %c0_104] : memref<1x128xf32, #tpu.memory_space<vmem>>, vector<1x128xf32>
    %237 = vector.broadcast %236 : vector<1x128xf32> to vector<16x128xf32>
    %238 = arith.addf %235, %237 : vector<16x128xf32>
    %c0_105 = arith.constant 0 : index
    %c0_106 = arith.constant 0 : index
    %239 = vector.load %arg26[%c0_105, %c0_106] : memref<16x128xf32, #tpu.memory_space<vmem>>, vector<16x128xf32>
    tpu.vector_store %arg26[%c0_105, %c0_106], %238 {strides = array<i32>} : memref<16x128xf32, #tpu.memory_space<vmem>>, vector<16x128xf32>,
    %c0_107 = arith.constant 0 : index
    %c0_108 = arith.constant 0 : index
    %240 = vector.load %arg2[%c0_107, %c0_108] : memref<16x1xi32, #tpu.memory_space<vmem>>, vector<16x1xi32>
    %cst_109 = arith.constant dense<0xFF800000> : vector<16xf32>
    %241 = vector.multi_reduction <maximumf>, %238, %cst_109 [1] : vector<16x128xf32> to vector<16xf32>
    %242 = vector.shape_cast %241 : vector<16xf32> to vector<16x1xf32>
    %243 = vector.broadcast %242 : vector<16x1xf32> to vector<16x128xf32>
    %244 = arith.subf %238, %243 : vector<16x128xf32>
    %245 = math.exp %244 : vector<16x128xf32>
    %cst_110 = arith.constant dense<0.000000e+00> : vector<16xf32>
    %246 = vector.multi_reduction <add>, %245, %cst_110 [1] : vector<16x128xf32> to vector<16xf32>
    %247 = vector.shape_cast %246 : vector<16xf32> to vector<16x1xf32>
    %248 = math.log %247 : vector<16x1xf32>
    %249 = arith.addf %242, %248 : vector<16x1xf32>
    %250 = tpu.iota {dimensions = array<i32: 1>} : vector<16x128xi32>
    %251 = vector.broadcast %240 : vector<16x1xi32> to vector<16x128xi32>
    %252 = arith.cmpi eq, %250, %251 : vector<16x128xi32>
    %253 = arith.extui %252 : vector<16x128xi1> to vector<16x128xi32>
    %254 = arith.sitofp %253 : vector<16x128xi32> to vector<16x128xf32>
    %255 = arith.mulf %254, %238 : vector<16x128xf32>
    %cst_111 = arith.constant dense<0.000000e+00> : vector<16xf32>
    %256 = vector.multi_reduction <add>, %255, %cst_111 [1] : vector<16x128xf32> to vector<16xf32>
    %257 = vector.shape_cast %256 : vector<16xf32> to vector<16x1xf32>
    %c-100_i32 = arith.constant -100 : i32
    %258 = vector.broadcast %c-100_i32 : i32 to vector<16x1xi32>
    %259 = arith.cmpi ne, %240, %258 : vector<16x1xi32>
    %260 = arith.extui %259 : vector<16x1xi1> to vector<16x1xi32>
    %261 = arith.sitofp %260 : vector<16x1xi32> to vector<16x1xf32>
    %262 = arith.subf %249, %257 : vector<16x1xf32>
    %263 = arith.mulf %262, %261 : vector<16x1xf32>
    %264 = vector.shape_cast %263 : vector<16x1xf32> to vector<1x16x1xf32>
    %cst_112 = arith.constant dense<0.000000e+00> : vector<1xf32>
    %265 = vector.multi_reduction <add>, %264, %cst_112 [1, 2] : vector<1x16x1xf32> to vector<1xf32>
    %266 = vector.shape_cast %265 : vector<1xf32> to vector<1x1x1xf32>
    %267 = vector.extract %266[0, 0, 0] : f32 from vector<1x1x1xf32>
    %268 = vector.broadcast %267 : f32 to vector<1x1xf32>
    %269 = vector.shape_cast %261 : vector<16x1xf32> to vector<1x16x1xf32>
    %cst_113 = arith.constant dense<0.000000e+00> : vector<1xf32>
    %270 = vector.multi_reduction <add>, %269, %cst_113 [1, 2] : vector<1x16x1xf32> to vector<1xf32>
    %271 = vector.shape_cast %270 : vector<1xf32> to vector<1x1x1xf32>
    %272 = vector.extract %271[0, 0, 0] : f32 from vector<1x1x1xf32>
    %273 = vector.broadcast %272 : f32 to vector<1x1xf32>
    %cst_114 = arith.constant 1.000000e+00 : f32
    %274 = vector.broadcast %cst_114 : f32 to vector<1x1xf32>
    %275 = arith.maximumf %273, %274 : vector<1x1xf32>
    %276 = tpu.reciprocal %275 {approx = true} : vector<1x1xf32> -> vector<1x1xf32>
    %277 = arith.mulf %268, %276 : vector<1x1xf32>
    %c0_115 = arith.constant 0 : index
    %c0_116 = arith.constant 0 : index
    %278 = vector.load %arg27[%c0_115, %c0_116] : memref<1x1xf32, #tpu.memory_space<vmem>>, vector<1x1xf32>
    tpu.vector_store %arg27[%c0_115, %c0_116], %277 {strides = array<i32>} : memref<1x1xf32, #tpu.memory_space<vmem>>, vector<1x1xf32>,
    return
  }
  func.func @transform_0(%arg0: i32) -> (i32, i32) {
    %c0_i32 = arith.constant 0 : i32
    %c0_i32_0 = arith.constant 0 : i32
    %c0_i32_1 = arith.constant 0 : i32
    return %c0_i32, %c0_i32_0 : i32, i32
  }
  func.func @transform_1(%arg0: i32) -> (i32, i32) {
    %c0_i32 = arith.constant 0 : i32
    %c0_i32_0 = arith.constant 0 : i32
    %c0_i32_1 = arith.constant 0 : i32
    return %c0_i32, %c0_i32_0 : i32, i32
  }
  func.func @transform_2(%arg0: i32) -> (i32, i32) {
    %c0_i32 = arith.constant 0 : i32
    %c0_i32_0 = arith.constant 0 : i32
    %c0_i32_1 = arith.constant 0 : i32
    return %c0_i32, %c0_i32_0 : i32, i32
  }
  func.func @transform_3(%arg0: i32) -> (i32, i32) {
    %c0_i32 = arith.constant 0 : i32
    %c0_i32_0 = arith.constant 0 : i32
    %c0_i32_1 = arith.constant 0 : i32
    return %c0_i32, %c0_i32_0 : i32, i32
  }
  func.func @transform_4(%arg0: i32) -> (i32, i32) {
    %c0_i32 = arith.constant 0 : i32
    %c0_i32_0 = arith.constant 0 : i32
    %c0_i32_1 = arith.constant 0 : i32
    return %c0_i32, %c0_i32_0 : i32, i32
  }
  func.func @transform_5(%arg0: i32) -> (i32, i32) {
    %c0_i32 = arith.constant 0 : i32
    %c0_i32_0 = arith.constant 0 : i32
    %c0_i32_1 = arith.constant 0 : i32
    return %c0_i32, %c0_i32_0 : i32, i32
  }
  func.func @transform_6(%arg0: i32) -> (i32, i32) {
    %c0_i32 = arith.constant 0 : i32
    %c0_i32_0 = arith.constant 0 : i32
    %c0_i32_1 = arith.constant 0 : i32
    return %c0_i32, %c0_i32_0 : i32, i32
  }
  func.func @transform_7(%arg0: i32) -> (i32, i32) {
    %c0_i32 = arith.constant 0 : i32
    %c0_i32_0 = arith.constant 0 : i32
    %c0_i32_1 = arith.constant 0 : i32
    return %c0_i32, %c0_i32_0 : i32, i32
  }
  func.func @transform_8(%arg0: i32) -> (i32, i32, i32) {
    %c0_i32 = arith.constant 0 : i32
    %c0_i32_0 = arith.constant 0 : i32
    %c0_i32_1 = arith.constant 0 : i32
    %c0_i32_2 = arith.constant 0 : i32
    return %c0_i32, %c0_i32_0, %c0_i32_1 : i32, i32, i32
  }
  func.func @transform_9(%arg0: i32) -> (i32, i32, i32) {
    %c0_i32 = arith.constant 0 : i32
    %c0_i32_0 = arith.constant 0 : i32
    %c0_i32_1 = arith.constant 0 : i32
    %c0_i32_2 = arith.constant 0 : i32
    return %c0_i32, %c0_i32_0, %c0_i32_1 : i32, i32, i32
  }
  func.func @transform_10(%arg0: i32) -> (i32, i32, i32) {
    %c0_i32 = arith.constant 0 : i32
    %c0_i32_0 = arith.constant 0 : i32
    %c0_i32_1 = arith.constant 0 : i32
    %c0_i32_2 = arith.constant 0 : i32
    return %c0_i32, %c0_i32_0, %c0_i32_1 : i32, i32, i32
  }
  func.func @transform_11(%arg0: i32) -> (i32, i32, i32) {
    %c0_i32 = arith.constant 0 : i32
    %c0_i32_0 = arith.constant 0 : i32
    %c0_i32_1 = arith.constant 0 : i32
    %c0_i32_2 = arith.constant 0 : i32
    return %c0_i32, %c0_i32_0, %c0_i32_1 : i32, i32, i32
  }
  func.func @transform_12(%arg0: i32) -> (i32, i32, i32) {
    %c0_i32 = arith.constant 0 : i32
    %c0_i32_0 = arith.constant 0 : i32
    %c0_i32_1 = arith.constant 0 : i32
    %c0_i32_2 = arith.constant 0 : i32
    return %c0_i32, %c0_i32_0, %c0_i32_1 : i32, i32, i32
  }
  func.func @transform_13(%arg0: i32) -> (i32, i32, i32) {
    %c0_i32 = arith.constant 0 : i32
    %c0_i32_0 = arith.constant 0 : i32
    %c0_i32_1 = arith.constant 0 : i32
    %c0_i32_2 = arith.constant 0 : i32
    return %c0_i32, %c0_i32_0, %c0_i32_1 : i32, i32, i32
  }
  func.func @transform_14(%arg0: i32) -> (i32, i32, i32) {
    %c0_i32 = arith.constant 0 : i32
    %c0_i32_0 = arith.constant 0 : i32
    %c0_i32_1 = arith.constant 0 : i32
    %c0_i32_2 = arith.constant 0 : i32
    return %c0_i32, %c0_i32_0, %c0_i32_1 : i32, i32, i32
  }
  func.func @transform_15(%arg0: i32) -> (i32, i32, i32) {
    %c0_i32 = arith.constant 0 : i32
    %c0_i32_0 = arith.constant 0 : i32
    %c0_i32_1 = arith.constant 0 : i32
    %c0_i32_2 = arith.constant 0 : i32
    return %c0_i32, %c0_i32_0, %c0_i32_1 : i32, i32, i32
  }
  func.func @transform_16(%arg0: i32) -> (i32, i32, i32) {
    %c0_i32 = arith.constant 0 : i32
    %c0_i32_0 = arith.constant 0 : i32
    %c0_i32_1 = arith.constant 0 : i32
    %c0_i32_2 = arith.constant 0 : i32
    return %c0_i32, %c0_i32_0, %c0_i32_1 : i32, i32, i32
  }
  func.func @transform_17(%arg0: i32) -> (i32, i32, i32) {
    %c0_i32 = arith.constant 0 : i32
    %c0_i32_0 = arith.constant 0 : i32
    %c0_i32_1 = arith.constant 0 : i32
    %c0_i32_2 = arith.constant 0 : i32
    return %c0_i32, %c0_i32_0, %c0_i32_1 : i32, i32, i32
  }
  func.func @transform_18(%arg0: i32) -> (i32, i32, i32) {
    %c0_i32 = arith.constant 0 : i32
    %c0_i32_0 = arith.constant 0 : i32
    %c0_i32_1 = arith.constant 0 : i32
    %c0_i32_2 = arith.constant 0 : i32
    return %c0_i32, %c0_i32_0, %c0_i32_1 : i32, i32, i32
  }
  func.func @transform_19(%arg0: i32) -> (i32, i32, i32) {
    %c0_i32 = arith.constant 0 : i32
    %c0_i32_0 = arith.constant 0 : i32
    %c0_i32_1 = arith.constant 0 : i32
    %c0_i32_2 = arith.constant 0 : i32
    return %c0_i32, %c0_i32_0, %c0_i32_1 : i32, i32, i32
  }
  func.func @transform_20(%arg0: i32) -> (i32, i32) {
    %c0_i32 = arith.constant 0 : i32
    %c0_i32_0 = arith.constant 0 : i32
    %c0_i32_1 = arith.constant 0 : i32
    return %c0_i32, %c0_i32_0 : i32, i32
  }
  func.func @transform_21(%arg0: i32) -> (i32, i32) {
    %c0_i32 = arith.constant 0 : i32
    %c0_i32_0 = arith.constant 0 : i32
    %c0_i32_1 = arith.constant 0 : i32
    return %c0_i32, %c0_i32_0 : i32, i32
  }
  func.func @transform_22(%arg0: i32) -> (i32, i32) {
    %c0_i32 = arith.constant 0 : i32
    %c0_i32_0 = arith.constant 0 : i32
    %c0_i32_1 = arith.constant 0 : i32
    return %c0_i32, %c0_i32_0 : i32, i32
  }
  func.func @transform_23(%arg0: i32) -> (i32, i32) {
    %c0_i32 = arith.constant 0 : i32
    %c0_i32_0 = arith.constant 0 : i32
    %c0_i32_1 = arith.constant 0 : i32
    return %c0_i32, %c0_i32_0 : i32, i32
  }
  func.func @transform_24(%arg0: i32) -> (i32, i32) {
    %c0_i32 = arith.constant 0 : i32
    %c0_i32_0 = arith.constant 0 : i32
    %c0_i32_1 = arith.constant 0 : i32
    return %c0_i32, %c0_i32_0 : i32, i32
  }
  func.func @transform_25(%arg0: i32) -> (i32, i32) {
    %c0_i32 = arith.constant 0 : i32
    %c0_i32_0 = arith.constant 0 : i32
    %c0_i32_1 = arith.constant 0 : i32
    return %c0_i32, %c0_i32_0 : i32, i32
  }
  func.func @transform_26(%arg0: i32) -> (i32, i32) {
    %c0_i32 = arith.constant 0 : i32
    %c0_i32_0 = arith.constant 0 : i32
    %c0_i32_1 = arith.constant 0 : i32
    return %c0_i32, %c0_i32_0 : i32, i32
  }
}

module attributes {stable_mosaic.version = 11 : i64} {
  func.func @_discriminator_kernel(%arg0: i32, %arg1: memref<16x1xi32, #tpu.memory_space<vmem>>, %arg2: memref<16x1xf32, #tpu.memory_space<vmem>>, %arg3: memref<16x1xf32, #tpu.memory_space<vmem>>, %arg4: memref<2x8xf32, #tpu.memory_space<vmem>>, %arg5: memref<128x32xf32, #tpu.memory_space<vmem>>, %arg6: memref<8x32xf32, #tpu.memory_space<vmem>>, %arg7: memref<1x32xf32, #tpu.memory_space<vmem>>, %arg8: memref<1x32xf32, #tpu.memory_space<vmem>>, %arg9: memref<1x32xf32, #tpu.memory_space<vmem>>, %arg10: memref<1x32x96xf32, #tpu.memory_space<vmem>>, %arg11: memref<1x1x96xf32, #tpu.memory_space<vmem>>, %arg12: memref<1x32x32xf32, #tpu.memory_space<vmem>>, %arg13: memref<1x1x32xf32, #tpu.memory_space<vmem>>, %arg14: memref<1x1x32xf32, #tpu.memory_space<vmem>>, %arg15: memref<1x1x32xf32, #tpu.memory_space<vmem>>, %arg16: memref<1x32x64xf32, #tpu.memory_space<vmem>>, %arg17: memref<1x1x64xf32, #tpu.memory_space<vmem>>, %arg18: memref<1x64x32xf32, #tpu.memory_space<vmem>>, %arg19: memref<1x1x32xf32, #tpu.memory_space<vmem>>, %arg20: memref<1x1x32xf32, #tpu.memory_space<vmem>>, %arg21: memref<1x1x32xf32, #tpu.memory_space<vmem>>, %arg22: memref<32x32xf32, #tpu.memory_space<vmem>>, %arg23: memref<1x32xf32, #tpu.memory_space<vmem>>, %arg24: memref<1x32xf32, #tpu.memory_space<vmem>>, %arg25: memref<1x1xf32, #tpu.memory_space<vmem>>, %arg26: memref<16x1xf32, #tpu.memory_space<vmem>>, %arg27: memref<1x1xf32, #tpu.memory_space<vmem>>) attributes {dimension_semantics = [#tpu.dimension_semantics<arbitrary>], iteration_bounds = array<i64: 1>, scalar_prefetch = 0 : i64, scratch_operands = 0 : i64, tpu.core_type = #tpu.core_type<tc>, window_params = [{pipeline_mode = #tpu.pipeline_mode<synchronous>, transform_indices = @transform_0, window_bounds = array<i64: 16, 1>}, {pipeline_mode = #tpu.pipeline_mode<synchronous>, transform_indices = @transform_1, window_bounds = array<i64: 16, 1>}, {pipeline_mode = #tpu.pipeline_mode<synchronous>, transform_indices = @transform_2, window_bounds = array<i64: 16, 1>}, {pipeline_mode = #tpu.pipeline_mode<synchronous>, transform_indices = @transform_3, window_bounds = array<i64: 2, 8>}, {pipeline_mode = #tpu.pipeline_mode<synchronous>, transform_indices = @transform_4, window_bounds = array<i64: 128, 32>}, {pipeline_mode = #tpu.pipeline_mode<synchronous>, transform_indices = @transform_5, window_bounds = array<i64: 8, 32>}, {pipeline_mode = #tpu.pipeline_mode<synchronous>, transform_indices = @transform_6, window_bounds = array<i64: 1, 32>}, {pipeline_mode = #tpu.pipeline_mode<synchronous>, transform_indices = @transform_7, window_bounds = array<i64: 1, 32>}, {pipeline_mode = #tpu.pipeline_mode<synchronous>, transform_indices = @transform_8, window_bounds = array<i64: 1, 32>}, {pipeline_mode = #tpu.pipeline_mode<synchronous>, transform_indices = @transform_9, window_bounds = array<i64: 1, 32, 96>}, {pipeline_mode = #tpu.pipeline_mode<synchronous>, transform_indices = @transform_10, window_bounds = array<i64: 1, 1, 96>}, {pipeline_mode = #tpu.pipeline_mode<synchronous>, transform_indices = @transform_11, window_bounds = array<i64: 1, 32, 32>}, {pipeline_mode = #tpu.pipeline_mode<synchronous>, transform_indices = @transform_12, window_bounds = array<i64: 1, 1, 32>}, {pipeline_mode = #tpu.pipeline_mode<synchronous>, transform_indices = @transform_13, window_bounds = array<i64: 1, 1, 32>}, {pipeline_mode = #tpu.pipeline_mode<synchronous>, transform_indices = @transform_14, window_bounds = array<i64: 1, 1, 32>}, {pipeline_mode = #tpu.pipeline_mode<synchronous>, transform_indices = @transform_15, window_bounds = array<i64: 1, 32, 64>}, {pipeline_mode = #tpu.pipeline_mode<synchronous>, transform_indices = @transform_16, window_bounds = array<i64: 1, 1, 64>}, {pipeline_mode = #tpu.pipeline_mode<synchronous>, transform_indices = @transform_17, window_bounds = array<i64: 1, 64, 32>}, {pipeline_mode = #tpu.pipeline_mode<synchronous>, transform_indices = @transform_18, window_bounds = array<i64: 1, 1, 32>}, {pipeline_mode = #tpu.pipeline_mode<synchronous>, transform_indices = @transform_19, window_bounds = array<i64: 1, 1, 32>}, {pipeline_mode = #tpu.pipeline_mode<synchronous>, transform_indices = @transform_20, window_bounds = array<i64: 1, 1, 32>}, {pipeline_mode = #tpu.pipeline_mode<synchronous>, transform_indices = @transform_21, window_bounds = array<i64: 32, 32>}, {pipeline_mode = #tpu.pipeline_mode<synchronous>, transform_indices = @transform_22, window_bounds = array<i64: 1, 32>}, {pipeline_mode = #tpu.pipeline_mode<synchronous>, transform_indices = @transform_23, window_bounds = array<i64: 1, 32>}, {pipeline_mode = #tpu.pipeline_mode<synchronous>, transform_indices = @transform_24, window_bounds = array<i64: 1, 1>}, {pipeline_mode = #tpu.pipeline_mode<synchronous>, transform_indices = @transform_25, window_bounds = array<i64: 16, 1>}, {pipeline_mode = #tpu.pipeline_mode<synchronous>, transform_indices = @transform_26, window_bounds = array<i64: 1, 1>}]} {
    %c0 = arith.constant 0 : index
    %c0_0 = arith.constant 0 : index
    %0 = vector.load %arg5[%c0, %c0_0] : memref<128x32xf32, #tpu.memory_space<vmem>>, vector<128x32xf32>
    %c0_1 = arith.constant 0 : index
    %c0_2 = arith.constant 0 : index
    %1 = vector.load %arg1[%c0_1, %c0_2] : memref<16x1xi32, #tpu.memory_space<vmem>>, vector<16x1xi32>
    %c0_3 = arith.constant 0 : index
    %c0_4 = arith.constant 0 : index
    %2 = vector.load %arg6[%c0_3, %c0_4] : memref<8x32xf32, #tpu.memory_space<vmem>>, vector<8x32xf32>
    %c0_5 = arith.constant 0 : index
    %c0_6 = arith.constant 0 : index
    %3 = vector.load %arg7[%c0_5, %c0_6] : memref<1x32xf32, #tpu.memory_space<vmem>>, vector<1x32xf32>
    %c0_7 = arith.constant 0 : index
    %c0_8 = arith.constant 0 : index
    %4 = vector.load %arg8[%c0_7, %c0_8] : memref<1x32xf32, #tpu.memory_space<vmem>>, vector<1x32xf32>
    %c0_9 = arith.constant 0 : index
    %c0_10 = arith.constant 0 : index
    %5 = vector.load %arg9[%c0_9, %c0_10] : memref<1x32xf32, #tpu.memory_space<vmem>>, vector<1x32xf32>
    %6 = tpu.iota {dimensions = array<i32: 1>} : vector<16x128xi32>
    %7 = vector.broadcast %1 : vector<16x1xi32> to vector<16x128xi32>
    %8 = arith.cmpi eq, %6, %7 : vector<16x128xi32>
    %9 = arith.extui %8 : vector<16x128xi1> to vector<16x128xi32>
    %10 = arith.sitofp %9 : vector<16x128xi32> to vector<16x128xf32>
    %cst = arith.constant dense<0.000000e+00> : vector<16x32xf32>
    %11 = tpu.matmul %10, %0, %cst {dimension_numbers = #tpu.dot_dimension_numbers<[1], [0], [0], [1], [0, 0, 1, 1], [], []>} : vector<16x128xf32>, vector<128x32xf32>, vector<16x32xf32> -> vector<16x32xf32>
    %12 = vector.shape_cast %2 : vector<8x32xf32> to vector<1x8x32xf32>
    %13 = vector.shape_cast %12 : vector<1x8x32xf32> to vector<1x8x32xf32>
    %14 = vector.broadcast %13 : vector<1x8x32xf32> to vector<2x8x32xf32>
    %15 = vector.shape_cast %14 : vector<2x8x32xf32> to vector<16x32xf32>
    %16 = arith.addf %11, %15 : vector<16x32xf32>
    %17 = vector.broadcast %3 : vector<1x32xf32> to vector<16x32xf32>
    %18 = arith.addf %16, %17 : vector<16x32xf32>
    %cst_11 = arith.constant dense<0.000000e+00> : vector<16xf32>
    %19 = vector.multi_reduction <add>, %18, %cst_11 [1] : vector<16x32xf32> to vector<16xf32>
    %20 = vector.shape_cast %19 : vector<16xf32> to vector<16x1xf32>
    %cst_12 = arith.constant 3.200000e+01 : f32
    %21 = vector.broadcast %cst_12 : f32 to vector<16x1xf32>
    %22 = arith.divf %20, %21 : vector<16x1xf32>
    %23 = vector.broadcast %22 : vector<16x1xf32> to vector<16x32xf32>
    %24 = arith.subf %18, %23 : vector<16x32xf32>
    %25 = arith.mulf %24, %24 : vector<16x32xf32>
    %cst_13 = arith.constant dense<0.000000e+00> : vector<16xf32>
    %26 = vector.multi_reduction <add>, %25, %cst_13 [1] : vector<16x32xf32> to vector<16xf32>
    %27 = vector.shape_cast %26 : vector<16xf32> to vector<16x1xf32>
    %cst_14 = arith.constant 3.200000e+01 : f32
    %28 = vector.broadcast %cst_14 : f32 to vector<16x1xf32>
    %29 = arith.divf %27, %28 : vector<16x1xf32>
    %30 = vector.broadcast %22 : vector<16x1xf32> to vector<16x32xf32>
    %31 = arith.subf %18, %30 : vector<16x32xf32>
    %cst_15 = arith.constant 9.99999996E-13 : f32
    %32 = vector.broadcast %cst_15 : f32 to vector<16x1xf32>
    %33 = arith.addf %29, %32 : vector<16x1xf32>
    %34 = math.rsqrt %33 : vector<16x1xf32>
    %35 = vector.broadcast %34 : vector<16x1xf32> to vector<16x32xf32>
    %36 = arith.mulf %31, %35 : vector<16x32xf32>
    %37 = vector.broadcast %4 : vector<1x32xf32> to vector<16x32xf32>
    %38 = arith.mulf %36, %37 : vector<16x32xf32>
    %39 = vector.broadcast %5 : vector<1x32xf32> to vector<16x32xf32>
    %40 = arith.addf %38, %39 : vector<16x32xf32>
    %c0_16 = arith.constant 0 : index
    %c0_17 = arith.constant 0 : index
    %41 = vector.load %arg4[%c0_16, %c0_17] : memref<2x8xf32, #tpu.memory_space<vmem>>, vector<2x8xf32>
    %cst_18 = arith.constant 1.000000e+00 : f32
    %42 = vector.broadcast %cst_18 : f32 to vector<2x8xf32>
    %43 = arith.subf %42, %41 : vector<2x8xf32>
    %cst_19 = arith.constant -1.000000e+09 : f32
    %44 = vector.broadcast %cst_19 : f32 to vector<2x8xf32>
    %45 = arith.mulf %43, %44 : vector<2x8xf32>
    %c0_20 = arith.constant 0 : index
    %c0_21 = arith.constant 0 : index
    %c0_22 = arith.constant 0 : index
    %46 = vector.load %arg10[%c0_20, %c0_21, %c0_22] : memref<1x32x96xf32, #tpu.memory_space<vmem>>, vector<1x32x96xf32>
    %47 = vector.shape_cast %46 : vector<1x32x96xf32> to vector<32x96xf32>
    %c0_23 = arith.constant 0 : index
    %c0_24 = arith.constant 0 : index
    %c0_25 = arith.constant 0 : index
    %48 = vector.load %arg11[%c0_23, %c0_24, %c0_25] : memref<1x1x96xf32, #tpu.memory_space<vmem>>, vector<1x1x96xf32>
    %49 = vector.shape_cast %48 : vector<1x1x96xf32> to vector<1x96xf32>
    %c0_26 = arith.constant 0 : index
    %c0_27 = arith.constant 0 : index
    %c0_28 = arith.constant 0 : index
    %50 = vector.load %arg12[%c0_26, %c0_27, %c0_28] : memref<1x32x32xf32, #tpu.memory_space<vmem>>, vector<1x32x32xf32>
    %51 = vector.shape_cast %50 : vector<1x32x32xf32> to vector<32x32xf32>
    %c0_29 = arith.constant 0 : index
    %c0_30 = arith.constant 0 : index
    %c0_31 = arith.constant 0 : index
    %52 = vector.load %arg13[%c0_29, %c0_30, %c0_31] : memref<1x1x32xf32, #tpu.memory_space<vmem>>, vector<1x1x32xf32>
    %53 = vector.shape_cast %52 : vector<1x1x32xf32> to vector<1x32xf32>
    %c0_32 = arith.constant 0 : index
    %c0_33 = arith.constant 0 : index
    %c0_34 = arith.constant 0 : index
    %54 = vector.load %arg14[%c0_32, %c0_33, %c0_34] : memref<1x1x32xf32, #tpu.memory_space<vmem>>, vector<1x1x32xf32>
    %55 = vector.shape_cast %54 : vector<1x1x32xf32> to vector<1x32xf32>
    %c0_35 = arith.constant 0 : index
    %c0_36 = arith.constant 0 : index
    %c0_37 = arith.constant 0 : index
    %56 = vector.load %arg15[%c0_35, %c0_36, %c0_37] : memref<1x1x32xf32, #tpu.memory_space<vmem>>, vector<1x1x32xf32>
    %57 = vector.shape_cast %56 : vector<1x1x32xf32> to vector<1x32xf32>
    %c0_38 = arith.constant 0 : index
    %c0_39 = arith.constant 0 : index
    %c0_40 = arith.constant 0 : index
    %58 = vector.load %arg16[%c0_38, %c0_39, %c0_40] : memref<1x32x64xf32, #tpu.memory_space<vmem>>, vector<1x32x64xf32>
    %59 = vector.shape_cast %58 : vector<1x32x64xf32> to vector<32x64xf32>
    %c0_41 = arith.constant 0 : index
    %c0_42 = arith.constant 0 : index
    %c0_43 = arith.constant 0 : index
    %60 = vector.load %arg17[%c0_41, %c0_42, %c0_43] : memref<1x1x64xf32, #tpu.memory_space<vmem>>, vector<1x1x64xf32>
    %61 = vector.shape_cast %60 : vector<1x1x64xf32> to vector<1x64xf32>
    %c0_44 = arith.constant 0 : index
    %c0_45 = arith.constant 0 : index
    %c0_46 = arith.constant 0 : index
    %62 = vector.load %arg18[%c0_44, %c0_45, %c0_46] : memref<1x64x32xf32, #tpu.memory_space<vmem>>, vector<1x64x32xf32>
    %63 = vector.shape_cast %62 : vector<1x64x32xf32> to vector<64x32xf32>
    %c0_47 = arith.constant 0 : index
    %c0_48 = arith.constant 0 : index
    %c0_49 = arith.constant 0 : index
    %64 = vector.load %arg19[%c0_47, %c0_48, %c0_49] : memref<1x1x32xf32, #tpu.memory_space<vmem>>, vector<1x1x32xf32>
    %65 = vector.shape_cast %64 : vector<1x1x32xf32> to vector<1x32xf32>
    %c0_50 = arith.constant 0 : index
    %c0_51 = arith.constant 0 : index
    %c0_52 = arith.constant 0 : index
    %66 = vector.load %arg20[%c0_50, %c0_51, %c0_52] : memref<1x1x32xf32, #tpu.memory_space<vmem>>, vector<1x1x32xf32>
    %67 = vector.shape_cast %66 : vector<1x1x32xf32> to vector<1x32xf32>
    %c0_53 = arith.constant 0 : index
    %c0_54 = arith.constant 0 : index
    %c0_55 = arith.constant 0 : index
    %68 = vector.load %arg21[%c0_53, %c0_54, %c0_55] : memref<1x1x32xf32, #tpu.memory_space<vmem>>, vector<1x1x32xf32>
    %69 = vector.shape_cast %68 : vector<1x1x32xf32> to vector<1x32xf32>
    %cst_56 = arith.constant dense<0.000000e+00> : vector<16x96xf32>
    %70 = tpu.matmul %40, %47, %cst_56 {dimension_numbers = #tpu.dot_dimension_numbers<[1], [0], [0], [1], [0, 0, 1, 1], [], []>} : vector<16x32xf32>, vector<32x96xf32>, vector<16x96xf32> -> vector<16x96xf32>
    %71 = vector.broadcast %49 : vector<1x96xf32> to vector<16x96xf32>
    %72 = arith.addf %70, %71 : vector<16x96xf32>
    %73 = vector.extract_strided_slice %72 {offsets = [0, 0], sizes = [16, 32], strides = [1, 1]} : vector<16x96xf32> to vector<16x32xf32>
    %cst_57 = arith.constant 2.500000e-01 : f32
    %74 = vector.broadcast %cst_57 : f32 to vector<16x32xf32>
    %75 = arith.mulf %73, %74 : vector<16x32xf32>
    %76 = vector.extract_strided_slice %72 {offsets = [0, 32], sizes = [16, 32], strides = [1, 1]} : vector<16x96xf32> to vector<16x32xf32>
    %77 = vector.extract_strided_slice %72 {offsets = [0, 64], sizes = [16, 32], strides = [1, 1]} : vector<16x96xf32> to vector<16x32xf32>
    %78 = vector.shape_cast %45 : vector<2x8xf32> to vector<2x1x8xf32>
    %79 = vector.extract_strided_slice %75 {offsets = [0, 0], sizes = [16, 16], strides = [1, 1]} : vector<16x32xf32> to vector<16x16xf32>
    %80 = vector.shape_cast %79 : vector<16x16xf32> to vector<2x8x16xf32>
    %81 = vector.extract_strided_slice %76 {offsets = [0, 0], sizes = [16, 16], strides = [1, 1]} : vector<16x32xf32> to vector<16x16xf32>
    %82 = vector.shape_cast %81 : vector<16x16xf32> to vector<2x8x16xf32>
    %83 = vector.extract_strided_slice %77 {offsets = [0, 0], sizes = [16, 16], strides = [1, 1]} : vector<16x32xf32> to vector<16x16xf32>
    %84 = vector.shape_cast %83 : vector<16x16xf32> to vector<2x8x16xf32>
    "tpu.trace_start"() <{level = 10 : i32, message = "bqd,bkd->bqk"}> : () -> ()
    %cst_58 = arith.constant dense<0.000000e+00> : vector<2x8x8xf32>
    %85 = tpu.matmul %80, %82, %cst_58 {dimension_numbers = #tpu.dot_dimension_numbers<[2], [2], [1], [1], [0, 0, 0, 1, 1, 1], [0], [0]>} : vector<2x8x16xf32>, vector<2x8x16xf32>, vector<2x8x8xf32> -> vector<2x8x8xf32>
    "tpu.trace_stop"() : () -> ()
    %86 = vector.broadcast %78 : vector<2x1x8xf32> to vector<2x8x8xf32>
    %87 = arith.addf %85, %86 : vector<2x8x8xf32>
    %cst_59 = arith.constant dense<0xFF800000> : vector<2x8xf32>
    %88 = vector.multi_reduction <maximumf>, %87, %cst_59 [2] : vector<2x8x8xf32> to vector<2x8xf32>
    %89 = vector.shape_cast %88 : vector<2x8xf32> to vector<2x8x1xf32>
    %90 = vector.broadcast %89 : vector<2x8x1xf32> to vector<2x8x8xf32>
    %91 = arith.subf %87, %90 : vector<2x8x8xf32>
    %92 = math.exp %91 : vector<2x8x8xf32>
    %cst_60 = arith.constant dense<0.000000e+00> : vector<2x8xf32>
    %93 = vector.multi_reduction <add>, %92, %cst_60 [2] : vector<2x8x8xf32> to vector<2x8xf32>
    %94 = vector.shape_cast %93 : vector<2x8xf32> to vector<2x8x1xf32>
    %95 = tpu.reciprocal %94 {approx = true} : vector<2x8x1xf32> -> vector<2x8x1xf32>
    %96 = vector.broadcast %95 : vector<2x8x1xf32> to vector<2x8x8xf32>
    %97 = arith.mulf %92, %96 : vector<2x8x8xf32>
    "tpu.trace_start"() <{level = 10 : i32, message = "bqk,bkd->bqd"}> : () -> ()
    %cst_61 = arith.constant dense<0.000000e+00> : vector<2x8x16xf32>
    %98 = tpu.matmul %97, %84, %cst_61 {dimension_numbers = #tpu.dot_dimension_numbers<[2], [1], [1], [2], [0, 0, 0, 1, 1, 2], [0], [0]>} : vector<2x8x8xf32>, vector<2x8x16xf32>, vector<2x8x16xf32> -> vector<2x8x16xf32>
    "tpu.trace_stop"() : () -> ()
    %99 = vector.shape_cast %98 : vector<2x8x16xf32> to vector<16x16xf32>
    %100 = vector.extract_strided_slice %51 {offsets = [0, 0], sizes = [16, 32], strides = [1, 1]} : vector<32x32xf32> to vector<16x32xf32>
    %cst_62 = arith.constant dense<0.000000e+00> : vector<16x32xf32>
    %101 = tpu.matmul %99, %100, %cst_62 {dimension_numbers = #tpu.dot_dimension_numbers<[1], [0], [0], [1], [0, 0, 1, 1], [], []>} : vector<16x16xf32>, vector<16x32xf32>, vector<16x32xf32> -> vector<16x32xf32>
    %102 = vector.extract_strided_slice %75 {offsets = [0, 16], sizes = [16, 16], strides = [1, 1]} : vector<16x32xf32> to vector<16x16xf32>
    %103 = vector.shape_cast %102 : vector<16x16xf32> to vector<2x8x16xf32>
    %104 = vector.extract_strided_slice %76 {offsets = [0, 16], sizes = [16, 16], strides = [1, 1]} : vector<16x32xf32> to vector<16x16xf32>
    %105 = vector.shape_cast %104 : vector<16x16xf32> to vector<2x8x16xf32>
    %106 = vector.extract_strided_slice %77 {offsets = [0, 16], sizes = [16, 16], strides = [1, 1]} : vector<16x32xf32> to vector<16x16xf32>
    %107 = vector.shape_cast %106 : vector<16x16xf32> to vector<2x8x16xf32>
    "tpu.trace_start"() <{level = 10 : i32, message = "bqd,bkd->bqk"}> : () -> ()
    %cst_63 = arith.constant dense<0.000000e+00> : vector<2x8x8xf32>
    %108 = tpu.matmul %103, %105, %cst_63 {dimension_numbers = #tpu.dot_dimension_numbers<[2], [2], [1], [1], [0, 0, 0, 1, 1, 1], [0], [0]>} : vector<2x8x16xf32>, vector<2x8x16xf32>, vector<2x8x8xf32> -> vector<2x8x8xf32>
    "tpu.trace_stop"() : () -> ()
    %109 = vector.broadcast %78 : vector<2x1x8xf32> to vector<2x8x8xf32>
    %110 = arith.addf %108, %109 : vector<2x8x8xf32>
    %cst_64 = arith.constant dense<0xFF800000> : vector<2x8xf32>
    %111 = vector.multi_reduction <maximumf>, %110, %cst_64 [2] : vector<2x8x8xf32> to vector<2x8xf32>
    %112 = vector.shape_cast %111 : vector<2x8xf32> to vector<2x8x1xf32>
    %113 = vector.broadcast %112 : vector<2x8x1xf32> to vector<2x8x8xf32>
    %114 = arith.subf %110, %113 : vector<2x8x8xf32>
    %115 = math.exp %114 : vector<2x8x8xf32>
    %cst_65 = arith.constant dense<0.000000e+00> : vector<2x8xf32>
    %116 = vector.multi_reduction <add>, %115, %cst_65 [2] : vector<2x8x8xf32> to vector<2x8xf32>
    %117 = vector.shape_cast %116 : vector<2x8xf32> to vector<2x8x1xf32>
    %118 = tpu.reciprocal %117 {approx = true} : vector<2x8x1xf32> -> vector<2x8x1xf32>
    %119 = vector.broadcast %118 : vector<2x8x1xf32> to vector<2x8x8xf32>
    %120 = arith.mulf %115, %119 : vector<2x8x8xf32>
    "tpu.trace_start"() <{level = 10 : i32, message = "bqk,bkd->bqd"}> : () -> ()
    %cst_66 = arith.constant dense<0.000000e+00> : vector<2x8x16xf32>
    %121 = tpu.matmul %120, %107, %cst_66 {dimension_numbers = #tpu.dot_dimension_numbers<[2], [1], [1], [2], [0, 0, 0, 1, 1, 2], [0], [0]>} : vector<2x8x8xf32>, vector<2x8x16xf32>, vector<2x8x16xf32> -> vector<2x8x16xf32>
    "tpu.trace_stop"() : () -> ()
    %122 = vector.shape_cast %121 : vector<2x8x16xf32> to vector<16x16xf32>
    %123 = vector.extract_strided_slice %51 {offsets = [16, 0], sizes = [16, 32], strides = [1, 1]} : vector<32x32xf32> to vector<16x32xf32>
    %cst_67 = arith.constant dense<0.000000e+00> : vector<16x32xf32>
    %124 = tpu.matmul %122, %123, %cst_67 {dimension_numbers = #tpu.dot_dimension_numbers<[1], [0], [0], [1], [0, 0, 1, 1], [], []>} : vector<16x16xf32>, vector<16x32xf32>, vector<16x32xf32> -> vector<16x32xf32>
    %125 = arith.addf %101, %124 : vector<16x32xf32>
    %126 = vector.broadcast %53 : vector<1x32xf32> to vector<16x32xf32>
    %127 = arith.addf %125, %126 : vector<16x32xf32>
    %128 = arith.addf %40, %127 : vector<16x32xf32>
    %cst_68 = arith.constant dense<0.000000e+00> : vector<16xf32>
    %129 = vector.multi_reduction <add>, %128, %cst_68 [1] : vector<16x32xf32> to vector<16xf32>
    %130 = vector.shape_cast %129 : vector<16xf32> to vector<16x1xf32>
    %cst_69 = arith.constant 3.200000e+01 : f32
    %131 = vector.broadcast %cst_69 : f32 to vector<16x1xf32>
    %132 = arith.divf %130, %131 : vector<16x1xf32>
    %133 = vector.broadcast %132 : vector<16x1xf32> to vector<16x32xf32>
    %134 = arith.subf %128, %133 : vector<16x32xf32>
    %135 = arith.mulf %134, %134 : vector<16x32xf32>
    %cst_70 = arith.constant dense<0.000000e+00> : vector<16xf32>
    %136 = vector.multi_reduction <add>, %135, %cst_70 [1] : vector<16x32xf32> to vector<16xf32>
    %137 = vector.shape_cast %136 : vector<16xf32> to vector<16x1xf32>
    %cst_71 = arith.constant 3.200000e+01 : f32
    %138 = vector.broadcast %cst_71 : f32 to vector<16x1xf32>
    %139 = arith.divf %137, %138 : vector<16x1xf32>
    %140 = vector.broadcast %132 : vector<16x1xf32> to vector<16x32xf32>
    %141 = arith.subf %128, %140 : vector<16x32xf32>
    %cst_72 = arith.constant 9.99999996E-13 : f32
    %142 = vector.broadcast %cst_72 : f32 to vector<16x1xf32>
    %143 = arith.addf %139, %142 : vector<16x1xf32>
    %144 = math.rsqrt %143 : vector<16x1xf32>
    %145 = vector.broadcast %144 : vector<16x1xf32> to vector<16x32xf32>
    %146 = arith.mulf %141, %145 : vector<16x32xf32>
    %147 = vector.broadcast %55 : vector<1x32xf32> to vector<16x32xf32>
    %148 = arith.mulf %146, %147 : vector<16x32xf32>
    %149 = vector.broadcast %57 : vector<1x32xf32> to vector<16x32xf32>
    %150 = arith.addf %148, %149 : vector<16x32xf32>
    %cst_73 = arith.constant dense<0.000000e+00> : vector<16x64xf32>
    %151 = tpu.matmul %150, %59, %cst_73 {dimension_numbers = #tpu.dot_dimension_numbers<[1], [0], [0], [1], [0, 0, 1, 1], [], []>} : vector<16x32xf32>, vector<32x64xf32>, vector<16x64xf32> -> vector<16x64xf32>
    %152 = vector.broadcast %61 : vector<1x64xf32> to vector<16x64xf32>
    %153 = arith.addf %151, %152 : vector<16x64xf32>
    %cst_74 = arith.constant 5.000000e-01 : f32
    %154 = vector.broadcast %cst_74 : f32 to vector<16x64xf32>
    %155 = arith.mulf %154, %153 : vector<16x64xf32>
    %cst_75 = arith.constant 4.471500e-02 : f32
    %156 = vector.broadcast %cst_75 : f32 to vector<16x64xf32>
    %157 = arith.mulf %156, %153 : vector<16x64xf32>
    %158 = arith.mulf %157, %153 : vector<16x64xf32>
    %159 = arith.mulf %158, %153 : vector<16x64xf32>
    %160 = arith.addf %153, %159 : vector<16x64xf32>
    %cst_76 = arith.constant 0.797884583 : f32
    %161 = vector.broadcast %cst_76 : f32 to vector<16x64xf32>
    %162 = arith.mulf %161, %160 : vector<16x64xf32>
    %163 = math.tanh %162 : vector<16x64xf32>
    %cst_77 = arith.constant 1.000000e+00 : f32
    %164 = vector.broadcast %cst_77 : f32 to vector<16x64xf32>
    %165 = arith.addf %164, %163 : vector<16x64xf32>
    %166 = arith.mulf %155, %165 : vector<16x64xf32>
    %cst_78 = arith.constant dense<0.000000e+00> : vector<16x32xf32>
    %167 = tpu.matmul %166, %63, %cst_78 {dimension_numbers = #tpu.dot_dimension_numbers<[1], [0], [0], [1], [0, 0, 1, 1], [], []>} : vector<16x64xf32>, vector<64x32xf32>, vector<16x32xf32> -> vector<16x32xf32>
    %168 = vector.broadcast %65 : vector<1x32xf32> to vector<16x32xf32>
    %169 = arith.addf %167, %168 : vector<16x32xf32>
    %170 = arith.addf %150, %169 : vector<16x32xf32>
    %cst_79 = arith.constant dense<0.000000e+00> : vector<16xf32>
    %171 = vector.multi_reduction <add>, %170, %cst_79 [1] : vector<16x32xf32> to vector<16xf32>
    %172 = vector.shape_cast %171 : vector<16xf32> to vector<16x1xf32>
    %cst_80 = arith.constant 3.200000e+01 : f32
    %173 = vector.broadcast %cst_80 : f32 to vector<16x1xf32>
    %174 = arith.divf %172, %173 : vector<16x1xf32>
    %175 = vector.broadcast %174 : vector<16x1xf32> to vector<16x32xf32>
    %176 = arith.subf %170, %175 : vector<16x32xf32>
    %177 = arith.mulf %176, %176 : vector<16x32xf32>
    %cst_81 = arith.constant dense<0.000000e+00> : vector<16xf32>
    %178 = vector.multi_reduction <add>, %177, %cst_81 [1] : vector<16x32xf32> to vector<16xf32>
    %179 = vector.shape_cast %178 : vector<16xf32> to vector<16x1xf32>
    %cst_82 = arith.constant 3.200000e+01 : f32
    %180 = vector.broadcast %cst_82 : f32 to vector<16x1xf32>
    %181 = arith.divf %179, %180 : vector<16x1xf32>
    %182 = vector.broadcast %174 : vector<16x1xf32> to vector<16x32xf32>
    %183 = arith.subf %170, %182 : vector<16x32xf32>
    %cst_83 = arith.constant 9.99999996E-13 : f32
    %184 = vector.broadcast %cst_83 : f32 to vector<16x1xf32>
    %185 = arith.addf %181, %184 : vector<16x1xf32>
    %186 = math.rsqrt %185 : vector<16x1xf32>
    %187 = vector.broadcast %186 : vector<16x1xf32> to vector<16x32xf32>
    %188 = arith.mulf %183, %187 : vector<16x32xf32>
    %189 = vector.broadcast %67 : vector<1x32xf32> to vector<16x32xf32>
    %190 = arith.mulf %188, %189 : vector<16x32xf32>
    %191 = vector.broadcast %69 : vector<1x32xf32> to vector<16x32xf32>
    %192 = arith.addf %190, %191 : vector<16x32xf32>
    %c0_84 = arith.constant 0 : index
    %c0_85 = arith.constant 0 : index
    %193 = vector.load %arg22[%c0_84, %c0_85] : memref<32x32xf32, #tpu.memory_space<vmem>>, vector<32x32xf32>
    %cst_86 = arith.constant dense<0.000000e+00> : vector<16x32xf32>
    %194 = tpu.matmul %192, %193, %cst_86 {dimension_numbers = #tpu.dot_dimension_numbers<[1], [0], [0], [1], [0, 0, 1, 1], [], []>} : vector<16x32xf32>, vector<32x32xf32>, vector<16x32xf32> -> vector<16x32xf32>
    %c0_87 = arith.constant 0 : index
    %c0_88 = arith.constant 0 : index
    %195 = vector.load %arg23[%c0_87, %c0_88] : memref<1x32xf32, #tpu.memory_space<vmem>>, vector<1x32xf32>
    %196 = vector.broadcast %195 : vector<1x32xf32> to vector<16x32xf32>
    %197 = arith.addf %194, %196 : vector<16x32xf32>
    %cst_89 = arith.constant 5.000000e-01 : f32
    %198 = vector.broadcast %cst_89 : f32 to vector<16x32xf32>
    %199 = arith.mulf %198, %197 : vector<16x32xf32>
    %cst_90 = arith.constant 4.471500e-02 : f32
    %200 = vector.broadcast %cst_90 : f32 to vector<16x32xf32>
    %201 = arith.mulf %200, %197 : vector<16x32xf32>
    %202 = arith.mulf %201, %197 : vector<16x32xf32>
    %203 = arith.mulf %202, %197 : vector<16x32xf32>
    %204 = arith.addf %197, %203 : vector<16x32xf32>
    %cst_91 = arith.constant 0.797884583 : f32
    %205 = vector.broadcast %cst_91 : f32 to vector<16x32xf32>
    %206 = arith.mulf %205, %204 : vector<16x32xf32>
    %207 = math.tanh %206 : vector<16x32xf32>
    %cst_92 = arith.constant 1.000000e+00 : f32
    %208 = vector.broadcast %cst_92 : f32 to vector<16x32xf32>
    %209 = arith.addf %208, %207 : vector<16x32xf32>
    %210 = arith.mulf %199, %209 : vector<16x32xf32>
    %c0_93 = arith.constant 0 : index
    %c0_94 = arith.constant 0 : index
    %211 = vector.load %arg24[%c0_93, %c0_94] : memref<1x32xf32, #tpu.memory_space<vmem>>, vector<1x32xf32>
    %212 = vector.broadcast %211 : vector<1x32xf32> to vector<16x32xf32>
    %213 = arith.mulf %210, %212 : vector<16x32xf32>
    %cst_95 = arith.constant dense<0.000000e+00> : vector<16xf32>
    %214 = vector.multi_reduction <add>, %213, %cst_95 [1] : vector<16x32xf32> to vector<16xf32>
    %215 = vector.shape_cast %214 : vector<16xf32> to vector<16x1xf32>
    %c0_96 = arith.constant 0 : index
    %c0_97 = arith.constant 0 : index
    %216 = vector.load %arg25[%c0_96, %c0_97] : memref<1x1xf32, #tpu.memory_space<vmem>>, vector<1x1xf32>
    %217 = vector.broadcast %216 : vector<1x1xf32> to vector<16x1xf32>
    %218 = arith.addf %215, %217 : vector<16x1xf32>
    %c0_98 = arith.constant 0 : index
    %c0_99 = arith.constant 0 : index
    %219 = vector.load %arg26[%c0_98, %c0_99] : memref<16x1xf32, #tpu.memory_space<vmem>>, vector<16x1xf32>
    tpu.vector_store %arg26[%c0_98, %c0_99], %218 {strides = array<i32>} : memref<16x1xf32, #tpu.memory_space<vmem>>, vector<16x1xf32>,
    %c0_100 = arith.constant 0 : index
    %c0_101 = arith.constant 0 : index
    %220 = vector.load %arg2[%c0_100, %c0_101] : memref<16x1xf32, #tpu.memory_space<vmem>>, vector<16x1xf32>
    %c0_102 = arith.constant 0 : index
    %c0_103 = arith.constant 0 : index
    %221 = vector.load %arg3[%c0_102, %c0_103] : memref<16x1xf32, #tpu.memory_space<vmem>>, vector<16x1xf32>
    %cst_104 = arith.constant 0.000000e+00 : f32
    %222 = vector.broadcast %cst_104 : f32 to vector<16x1xf32>
    %223 = arith.maximumf %218, %222 : vector<16x1xf32>
    %224 = arith.mulf %218, %220 : vector<16x1xf32>
    %225 = arith.subf %223, %224 : vector<16x1xf32>
    %226 = math.absf %218 : vector<16x1xf32>
    %cst_105 = arith.constant 0.000000e+00 : f32
    %227 = vector.broadcast %cst_105 : f32 to vector<16x1xf32>
    %228 = arith.subf %227, %226 : vector<16x1xf32>
    %229 = math.exp %228 : vector<16x1xf32>
    %cst_106 = arith.constant 1.000000e+00 : f32
    %230 = vector.broadcast %cst_106 : f32 to vector<16x1xf32>
    %231 = arith.addf %230, %229 : vector<16x1xf32>
    %232 = math.log %231 : vector<16x1xf32>
    %233 = arith.addf %225, %232 : vector<16x1xf32>
    %cst_107 = arith.constant 0.000000e+00 : f32
    %234 = vector.broadcast %cst_107 : f32 to vector<16x1xf32>
    %235 = arith.subf %234, %218 : vector<16x1xf32>
    %236 = math.exp %235 : vector<16x1xf32>
    %cst_108 = arith.constant 1.000000e+00 : f32
    %237 = vector.broadcast %cst_108 : f32 to vector<16x1xf32>
    %238 = arith.addf %237, %236 : vector<16x1xf32>
    %239 = tpu.reciprocal %238 {approx = true} : vector<16x1xf32> -> vector<16x1xf32>
    %240 = arith.mulf %239, %220 : vector<16x1xf32>
    %cst_109 = arith.constant 1.000000e+00 : f32
    %241 = vector.broadcast %cst_109 : f32 to vector<16x1xf32>
    %242 = arith.subf %241, %239 : vector<16x1xf32>
    %cst_110 = arith.constant 1.000000e+00 : f32
    %243 = vector.broadcast %cst_110 : f32 to vector<16x1xf32>
    %244 = arith.subf %243, %220 : vector<16x1xf32>
    %245 = arith.mulf %242, %244 : vector<16x1xf32>
    %246 = arith.addf %240, %245 : vector<16x1xf32>
    %cst_111 = arith.constant 1.000000e+00 : f32
    %247 = vector.broadcast %cst_111 : f32 to vector<16x1xf32>
    %248 = arith.subf %247, %246 : vector<16x1xf32>
    %cst_112 = arith.constant 1.000000e+00 : f32
    %249 = vector.broadcast %cst_112 : f32 to vector<16x1xf32>
    %250 = arith.subf %249, %246 : vector<16x1xf32>
    %251 = arith.mulf %248, %250 : vector<16x1xf32>
    %252 = arith.mulf %233, %251 : vector<16x1xf32>
    %253 = arith.mulf %252, %221 : vector<16x1xf32>
    %254 = vector.shape_cast %253 : vector<16x1xf32> to vector<1x16x1xf32>
    %cst_113 = arith.constant dense<0.000000e+00> : vector<1xf32>
    %255 = vector.multi_reduction <add>, %254, %cst_113 [1, 2] : vector<1x16x1xf32> to vector<1xf32>
    %256 = vector.shape_cast %255 : vector<1xf32> to vector<1x1x1xf32>
    %257 = vector.extract %256[0, 0, 0] : f32 from vector<1x1x1xf32>
    %258 = vector.broadcast %257 : f32 to vector<1x1xf32>
    %259 = vector.shape_cast %221 : vector<16x1xf32> to vector<1x16x1xf32>
    %cst_114 = arith.constant dense<0.000000e+00> : vector<1xf32>
    %260 = vector.multi_reduction <add>, %259, %cst_114 [1, 2] : vector<1x16x1xf32> to vector<1xf32>
    %261 = vector.shape_cast %260 : vector<1xf32> to vector<1x1x1xf32>
    %262 = vector.extract %261[0, 0, 0] : f32 from vector<1x1x1xf32>
    %263 = vector.broadcast %262 : f32 to vector<1x1xf32>
    %cst_115 = arith.constant 1.000000e+00 : f32
    %264 = vector.broadcast %cst_115 : f32 to vector<1x1xf32>
    %265 = arith.maximumf %263, %264 : vector<1x1xf32>
    %266 = tpu.reciprocal %265 {approx = true} : vector<1x1xf32> -> vector<1x1xf32>
    %267 = arith.mulf %258, %266 : vector<1x1xf32>
    %c0_116 = arith.constant 0 : index
    %c0_117 = arith.constant 0 : index
    %268 = vector.load %arg27[%c0_116, %c0_117] : memref<1x1xf32, #tpu.memory_space<vmem>>, vector<1x1xf32>
    tpu.vector_store %arg27[%c0_116, %c0_117], %267 {strides = array<i32>} : memref<1x1xf32, #tpu.memory_space<vmem>>, vector<1x1xf32>,
    return
  }
  func.func @transform_0(%arg0: i32) -> (i32, i32) {
    %c0_i32 = arith.constant 0 : i32
    %c0_i32_0 = arith.constant 0 : i32
    %c0_i32_1 = arith.constant 0 : i32
    return %c0_i32, %c0_i32_0 : i32, i32
  }
  func.func @transform_1(%arg0: i32) -> (i32, i32) {
    %c0_i32 = arith.constant 0 : i32
    %c0_i32_0 = arith.constant 0 : i32
    %c0_i32_1 = arith.constant 0 : i32
    return %c0_i32, %c0_i32_0 : i32, i32
  }
  func.func @transform_2(%arg0: i32) -> (i32, i32) {
    %c0_i32 = arith.constant 0 : i32
    %c0_i32_0 = arith.constant 0 : i32
    %c0_i32_1 = arith.constant 0 : i32
    return %c0_i32, %c0_i32_0 : i32, i32
  }
  func.func @transform_3(%arg0: i32) -> (i32, i32) {
    %c0_i32 = arith.constant 0 : i32
    %c0_i32_0 = arith.constant 0 : i32
    %c0_i32_1 = arith.constant 0 : i32
    return %c0_i32, %c0_i32_0 : i32, i32
  }
  func.func @transform_4(%arg0: i32) -> (i32, i32) {
    %c0_i32 = arith.constant 0 : i32
    %c0_i32_0 = arith.constant 0 : i32
    %c0_i32_1 = arith.constant 0 : i32
    return %c0_i32, %c0_i32_0 : i32, i32
  }
  func.func @transform_5(%arg0: i32) -> (i32, i32) {
    %c0_i32 = arith.constant 0 : i32
    %c0_i32_0 = arith.constant 0 : i32
    %c0_i32_1 = arith.constant 0 : i32
    return %c0_i32, %c0_i32_0 : i32, i32
  }
  func.func @transform_6(%arg0: i32) -> (i32, i32) {
    %c0_i32 = arith.constant 0 : i32
    %c0_i32_0 = arith.constant 0 : i32
    %c0_i32_1 = arith.constant 0 : i32
    return %c0_i32, %c0_i32_0 : i32, i32
  }
  func.func @transform_7(%arg0: i32) -> (i32, i32) {
    %c0_i32 = arith.constant 0 : i32
    %c0_i32_0 = arith.constant 0 : i32
    %c0_i32_1 = arith.constant 0 : i32
    return %c0_i32, %c0_i32_0 : i32, i32
  }
  func.func @transform_8(%arg0: i32) -> (i32, i32) {
    %c0_i32 = arith.constant 0 : i32
    %c0_i32_0 = arith.constant 0 : i32
    %c0_i32_1 = arith.constant 0 : i32
    return %c0_i32, %c0_i32_0 : i32, i32
  }
  func.func @transform_9(%arg0: i32) -> (i32, i32, i32) {
    %c0_i32 = arith.constant 0 : i32
    %c0_i32_0 = arith.constant 0 : i32
    %c0_i32_1 = arith.constant 0 : i32
    %c0_i32_2 = arith.constant 0 : i32
    return %c0_i32, %c0_i32_0, %c0_i32_1 : i32, i32, i32
  }
  func.func @transform_10(%arg0: i32) -> (i32, i32, i32) {
    %c0_i32 = arith.constant 0 : i32
    %c0_i32_0 = arith.constant 0 : i32
    %c0_i32_1 = arith.constant 0 : i32
    %c0_i32_2 = arith.constant 0 : i32
    return %c0_i32, %c0_i32_0, %c0_i32_1 : i32, i32, i32
  }
  func.func @transform_11(%arg0: i32) -> (i32, i32, i32) {
    %c0_i32 = arith.constant 0 : i32
    %c0_i32_0 = arith.constant 0 : i32
    %c0_i32_1 = arith.constant 0 : i32
    %c0_i32_2 = arith.constant 0 : i32
    return %c0_i32, %c0_i32_0, %c0_i32_1 : i32, i32, i32
  }
  func.func @transform_12(%arg0: i32) -> (i32, i32, i32) {
    %c0_i32 = arith.constant 0 : i32
    %c0_i32_0 = arith.constant 0 : i32
    %c0_i32_1 = arith.constant 0 : i32
    %c0_i32_2 = arith.constant 0 : i32
    return %c0_i32, %c0_i32_0, %c0_i32_1 : i32, i32, i32
  }
  func.func @transform_13(%arg0: i32) -> (i32, i32, i32) {
    %c0_i32 = arith.constant 0 : i32
    %c0_i32_0 = arith.constant 0 : i32
    %c0_i32_1 = arith.constant 0 : i32
    %c0_i32_2 = arith.constant 0 : i32
    return %c0_i32, %c0_i32_0, %c0_i32_1 : i32, i32, i32
  }
  func.func @transform_14(%arg0: i32) -> (i32, i32, i32) {
    %c0_i32 = arith.constant 0 : i32
    %c0_i32_0 = arith.constant 0 : i32
    %c0_i32_1 = arith.constant 0 : i32
    %c0_i32_2 = arith.constant 0 : i32
    return %c0_i32, %c0_i32_0, %c0_i32_1 : i32, i32, i32
  }
  func.func @transform_15(%arg0: i32) -> (i32, i32, i32) {
    %c0_i32 = arith.constant 0 : i32
    %c0_i32_0 = arith.constant 0 : i32
    %c0_i32_1 = arith.constant 0 : i32
    %c0_i32_2 = arith.constant 0 : i32
    return %c0_i32, %c0_i32_0, %c0_i32_1 : i32, i32, i32
  }
  func.func @transform_16(%arg0: i32) -> (i32, i32, i32) {
    %c0_i32 = arith.constant 0 : i32
    %c0_i32_0 = arith.constant 0 : i32
    %c0_i32_1 = arith.constant 0 : i32
    %c0_i32_2 = arith.constant 0 : i32
    return %c0_i32, %c0_i32_0, %c0_i32_1 : i32, i32, i32
  }
  func.func @transform_17(%arg0: i32) -> (i32, i32, i32) {
    %c0_i32 = arith.constant 0 : i32
    %c0_i32_0 = arith.constant 0 : i32
    %c0_i32_1 = arith.constant 0 : i32
    %c0_i32_2 = arith.constant 0 : i32
    return %c0_i32, %c0_i32_0, %c0_i32_1 : i32, i32, i32
  }
  func.func @transform_18(%arg0: i32) -> (i32, i32, i32) {
    %c0_i32 = arith.constant 0 : i32
    %c0_i32_0 = arith.constant 0 : i32
    %c0_i32_1 = arith.constant 0 : i32
    %c0_i32_2 = arith.constant 0 : i32
    return %c0_i32, %c0_i32_0, %c0_i32_1 : i32, i32, i32
  }
  func.func @transform_19(%arg0: i32) -> (i32, i32, i32) {
    %c0_i32 = arith.constant 0 : i32
    %c0_i32_0 = arith.constant 0 : i32
    %c0_i32_1 = arith.constant 0 : i32
    %c0_i32_2 = arith.constant 0 : i32
    return %c0_i32, %c0_i32_0, %c0_i32_1 : i32, i32, i32
  }
  func.func @transform_20(%arg0: i32) -> (i32, i32, i32) {
    %c0_i32 = arith.constant 0 : i32
    %c0_i32_0 = arith.constant 0 : i32
    %c0_i32_1 = arith.constant 0 : i32
    %c0_i32_2 = arith.constant 0 : i32
    return %c0_i32, %c0_i32_0, %c0_i32_1 : i32, i32, i32
  }
  func.func @transform_21(%arg0: i32) -> (i32, i32) {
    %c0_i32 = arith.constant 0 : i32
    %c0_i32_0 = arith.constant 0 : i32
    %c0_i32_1 = arith.constant 0 : i32
    return %c0_i32, %c0_i32_0 : i32, i32
  }
  func.func @transform_22(%arg0: i32) -> (i32, i32) {
    %c0_i32 = arith.constant 0 : i32
    %c0_i32_0 = arith.constant 0 : i32
    %c0_i32_1 = arith.constant 0 : i32
    return %c0_i32, %c0_i32_0 : i32, i32
  }
  func.func @transform_23(%arg0: i32) -> (i32, i32) {
    %c0_i32 = arith.constant 0 : i32
    %c0_i32_0 = arith.constant 0 : i32
    %c0_i32_1 = arith.constant 0 : i32
    return %c0_i32, %c0_i32_0 : i32, i32
  }
  func.func @transform_24(%arg0: i32) -> (i32, i32) {
    %c0_i32 = arith.constant 0 : i32
    %c0_i32_0 = arith.constant 0 : i32
    %c0_i32_1 = arith.constant 0 : i32
    return %c0_i32, %c0_i32_0 : i32, i32
  }
  func.func @transform_25(%arg0: i32) -> (i32, i32) {
    %c0_i32 = arith.constant 0 : i32
    %c0_i32_0 = arith.constant 0 : i32
    %c0_i32_1 = arith.constant 0 : i32
    return %c0_i32, %c0_i32_0 : i32, i32
  }
  func.func @transform_26(%arg0: i32) -> (i32, i32) {
    %c0_i32 = arith.constant 0 : i32
    %c0_i32_0 = arith.constant 0 : i32
    %c0_i32_1 = arith.constant 0 : i32
    return %c0_i32, %c0_i32_0 : i32, i32
  }
}

</mosaic_0001>

<bundles_post_ra>
// kernel: electra_forward.2
= control target key start
LH: loop header
LB: loop body
LE: loop exit
PB: predicated region body
PF: predicated region fallthrough
CT: control target
= control target key end

     0   :  { %s3005_s0 = inlined_call_operand.vmem [shape: s32[16,1], index: 0, kind: input, shape index: {}]   ;;  %s3006_s1 = inlined_call_operand.vmem [shape: s32[16,1], index: 1, kind: input, shape index: {}]   ;;  %s3007_s2 = inlined_call_operand.vmem [shape: f32[2,8], index: 2, kind: input, shape index: {}]   ;;  %s3008_s3 = inlined_call_operand.vmem [shape: f32[128,32], index: 3, kind: input, shape index: {}]   ;;  %s3009_s4 = inlined_call_operand.vmem [shape: f32[8,32], index: 4, kind: input, shape index: {}]   ;;  %s3010_s5 = inlined_call_operand.vmem [shape: f32[1,32], index: 5, kind: input, shape index: {}]   ;;  %s3011_s6 = inlined_call_operand.vmem [shape: f32[1,32], index: 6, kind: input, shape index: {}]   ;;  %s3012_s7 = inlined_call_operand.vmem [shape: f32[1,32], index: 7, kind: input, shape index: {}]   ;;  %s3013_s8 = inlined_call_operand.vmem [shape: f32[1,32,96], index: 8, kind: input, shape index: {}]   ;;  %s3014_s9 = inlined_call_operand.vmem [shape: f32[1,1,96], index: 9, kind: input, shape index: {}]   ;;  %s3015_s10 = inlined_call_operand.vmem [shape: f32[1,32,32], index: 10, kind: input, shape index: {}]   ;;  %s3016_s11 = inlined_call_operand.vmem [shape: f32[1,1,32], index: 11, kind: input, shape index: {}]   ;;  %s3017_s12 = inlined_call_operand.vmem [shape: f32[1,1,32], index: 12, kind: input, shape index: {}]   ;;  %s3018_s13 = inlined_call_operand.vmem [shape: f32[1,1,32], index: 13, kind: input, shape index: {}]   ;;  %s3019_s14 = inlined_call_operand.vmem [shape: f32[1,32,64], index: 14, kind: input, shape index: {}]   ;;  %s3020_s15 = inlined_call_operand.vmem [shape: f32[1,1,64], index: 15, kind: input, shape index: {}]   ;;  %s3021_s16 = inlined_call_operand.vmem [shape: f32[1,64,32], index: 16, kind: input, shape index: {}]   ;;  %s3022_s17 = inlined_call_operand.vmem [shape: f32[1,1,32], index: 17, kind: input, shape index: {}]   ;;  %s3023_s18 = inlined_call_operand.vmem [shape: f32[1,1,32], index: 18, kind: input, shape index: {}]   ;;  %s3024_s19 = inlined_call_operand.vmem [shape: f32[1,1,32], index: 19, kind: input, shape index: {}]   ;;  %s3025_s20 = inlined_call_operand.vmem [shape: f32[32,32], index: 20, kind: input, shape index: {}]   ;;  %s3026_s21 = inlined_call_operand.vmem [shape: f32[1,32], index: 21, kind: input, shape index: {}]   ;;  %s3027_s22 = inlined_call_operand.vmem [shape: f32[1,32], index: 22, kind: input, shape index: {}]   ;;  %s3028_s23 = inlined_call_operand.vmem [shape: f32[1,32], index: 23, kind: input, shape index: {}]   ;;  %s3029_s24 = inlined_call_operand.vmem [shape: f32[1,128], index: 24, kind: input, shape index: {}]   ;;  %s3030_s25 = inlined_call_operand.vmem [shape: f32[16,128], index: 25, kind: output, shape index: {0}]   ;;  %s3031_s26 = inlined_call_operand.hbm [shape: f32[1,1], index: 26, kind: output, shape index: {1}]  }
   0x1   :  { %3037 = sst [smem:[#allocation5_spill]] %s3005_s0 }
   0x2   :  { %3038 = sst [smem:[#allocation6_spill]] %s3006_s1 }
   0x3   :  { %3039 = sst [smem:[#allocation7_spill]] %s3007_s2 }
   0x4   :  { %3040 = sst [smem:[#allocation8_spill]] %s3008_s3 }
   0x5   :  { %3041 = sst [smem:[#allocation9_spill]] %s3009_s4 }
   0x6   :  { %3042 = sst [smem:[#allocation10_spill]] %s3010_s5 }
   0x7   :  { %3043 = sst [smem:[#allocation11_spill]] %s3011_s6 }
   0x8   :  { %3044 = sst [smem:[#allocation12_spill]] %s3012_s7 }
   0x9   :  { %3045 = sst [smem:[#allocation13_spill]] %s3013_s8 }
   0xa   :  { %3046 = sst [smem:[#allocation14_spill]] %s3014_s9 }
   0xb   :  { %3047 = sst [smem:[#allocation15_spill]] %s3015_s10 }
   0xc   :  { %3048 = sst [smem:[#allocation16_spill]] %s3026_s21 }
   0xd   :  { %s3049_s7 = sld [smem:[#allocation5_spill]]  ;;  %s3050_s21 = sld [smem:[#allocation8_spill]]  ;;  %v2454_v2 = vmov 0  }
   0xe   :  { %2378 = vset.pattern.permute.xlu0 %v2454_v2  ;;  %2379 = vset.pattern.permute.xlu1 %v2454_v2 }
  0x13   :  { %v99_v0 = vld [vmem:[%s3049_s7] sm:$0xff]  ;;  %v84_v3 = vld [vmem:[%s3050_s21 + $0x8] sm:$0xff]  ;;  %v85_v4 = vld [vmem:[%s3050_s21 + $0x10] sm:$0xff] }
  0x14   :  { %v83_v1 = vld [vmem:[%s3050_s21] sm:$0xff]  ;;  %v86_v5 = vld [vmem:[%s3050_s21 + $0x18] sm:$0xff]  ;;  %108 = vperm.xlu0 %2378, %v99_v0   ;;  %v100_v8 = vld [vmem:[%s3049_s7 + $0x8] sm:$0xff] }
  0x15   :  { %v2615_v6 = vpack.c.bf16 %v84_v3, %v83_v1  ;;  %v2617_v7 = vpack.c.bf16 %v86_v5, %v85_v4  ;;  %v87_v9 = vld [vmem:[%s3050_s21 + $0x20] sm:$0xff]  ;;  %v88_v10 = vld [vmem:[%s3050_s21 + $0x28] sm:$0xff] }
  0x16   :  { %v2631_v11 = vpack.c.bf16 %v88_v10, %v87_v9 }
  0x17   :  { %2234 = vmatprep.subr.bf16.mxu0 %v2615_v6 }
  0x18   :  { %2236 = vmatpush3.bf16.msra.mxu0 %v2615_v6  ;;  %111 = vperm.xlu0 %2378, %v100_v8  }
  0x19   :  { %2238 = vmatprep.subr.bf16.mxu0 %v2617_v7 }
  0x1a   :  { %32 = vsyncpa [#allocation3], 0  ;;  %v89_v12 = vld [vmem:[%s3050_s21 + $0x30] sm:$0xff]  ;;  %v90_v13 = vld [vmem:[%s3050_s21 + $0x38] sm:$0xff]  ;;  %v105_v27 = vlaneseq  ;;  %v2455_v30 = vmov 1.0   ;;  %s3051_s9 = sld [smem:[#allocation9_spill]] }
  0x1b   :  { %v2641_v14 = vpack.c.bf16 %v90_v13, %v89_v12  ;;  %v91_v15 = vld [vmem:[%s3050_s21 + $0x40] sm:$0xff]  ;;  %v92_v16 = vld [vmem:[%s3050_s21 + $0x48] sm:$0xff]  ;;  %v93_v18 = vld [vmem:[%s3050_s21 + $0x50] sm:$0xff]  ;;  %s3052_s5 = sld [smem:[#allocation10_spill]]  ;;  %vm202_vm2 = vcmask 261120   ;;  %s3053_s1 = sld [smem:[#allocation13_spill]] }
  0x1c   :  { %2240 = vmatpush3.bf16.msra.mxu0 %v2617_v7  ;;  %v2651_v17 = vpack.c.bf16 %v92_v16, %v91_v15  ;;  %v94_v19 = vld [vmem:[%s3050_s21 + $0x58] sm:$0xff]  ;;  %v95_v21 = vld [vmem:[%s3050_s21 + $0x60] sm:$0xff]  ;;  %v96_v22 = vld [vmem:[%s3050_s21 + $0x68] sm:$0xff]  ;;  %v2687_v28 = vand.u32 127, %v105_v27  ;;  %s3054_s0 = sld [smem:[#allocation11_spill]]  ;;  %s3055_s2 = sld [smem:[#allocation12_spill]] }
  0x1d   :  { %2242 = vmatprep.subr.bf16.mxu0 %v2631_v11  ;;  %v2661_v20 = vpack.c.bf16 %v94_v19, %v93_v18  ;;  %v2671_v23 = vpack.c.bf16 %v96_v22, %v95_v21  ;;  %v97_v24 = vld [vmem:[%s3050_s21 + $0x70] sm:$0xff]  ;;  %v98_v25 = vld [vmem:[%s3050_s21 + $0x78] sm:$0xff]  ;;  %v2456_v13 = vmov 0.0   ;;  %vm2457_vm3 = vmmov 0   ;;  %s3056_s6 = sld [smem:[#allocation14_spill]]  ;;  %s3057_s28 = sld [smem:[#allocation7_spill]]  ;;  %vm2906_vm7 = vmpackc.low %vm202_vm2, %vm202_vm2 }
  0x1e   :  { %v2681_v26 = vpack.c.bf16 %v98_v25, %v97_v24  ;;  %2108 = vmatprep.subr.mxu1 %v2456_v13  ;;  %2110 = vmatprep.mubr.msk.f32.mxu1 %vm2457_vm3, %v2456_v13  ;;  %vm402_vm4 = vcmask 130048   ;;  %vm556_vm5 = vcmask 64512   ;;  %s2460_s7 = smov 64   ;;  %s2461_s8 = smov 80   ;;  %vm1386_vm6 = vcmask 523264  }
  0x1f   :  { %s2462_s4 = smov 112   ;;  %s2463_s29 = smov 48   ;;  %vm1854_vm12 = vcmask 7168   ;;  %vm1884_vm13 = vcmask 0  }
  0x20   :  { %2244 = vmatpush3.bf16.msra.mxu0 %v2631_v11  ;;  %v101_v32 = vld [vmem:[%s3051_s9] sm:$0xff]  ;;  %s3058_s9 = sld [smem:[#allocation15_spill]] }
  0x21   :  { %2246 = vmatprep.subr.bf16.mxu0 %v2641_v14  ;;  %v1908_v35 = vld [vmem:[%s3052_s5] ss:$0 sm:$0xff]  ;;  %v250_v53 = vld [vmem:[%s3053_s1 + $0x8] sm:$0xff]  ;;  %v251_v55 = vld [vmem:[%s3053_s1 + $0x10] sm:$0xff] }
  0x22   :  { %v249_v52 = vld [vmem:[%s3053_s1] sm:$0xff]  ;;  %v252_v56 = vld [vmem:[%s3053_s1 + $0x18] sm:$0xff]  ;;  %s2458_s1 = smov 96  }
  0x23   :  { %v2265_v54 = vpack.c.bf16 %v250_v53, %v249_v52  ;;  %v2269_v57 = vpack.c.bf16 %v252_v56, %v251_v55  ;;  %v1909_v1 = vld [vmem:[%s3054_s0] ss:$0 sm:$0xff] }
  0x24   :  { %2248 = vmatpush3.bf16.msra.mxu0 %v2641_v14  ;;  %v1910_v3 = vld [vmem:[%s3055_s2] ss:$0 sm:$0xff]  ;;  %s2464_s2 = smov [#allocation2]  }
  0x25   :  { %2250 = vmatprep.subr.bf16.mxu0 %v2651_v17  ;;  %v1911_v15 = vld [vmem:[%s3056_s6] ss:$0 sm:$0xff]  ;;  %s1894_s5 = sshll.u32 %s2464_s2, 4  ;;  %s1895_s5 = int_to_ptr.vmem [resolvable:$true] %s1894_s5 }
  0x26   :  { %s2430_s10 = scalar_lea.vmem %s1895_s5, 16  ;;  %p2435_p1 = scmp.lt.s32.totalorder %s1895_s5, %s1895_s5 }
  0x27   :  { %p2431_p0 = scmp.ne.s32.totalorder %s1895_s5, %s2430_s10 }
  0x28   :  { %2252 = vmatpush3.bf16.msra.mxu0 %v2651_v17 }
  0x29   :  { %2254 = vmatprep.subr.bf16.mxu0 %v2661_v20 }
  0x2c   :  { %2256 = vmatpush3.bf16.msra.mxu0 %v2661_v20 }
  0x2d   :  { %2258 = vmatprep.subr.bf16.mxu0 %v2671_v23 }
  0x30   :  { %2260 = vmatpush3.bf16.msra.mxu0 %v2671_v23 }
  0x31   :  { %2262 = vmatprep.subr.bf16.mxu0 %v2681_v26 }
  0x34   :  { %2264 = vmatpush3.bf16.msra.mxu0 %v2681_v26 }
  0x35   :  { %2266 = vmatprep.subr.bf16.mxu0 %v2265_v54 }
  0x93   :  { %v109_v29 = vpop.permute.xlu0 %108 }
  0x94   :  { %vm113_vm0 = vcmp.eq.s32.totalorder %v2687_v28, %v109_v29 }
  0x95   :  { %2089 = vmatprep.mubr.msk.f32.mxu0 %vm113_vm0, %v2455_v30 }
  0x97   :  { %v112_v31 = vpop.permute.xlu0 %111 }
  0x98   :  { %vm114_vm1 = vcmp.eq.s32.totalorder %v2687_v28, %v112_v31 }
  0x99   :  { %2090 = vmatmul.mubr.msk.f32.vlgmr.msra.gmra.mrb[0].mxu0 %vm114_vm1, %v2455_v30  ;;  %v2459_v30 = vmov 1966171168  }
  0x9a   :  { %2268 = vmatpush3.bf16.msra.mxu0 %v2265_v54  ;;  %v368_v31 = vunpack.c.l.s4 %v2459_v30 }
  0x9b   :  { %2270 = vmatprep.subr.bf16.mxu0 %v2269_v57 }
  0x9e   :  { %2272 = vmatpush3.bf16.msra.mxu0 %v2269_v57 }
  0x9f   :  { %2103 = vmatprep.subr.mxu0 %v2456_v13 }
 0x16c   :  { %v2091_v33 = vpop.f32.mrb[0].mxu0 }
 0x16d   :  { %v185_v34 = vpop.f32.mrb[1].mxu0  ;;  %v191_v36 = vadd.f32 %v2091_v33, %v101_v32 }
 0x16e   :  { %v186_v37 = vadd.f32 %v185_v34, %v101_v32  ;;  %v246_v32 = vld [vmem:[%s3057_s28] sm:$0x3]  ;;  %v369_v34 = vunpack.c.0.s8 %v368_v31 }
 0x16f   :  { %v201_v40 = vadd.f32 %v1908_v35, %v191_v36  ;;  %v247_v33 = vsub.f32 1.0, %v246_v32 }
 0x170   :  { %v200_v38 = vadd.f32 %v1908_v35, %v186_v37  ;;  %v371_v35 = vshrl.u32 %v105_v27, 7 }
 0x171   :  { %v206_v41 = vsel %vm202_vm2, %v201_v40, 0.0  ;;  %v248_v36 = vmul.f32 -1e+09, %v247_v33 }
 0x172   :  { %v203_v39 = vsel %vm202_vm2, %v200_v38, 0.0  ;;  %v372_v37 = vsub.s32 %v369_v34, %v371_v35 }
 0x173   :  { %204 = vadd.xlane.f32.xlu1 %v203_v39 }
 0x177   :  { %207 = vadd.xlane.f32.xlu1 %v206_v41 }
 0x200   :  { %v205_v42 = vpop.xlane.xlu1 %204 }
 0x201   :  { %v210_v43 = vmul.f32 0.03125, %v205_v42 }
 0x203   :  { %v212_v44 = vsub.f32 %v200_v38, %v210_v43  ;;  %v373_v38 = vrot.slane %v248_v36, %v372_v37 }
 0x204   :  { %v208_v45 = vpop.xlane.xlu1 %207 }
 0x205   :  { %v211_v46 = vmul.f32 0.03125, %v208_v45  ;;  %v214_v47 = vmul.f32 %v212_v44, %v212_v44  ;;  %v381_v39 = vrot.slane %v373_v38, %v372_v37  ;;  %v374_v41 = vcombine.high %v373_v38, %v373_v38 }
 0x207   :  { %v213_v48 = vsub.f32 %v201_v40, %v211_v46  ;;  %v216_v49 = vsel %vm202_vm2, %v214_v47, 0.0  ;;  %v391_v40 = vsub.s32 0, %v371_v35  ;;  %v388_v43 = vrot.slane %v374_v41, %v372_v37 }
 0x208   :  { %217 = vadd.xlane.f32.xlu0 %v216_v49 }
 0x209   :  { %v215_v50 = vmul.f32 %v213_v48, %v213_v48  ;;  %v2758_v42 = vrot.slane %v381_v39, %v391_v40  ;;  %v2761_v47 = vrot.slane %v388_v43, %v391_v40 }
 0x20b   :  { %v219_v51 = vsel %vm202_vm2, %v215_v50, 0.0 }
 0x20c   :  { %220 = vadd.xlane.f32.xlu1 %v219_v51 }
 0x295   :  { %v218_v58 = vpop.xlane.xlu0 %217 }
 0x296   :  { %v222_v59 = vmul.f32 0.03125, %v218_v58 }
 0x298   :  { %v224_v60 = vadd.f32 1e-12, %v222_v59 }
 0x299   :  { %v221_v61 = vpop.xlane.xlu1 %220 }
 0x29a   :  { %2380 = vrsqrt.f32 %v224_v60  ;;  %v223_v62 = vmul.f32 0.03125, %v221_v61 }
 0x29c   :  { %v225_v63 = vadd.f32 1e-12, %v223_v62 }
 0x29e   :  { %2382 = vrsqrt.f32 %v225_v63 }
 0x2a4   :  { %v2381_v0 = vpop.eup %2380 }
 0x2a5   :  { %v228_v2 = vmul.f32 %v2381_v0, %v212_v44 }
 0x2a7   :  { %v236_v4 = vmul.f32 %v1909_v1, %v228_v2 }
 0x2a8   :  { %v2383_v5 = vpop.eup %2382 }
 0x2a9   :  { %v229_v8 = vmul.f32 %v2383_v5, %v213_v48  ;;  %v2719_v9 = vadd.f32 %v1910_v3, %v236_v4 }
 0x2ab   :  { %v237_v10 = vmul.f32 %v1909_v1, %v229_v8  ;;  %2100 = vmatprep.mubr.msk.f32.mxu0 %vm202_vm2, %v2719_v9 }
 0x2ad   :  { %v2723_v12 = vadd.f32 %v1910_v3, %v237_v10 }
 0x2af   :  { %2101 = vmatmul.mubr.msk.f32.vlgmr.msra.gmra.mrb[2].mxu0 %vm202_vm2, %v2723_v12 }
 0x2b0   :  { %2105 = vmatprep.mubr.msk.f32.mxu0 %vm2457_vm3, %v2456_v13 }
 0x382   :  { %v2102_v16 = vpop.f32.mrb[2].mxu0 }
 0x383   :  { %v355_v18 = vpop.f32.mrb[3].mxu0  ;;  %v2739_v21 = vadd.f32 %v2102_v16, %v1911_v15 }
 0x384   :  { %v2736_v19 = vadd.f32 %v1911_v15, %v355_v18 }
 0x385   :  { %v365_v29 = vmul.f32 0.25, %v2739_v21 }
 0x386   :  { %400 = vrot.lane.b32.xlu1 %v2736_v19, %s2458_s1  ;;  %v364_v24 = vmul.f32 0.25, %v2736_v19 }
 0x38a   :  { %479 = vrot.lane.b32.xlu1 %v2739_v21, %s2458_s1 }
 0x3f8   :  { %v401_v22 = vpop.permute.xlu1 %400 }
 0x3f9   :  { %2104 = vmatpush3.xpose.msk.msra.mxu0 %vm402_vm4, %v401_v22 }
 0x3fa   :  { %2133 = vmatprep.subr.mxu0 %v2456_v13 }
 0x3fc   :  { %v480_v25 = vpop.permute.xlu1 %479  ;;  %2106 = vmatmul.mubr.msk.f32.vlgmr.msra.gmra.mrb[4].mxu0 %vm402_vm4, %v364_v24 }
 0x3fd   :  { %2109 = vmatpush3.xpose.msk.msra.mxu1 %vm402_vm4, %v480_v25  ;;  %2135 = vmatprep.mubr.msk.f32.mxu0 %vm2457_vm3, %v2456_v13 }
 0x3fe   :  { %2113 = vmatprep.subr.mxu1 %v2456_v13 }
 0x400   :  { %2111 = vmatmul.mubr.msk.f32.vlgmr.msra.gmra.mrb[0].mxu1 %vm402_vm4, %v365_v29 }
 0x401   :  { %2115 = vmatprep.mubr.msk.f32.mxu1 %vm2457_vm3, %v2456_v13 }
 0x4cf   :  { %v474_v44 = vpop.f32.mrb[4].mxu0 }
 0x4d0   :  { %v475_v45 = vadd.f32 %v474_v44, %v2758_v42  ;;  %v2107_v46 = vpop.f32.mrb[5].mxu0 }
 0x4d2   :  { %v557_v48 = vsel %vm556_vm5, %v475_v45, -inf }
 0x4d3   :  { %v552_v49 = vpop.f32.mrb[0].mxu1  ;;  %558 = vmax.xlane.f32.xlu1 %v557_v48 }
 0x4d4   :  { %v553_v27 = vadd.f32 %v552_v49, %v2761_v47  ;;  %v2112_v50 = vpop.f32.mrb[1].mxu1 }
 0x4d6   :  { %v560_v51 = vsel %vm556_vm5, %v553_v27, -inf }
 0x4d7   :  { %561 = vmax.xlane.f32.xlu0 %v560_v51 }
 0x4e4   :  { %655 = vrot.lane.b32.xlu1 %v2739_v21, %s2460_s7 }
 0x4ed   :  { %579 = vrot.lane.b32.xlu0 %v2736_v19, %s2460_s7  ;;  %s3059_s7 = sld [smem:[#allocation16_spill]] }
 0x560   :  { %v559_v52 = vpop.xlane.xlu1 %558 }
 0x561   :  { %v563_v53 = vsub.f32 %v475_v45, %v559_v52 }
 0x563   :  { %v565_v56 = vmul.f32 1.442695, %v563_v53 }
 0x564   :  { %v562_v54 = vpop.xlane.xlu0 %561  ;;  %v656_v5 = vpop.permute.xlu1 %655 }
 0x565   :  { %v564_v55 = vsub.f32 %v553_v27, %v562_v54 }
 0x567   :  { %v567_v57 = vmul.f32 1.442695, %v564_v55  ;;  %v254_v55 = vld [vmem:[%s3058_s9] sm:$0xff] }
 0x568   :  { %v580_v58 = vpop.permute.xlu0 %579 }
 0x569   :  { %2384 = vpow2.f32 %v567_v57  ;;  %2114 = vmatpush3.msra.mxu1 %v580_v58 }
 0x56a   :  { %2118 = vmatprep.subr.mxu1 %v2456_v13  ;;  %2386 = vpow2.f32 %v565_v56  ;;  %v255_v56 = vld [vmem:[%s3058_s9 + $0x8] sm:$0xff] }
 0x56b   :  { %v2277_v57 = vpack.c.bf16 %v255_v56, %v254_v55  ;;  %v271_v56 = vld [vmem:[%s3021_s16 + $0x28] sm:$0xff] }
 0x573   :  { %v2385_v59 = vpop.eup %2384 }
 0x574   :  { %v572_v60 = vsel %vm556_vm5, %v2385_v59, 0.0  ;;  %v2387_v61 = vpop.eup %2386 }
 0x575   :  { %573 = vadd.xlane.f32.xlu0 %v572_v60  ;;  %v569_v62 = vsel %vm556_vm5, %v2387_v61, 0.0 }
 0x579   :  { %570 = vadd.xlane.f32.xlu0 %v569_v62  ;;  %v1930_v62 = vld [vmem:[%s3016_s11] ss:$0 sm:$0xff] }
 0x58f   :  { %733 = vrot.lane.b32.xlu0 %v2736_v19, %s2461_s8 }
 0x593   :  { %731 = vrot.lane.b32.xlu0 %v364_v24, %s2462_s4 }
 0x597   :  { %811 = vrot.lane.b32.xlu0 %v2739_v21, %s2461_s8 }
 0x59b   :  { %809 = vrot.lane.b32.xlu0 %v365_v29, %s2462_s4 }
 0x602   :  { %v574_v63 = vpop.xlane.xlu0 %573 }
 0x606   :  { %v571_v0 = vpop.xlane.xlu0 %570 }
 0x607   :  { %2388 = vrcp.f32 %v571_v0 }
 0x608   :  { %2390 = vrcp.f32 %v574_v63 }
 0x60a   :  { %v734_v1 = vpop.permute.xlu0 %733 }
 0x60e   :  { %v732_v10 = vpop.permute.xlu0 %731 }
 0x611   :  { %v2389_v2 = vpop.eup %2388 }
 0x612   :  { %v577_v3 = vmul.f32 %v2389_v2, %v2387_v61  ;;  %v2391_v4 = vpop.eup %2390  ;;  %v812_v15 = vpop.permute.xlu0 %811 }
 0x613   :  { %v578_v8 = vmul.f32 %v2391_v4, %v2385_v59 }
 0x614   :  { %2116 = vmatmul.mubr.msk.f32.vlgmr.msra.gmra.mrb[2].mxu1 %vm556_vm5, %v577_v3 }
 0x615   :  { %2119 = vmatpush3.msra.mxu1 %v656_v5  ;;  %2120 = vmatprep.mubr.msk.f32.mxu1 %vm2457_vm3, %v2456_v13 }
 0x616   :  { %2123 = vmatprep.subr.mxu1 %v2456_v13  ;;  %v810_v16 = vpop.permute.xlu0 %809 }
 0x618   :  { %2121 = vmatmul.mubr.msk.f32.vlgmr.msra.gmra.mrb[4].mxu1 %vm556_vm5, %v578_v8 }
 0x619   :  { %2125 = vmatprep.mubr.msk.f32.mxu1 %vm2457_vm3, %v2456_v13 }
 0x61c   :  { %2124 = vmatpush3.xpose.msk.msra.mxu1 %vm402_vm4, %v734_v1 }
 0x61d   :  { %2128 = vmatprep.subr.mxu1 %v2456_v13 }
 0x61f   :  { %2126 = vmatmul.mubr.msk.f32.vlgmr.msra.gmra.mrb[6].mxu1 %vm402_vm4, %v732_v10 }
 0x620   :  { %2129 = vmatpush3.xpose.msk.msra.mxu1 %vm402_vm4, %v812_v15  ;;  %2130 = vmatprep.mubr.msk.f32.mxu1 %vm2457_vm3, %v2456_v13 }
 0x621   :  { %2138 = vmatprep.subr.mxu1 %v2456_v13 }
 0x623   :  { %2131 = vmatmul.mubr.msk.f32.vlgmr.msra.gmra.mrb[8].mxu1 %vm402_vm4, %v810_v16 }
 0x624   :  { %2140 = vmatprep.mubr.msk.f32.mxu1 %vm2457_vm3, %v2456_v13 }
 0x6e7   :  { %v651_v18 = vpop.f32.mrb[2].mxu1 }
 0x6e8   :  { %v2117_v22 = vpop.f32.mrb[3].mxu1 }
 0x6eb   :  { %v727_v24 = vpop.f32.mrb[4].mxu1 }
 0x6ec   :  { %v2122_v25 = vpop.f32.mrb[5].mxu1 }
 0x6f2   :  { %v805_v29 = vpop.f32.mrb[6].mxu1 }
 0x6f3   :  { %v806_v30 = vadd.f32 %v805_v29, %v2758_v42  ;;  %v2127_v31 = vpop.f32.mrb[7].mxu1 }
 0x6f4   :  { %v262_v31 = vld [vmem:[%s3019_s14 + $0x8] sm:$0xff] }
 0x6f5   :  { %v887_v32 = vsel %vm556_vm5, %v806_v30, -inf }
 0x6f6   :  { %888 = vmax.xlane.f32.xlu1 %v887_v32  ;;  %v883_v33 = vpop.f32.mrb[8].mxu1 }
 0x6f7   :  { %v884_v34 = vadd.f32 %v883_v33, %v2761_v47  ;;  %v2132_v35 = vpop.f32.mrb[9].mxu1  ;;  %v263_v33 = vld [vmem:[%s3019_s14 + $0x10] sm:$0xff] }
 0x6f9   :  { %v890_v36 = vsel %vm556_vm5, %v884_v34, -inf }
 0x6fa   :  { %891 = vmax.xlane.f32.xlu0 %v890_v36 }
 0x783   :  { %v889_v37 = vpop.xlane.xlu1 %888 }
 0x784   :  { %v893_v38 = vsub.f32 %v806_v30, %v889_v37 }
 0x786   :  { %v895_v39 = vmul.f32 1.442695, %v893_v38 }
 0x787   :  { %v892_v40 = vpop.xlane.xlu0 %891 }
 0x788   :  { %2392 = vpow2.f32 %v895_v39  ;;  %v894_v41 = vsub.f32 %v884_v34, %v892_v40  ;;  %v264_v34 = vld [vmem:[%s3019_s14 + $0x18] sm:$0xff] }
 0x789   :  { %v2285_v35 = vpack.c.bf16 %v264_v34, %v263_v33  ;;  %v1936_v33 = vld [vmem:[%s3022_s17] ss:$0 sm:$0xff] }
 0x78a   :  { %v897_v43 = vmul.f32 1.442695, %v894_v41 }
 0x78c   :  { %2394 = vpow2.f32 %v897_v43 }
 0x792   :  { %v2393_v42 = vpop.eup %2392 }
 0x793   :  { %v899_v44 = vsel %vm556_vm5, %v2393_v42, 0.0 }
 0x794   :  { %900 = vadd.xlane.f32.xlu0 %v899_v44 }
 0x796   :  { %v2395_v45 = vpop.eup %2394 }
 0x797   :  { %v902_v46 = vsel %vm556_vm5, %v2395_v45, 0.0 }
 0x798   :  { %903 = vadd.xlane.f32.xlu1 %v902_v46 }
 0x7a9   :  { %985 = vrot.lane.b32.xlu1 %v2739_v21, %s2463_s29  ;;  %v257_v21 = vld [vmem:[%s3058_s9 + $0x18] sm:$0xff] }
 0x7aa   :  { %909 = vrot.lane.b32.xlu0 %v2736_v19, %s2463_s29  ;;  %v256_v19 = vld [vmem:[%s3058_s9 + $0x10] sm:$0xff] }
 0x7ab   :  { %v2273_v54 = vpack.c.bf16 %v257_v21, %v256_v19  ;;  %v268_v19 = vld [vmem:[%s3021_s16 + $0x10] sm:$0xff]  ;;  %v269_v21 = vld [vmem:[%s3021_s16 + $0x18] sm:$0xff] }
 0x7ac   :  { %v2293_v55 = vpack.c.bf16 %v269_v21, %v268_v19  ;;  %v1514_v19 = vld [vmem:[%s3025_s20 + $0x10] sm:$0xff]  ;;  %v1515_v21 = vld [vmem:[%s3025_s20 + $0x18] sm:$0xff] }
 0x821   :  { %v901_v47 = vpop.xlane.xlu0 %900 }
 0x822   :  { %2396 = vrcp.f32 %v901_v47  ;;  %v1932_v47 = vld [vmem:[%s3018_s13] ss:$0 sm:$0xff] }
 0x825   :  { %v904_v48 = vpop.xlane.xlu1 %903  ;;  %v910_v49 = vpop.permute.xlu0 %909 }
 0x826   :  { %2398 = vrcp.f32 %v904_v48  ;;  %2134 = vmatpush3.msra.mxu0 %v910_v49 }
 0x827   :  { %2274 = vmatprep.subr.bf16.mxu0 %v2273_v54 }
 0x829   :  { %v986_v27 = vpop.permute.xlu1 %985 }
 0x82a   :  { %2139 = vmatpush3.msra.mxu1 %v986_v27 }
 0x82b   :  { %2315 = vmatprep.subr.msk.bf16.mxu1 %vm2906_vm7, %v2615_v6 }
 0x82c   :  { %v2397_v50 = vpop.eup %2396 }
 0x82d   :  { %v907_v51 = vmul.f32 %v2397_v50, %v2393_v42  ;;  %v1931_v42 = vld [vmem:[%s3017_s12] ss:$0 sm:$0xff]  ;;  %s2434_s12 = scalar_lea.vmem %s1895_s5, 32 }
 0x82e   :  { %p2436_p2 = scmp.lt.s32.totalorder %s2434_s12, %s2430_s10 }
 0x82f   :  { %2136 = vmatmul.mubr.msk.f32.vlgmr.msra.gmra.mrb[6].mxu0 %vm556_vm5, %v907_v51  ;;  %v266_v51 = vld [vmem:[%s3021_s16] sm:$0xff] }
 0x830   :  { %v2399_v52 = vpop.eup %2398  ;;  %2276 = vmatpush3.bf16.msra.mxu0 %v2273_v54  ;;  %v270_v54 = vld [vmem:[%s3021_s16 + $0x20] sm:$0xff]  ;;  %p2437_p3 = por %p2436_p2, %p2435_p1 }
 0x831   :  { %v908_v53 = vmul.f32 %v2399_v52, %v2395_v45  ;;  %2278 = vmatprep.subr.bf16.mxu0 %v2277_v57  ;;  %v267_v52 = vld [vmem:[%s3021_s16 + $0x8] sm:$0xff] }
 0x832   :  { %p2438_p4 = pnand %p2437_p3, %p2431_p0 }
 0x833   :  { %2141 = vmatmul.mubr.msk.f32.vlgmr.msra.gmra.mrb[10].mxu1 %vm556_vm5, %v908_v53  ;;  %v2289_v53 = vpack.c.bf16 %v267_v52, %v266_v51  ;;  %v1513_v52 = vld [vmem:[%s3025_s20 + $0x8] sm:$0xff] }
 0x834   :  { %2318 = vmatpush3.bf16.xpose.msk.msra.mxu1 %vm2906_vm7, %v2615_v6 }
 0x835   :  { %2321 = vmatprep.subr.msk.bf16.mxu1 %vm2906_vm7, %v2617_v7 }
 0x83c   :  { %2324 = vmatpush3.bf16.xpose.msk.msra.mxu1 %vm2906_vm7, %v2617_v7 }
 0x83d   :  { %2327 = vmatprep.subr.msk.bf16.mxu1 %vm2906_vm7, %v2631_v11 }
 0x844   :  { %2330 = vmatpush3.bf16.xpose.msk.msra.mxu1 %vm2906_vm7, %v2631_v11 }
 0x845   :  { %2333 = vmatprep.subr.msk.bf16.mxu1 %vm2906_vm7, %v2641_v14 }
 0x84c   :  { %2336 = vmatpush3.bf16.xpose.msk.msra.mxu1 %vm2906_vm7, %v2641_v14 }
 0x84d   :  { %2339 = vmatprep.subr.msk.bf16.mxu1 %vm2906_vm7, %v2651_v17 }
 0x854   :  { %2342 = vmatpush3.bf16.xpose.msk.msra.mxu1 %vm2906_vm7, %v2651_v17 }
 0x855   :  { %2345 = vmatprep.subr.msk.bf16.mxu1 %vm2906_vm7, %v2661_v20 }
 0x85c   :  { %2348 = vmatpush3.bf16.xpose.msk.msra.mxu1 %vm2906_vm7, %v2661_v20 }
 0x85d   :  { %2351 = vmatprep.subr.msk.bf16.mxu1 %vm2906_vm7, %v2671_v23 }
 0x864   :  { %2354 = vmatpush3.bf16.xpose.msk.msra.mxu1 %vm2906_vm7, %v2671_v23 }
 0x865   :  { %2357 = vmatprep.subr.msk.bf16.mxu1 %vm2906_vm7, %v2681_v26 }
 0x86c   :  { %2360 = vmatpush3.bf16.xpose.msk.msra.mxu1 %vm2906_vm7, %v2681_v26 }
 0x902   :  { %v981_v58 = vpop.f32.mrb[6].mxu0 }
 0x903   :  { %v2137_v59 = vpop.f32.mrb[7].mxu0  ;;  %2147 = vmatprep.mubr.msk.f32.mxu0 %vm402_vm4, %v981_v58  ;;  %v272_v58 = vld [vmem:[%s3021_s16 + $0x30] sm:$0xff] }
 0x904   :  { %v273_v59 = vld [vmem:[%s3021_s16 + $0x38] sm:$0xff]  ;;  %s3062_s16 = sld [smem:[#allocation6_spill]] }
 0x906   :  { %v1057_v60 = vpop.f32.mrb[10].mxu1 }
 0x907   :  { %v2142_v61 = vpop.f32.mrb[11].mxu1  ;;  %2148 = vmatmul.mubr.msk.f32.vlgmr.msra.gmra.mrb[8].mxu0 %vm402_vm4, %v1057_v60  ;;  %v2301_v60 = vpack.c.bf16 %v273_v59, %v272_v58 }
 0x908   :  { %2280 = vmatpush3.bf16.msra.mxu0 %v2277_v57  ;;  %2154 = vmatprep.mubr.msk.f32.mxu0 %vm402_vm4, %v651_v18  ;;  %v2297_v57 = vpack.c.bf16 %v271_v56, %v270_v54  ;;  %v1933_v61 = vld [vmem:[%s3020_s15] ss:$0 sm:$0xff]  ;;  %v2309_v54 = vpack.c.bf16 %v1515_v21, %v1514_v19 }
 0x909   :  { %v1944_v19 = vld [vmem:[%s3027_s22] ss:$0 sm:$0xff] }
 0x90f   :  { %2155 = vmatmul.mubr.msk.f32.vlgmr.msra.gmra.mrb[8].mxu0 %vm402_vm4, %v727_v24 }
 0x9e2   :  { %v2156_v63 = vpop.f32.mrb[8].mxu0 }
 0x9e3   :  { %v1230_v0 = vadd.f32 %v2156_v63, %v1930_v62  ;;  %v1214_v1 = vpop.f32.mrb[9].mxu0 }
 0x9e4   :  { %v1229_v2 = vadd.f32 %v1930_v62, %v1214_v1 }
 0x9e5   :  { %v1232_v3 = vadd.f32 %v1230_v0, %v2723_v12 }
 0x9e6   :  { %v1231_v4 = vadd.f32 %v1229_v2, %v2719_v9  ;;  %v261_v9 = vld [vmem:[%s3019_s14] sm:$0xff] }
 0x9e7   :  { %v1236_v5 = vsel %vm202_vm2, %v1232_v3, 0.0  ;;  %v2281_v32 = vpack.c.bf16 %v262_v31, %v261_v9 }
 0x9e8   :  { %1237 = vadd.xlane.f32.xlu0 %v1236_v5  ;;  %v1233_v8 = vsel %vm202_vm2, %v1231_v4, 0.0 }
 0x9e9   :  { %1234 = vadd.xlane.f32.xlu1 %v1233_v8  ;;  %2282 = vmatprep.subr.bf16.mxu0 %v2281_v32 }
 0x9ea   :  { %2284 = vmatpush3.bf16.msra.mxu0 %v2281_v32 }
 0x9eb   :  { %2286 = vmatprep.subr.bf16.mxu0 %v2285_v35 }
 0x9ee   :  { %2288 = vmatpush3.bf16.msra.mxu0 %v2285_v35 }
 0x9ef   :  { %2290 = vmatprep.subr.bf16.mxu0 %v2289_v53 }
 0xa75   :  { %v1238_v10 = vpop.xlane.xlu0 %1237 }
 0xa76   :  { %v1240_v15 = vmul.f32 0.03125, %v1238_v10  ;;  %v1235_v16 = vpop.xlane.xlu1 %1234 }
 0xa77   :  { %v1239_v18 = vmul.f32 0.03125, %v1235_v16 }
 0xa78   :  { %v1242_v22 = vsub.f32 %v1232_v3, %v1240_v15 }
 0xa79   :  { %v1241_v24 = vsub.f32 %v1231_v4, %v1239_v18 }
 0xa7a   :  { %v1244_v25 = vmul.f32 %v1242_v22, %v1242_v22 }
 0xa7b   :  { %v1243_v29 = vmul.f32 %v1241_v24, %v1241_v24 }
 0xa7c   :  { %v1248_v30 = vsel %vm202_vm2, %v1244_v25, 0.0 }
 0xa7d   :  { %1249 = vadd.xlane.f32.xlu1 %v1248_v30  ;;  %v1245_v12 = vsel %vm202_vm2, %v1243_v29, 0.0 }
 0xa7e   :  { %1246 = vadd.xlane.f32.xlu0 %v1245_v12 }
 0xb0a   :  { %v1250_v36 = vpop.xlane.xlu1 %1249 }
 0xb0b   :  { %v1252_v37 = vmul.f32 0.03125, %v1250_v36  ;;  %v1247_v38 = vpop.xlane.xlu0 %1246 }
 0xb0c   :  { %v1251_v39 = vmul.f32 0.03125, %v1247_v38 }
 0xb0d   :  { %v1254_v40 = vadd.f32 1e-12, %v1252_v37 }
 0xb0e   :  { %v1253_v41 = vadd.f32 1e-12, %v1251_v39 }
 0xb0f   :  { %2400 = vrsqrt.f32 %v1254_v40 }
 0xb10   :  { %2402 = vrsqrt.f32 %v1253_v41 }
 0xb19   :  { %v2401_v43 = vpop.eup %2400 }
 0xb1a   :  { %v2403_v44 = vpop.eup %2402  ;;  %v1258_v45 = vmul.f32 %v2401_v43, %v1242_v22 }
 0xb1b   :  { %v1257_v46 = vmul.f32 %v2403_v44, %v1241_v24 }
 0xb1c   :  { %v1266_v48 = vmul.f32 %v1931_v42, %v1258_v45 }
 0xb1d   :  { %v1265_v49 = vmul.f32 %v1931_v42, %v1257_v46 }
 0xb1e   :  { %v1274_v50 = vadd.f32 %v1932_v47, %v1266_v48 }
 0xb1f   :  { %v1273_v27 = vadd.f32 %v1932_v47, %v1265_v49 }
 0xb21   :  { %2165 = vmatprep.mubr.msk.f32.mxu0 %vm202_vm2, %v1273_v27 }
 0xb22   :  { %2166 = vmatmul.mubr.msk.f32.vlgmr.msra.gmra.mrb[10].mxu0 %vm202_vm2, %v1274_v50 }
 0xb23   :  { %2292 = vmatpush3.bf16.msra.mxu0 %v2289_v53 }
 0xb24   :  { %2294 = vmatprep.subr.bf16.mxu0 %v2293_v55 }
 0xb27   :  { %2296 = vmatpush3.bf16.msra.mxu0 %v2293_v55 }
 0xb28   :  { %2298 = vmatprep.subr.bf16.mxu0 %v2297_v57 }
 0xb2b   :  { %2300 = vmatpush3.bf16.msra.mxu0 %v2297_v57 }
 0xb2c   :  { %2302 = vmatprep.subr.bf16.mxu0 %v2301_v60 }
 0xb2f   :  { %2304 = vmatpush3.bf16.msra.mxu0 %v2301_v60 }
 0xbf5   :  { %v2167_v62 = vpop.f32.mrb[10].mxu0 }
 0xbf6   :  { %v1359_v63 = vadd.f32 %v2167_v62, %v1933_v61  ;;  %v1353_v0 = vpop.f32.mrb[11].mxu0  ;;  %v1939_v62 = vld [vmem:[%s3023_s18] ss:$0 sm:$0xff] }
 0xbf7   :  { %v1354_v1 = vadd.f32 %v1933_v61, %v1353_v0 }
 0xbf8   :  { %v1365_v2 = vmul.f32 0.044715, %v1359_v63  ;;  %v1363_v9 = vmul.f32 0.5, %v1359_v63 }
 0xbf9   :  { %v1364_v3 = vmul.f32 0.044715, %v1354_v1  ;;  %v1362_v30 = vmul.f32 0.5, %v1354_v1 }
 0xbfa   :  { %v1367_v4 = vmul.f32 %v1365_v2, %v1359_v63  ;;  %v1940_v2 = vld [vmem:[%s3024_s19] ss:$0 sm:$0xff] }
 0xbfb   :  { %v1366_v5 = vmul.f32 %v1364_v3, %v1354_v1 }
 0xbfc   :  { %v1369_v8 = vmul.f32 %v1367_v4, %v1359_v63 }
 0xbfd   :  { %v1368_v10 = vmul.f32 %v1366_v5, %v1354_v1 }
 0xbfe   :  { %v1371_v15 = vadd.f32 %v1369_v8, %v1359_v63 }
 0xbff   :  { %v1370_v16 = vadd.f32 %v1368_v10, %v1354_v1  ;;  %v1941_v10 = vld [vmem:[%s3059_s7] ss:$0 sm:$0xff] }
 0xc00   :  { %v1373_v18 = vmul.f32 0.7978846, %v1371_v15 }
 0xc01   :  { %v1372_v22 = vmul.f32 0.7978846, %v1370_v16 }
 0xc02   :  { %2404 = vtanh.f32 %v1373_v18 }
 0xc03   :  { %2406 = vtanh.f32 %v1372_v22 }
 0xc0c   :  { %v2405_v24 = vpop.eup %2404 }
 0xc0d   :  { %v2407_v25 = vpop.eup %2406  ;;  %v1377_v29 = vadd.f32 1.0, %v2405_v24 }
 0xc0e   :  { %v1376_v12 = vadd.f32 1.0, %v2407_v25 }
 0xc0f   :  { %v1379_v32 = vmul.f32 %v1377_v29, %v1363_v9 }
 0xc10   :  { %v1378_v31 = vmul.f32 %v1376_v12, %v1362_v30 }
 0xc12   :  { %2184 = vmatprep.mubr.msk.f32.mxu0 %vm1386_vm6, %v1378_v31 }
 0xc13   :  { %2185 = vmatmul.mubr.msk.f32.vlgmr.msra.gmra.mrb[12].mxu0 %vm1386_vm6, %v1379_v32 }
 0xce6   :  { %v2186_v34 = vpop.f32.mrb[12].mxu0 }
 0xce7   :  { %v1465_v35 = vadd.f32 %v2186_v34, %v1936_v33  ;;  %v1459_v36 = vpop.f32.mrb[13].mxu0 }
 0xce8   :  { %v1460_v37 = vadd.f32 %v1936_v33, %v1459_v36 }
 0xce9   :  { %v1469_v38 = vadd.f32 %v1465_v35, %v1274_v50 }
 0xcea   :  { %v1468_v39 = vadd.f32 %v1460_v37, %v1273_v27  ;;  %v1512_v27 = vld [vmem:[%s3025_s20] sm:$0xff] }
 0xceb   :  { %v1473_v40 = vsel %vm202_vm2, %v1469_v38, 0.0  ;;  %v2305_v53 = vpack.c.bf16 %v1513_v52, %v1512_v27 }
 0xcec   :  { %1474 = vadd.xlane.f32.xlu1 %v1473_v40  ;;  %v1470_v41 = vsel %vm202_vm2, %v1468_v39, 0.0 }
 0xced   :  { %1471 = vadd.xlane.f32.xlu0 %v1470_v41  ;;  %2306 = vmatprep.subr.bf16.mxu0 %v2305_v53 }
 0xcee   :  { %2308 = vmatpush3.bf16.msra.mxu0 %v2305_v53 }
 0xcef   :  { %2310 = vmatprep.subr.bf16.mxu0 %v2309_v54 }
 0xcf2   :  { %2312 = vmatpush3.bf16.msra.mxu0 %v2309_v54 }
 0xd79   :  { %v1475_v43 = vpop.xlane.xlu1 %1474 }
 0xd7a   :  { %v1477_v42 = vmul.f32 0.03125, %v1475_v43  ;;  %v1472_v44 = vpop.xlane.xlu0 %1471 }
 0xd7b   :  { %v1476_v45 = vmul.f32 0.03125, %v1472_v44 }
 0xd7c   :  { %v1479_v46 = vsub.f32 %v1469_v38, %v1477_v42 }
 0xd7d   :  { %v1478_v47 = vsub.f32 %v1468_v39, %v1476_v45 }
 0xd7e   :  { %v1481_v48 = vmul.f32 %v1479_v46, %v1479_v46 }
 0xd7f   :  { %v1480_v49 = vmul.f32 %v1478_v47, %v1478_v47 }
 0xd80   :  { %v1485_v51 = vsel %vm202_vm2, %v1481_v48, 0.0 }
 0xd81   :  { %1486 = vadd.xlane.f32.xlu1 %v1485_v51  ;;  %v1482_v50 = vsel %vm202_vm2, %v1480_v49, 0.0 }
 0xd82   :  { %1483 = vadd.xlane.f32.xlu0 %v1482_v50 }
 0xe0e   :  { %v1487_v55 = vpop.xlane.xlu1 %1486 }
 0xe0f   :  { %v1489_v56 = vmul.f32 0.03125, %v1487_v55  ;;  %v1484_v57 = vpop.xlane.xlu0 %1483 }
 0xe10   :  { %v1488_v58 = vmul.f32 0.03125, %v1484_v57 }
 0xe11   :  { %v1491_v59 = vadd.f32 1e-12, %v1489_v56  ;;  %v1945_v56 = vld [vmem:[%s3028_s23] ss:$0 sm:$0xff] }
 0xe12   :  { %v1490_v60 = vadd.f32 1e-12, %v1488_v58 }
 0xe13   :  { %2408 = vrsqrt.f32 %v1491_v59 }
 0xe14   :  { %2410 = vrsqrt.f32 %v1490_v60 }
 0xe1d   :  { %v2409_v61 = vpop.eup %2408 }
 0xe1e   :  { %v2411_v63 = vpop.eup %2410  ;;  %v1495_v0 = vmul.f32 %v2409_v61, %v1479_v46  ;;  %v1946_v61 = vld [vmem:[%s3029_s24] ss:$0 sm:$0xff] }
 0xe1f   :  { %v1494_v1 = vmul.f32 %v2411_v63, %v1478_v47 }
 0xe20   :  { %v1503_v3 = vmul.f32 %v1939_v62, %v1495_v0 }
 0xe21   :  { %v1502_v4 = vmul.f32 %v1939_v62, %v1494_v1 }
 0xe22   :  { %v1511_v8 = vadd.f32 %v1940_v2, %v1503_v3  ;;  %v1804_v3 = vld [vmem:[%s3062_s16] sm:$0xff] }
 0xe23   :  { %v1510_v5 = vadd.f32 %v1940_v2, %v1502_v4  ;;  %v1805_v2 = vld [vmem:[%s3062_s16 + $0x8] sm:$0xff]  ;;  %vm1844_vm11 = vcmp.ne.s32.totalorder %v1804_v3, 4294967196 }
 0xe24   :  { %vm1845_vm10 = vcmp.ne.s32.totalorder %v1805_v2, 4294967196 }
 0xe25   :  { %2195 = vmatprep.mubr.msk.f32.mxu0 %vm202_vm2, %v1510_v5 }
 0xe26   :  { %2196 = vmatmul.mubr.msk.f32.vlgmr.msra.gmra.mrb[14].mxu0 %vm202_vm2, %v1511_v8 }
 0xef9   :  { %v2197_v15 = vpop.f32.mrb[14].mxu0 }
 0xefa   :  { %v1601_v16 = vadd.f32 %v2197_v15, %v1941_v10  ;;  %v1595_v18 = vpop.f32.mrb[15].mxu0 }
 0xefb   :  { %v1596_v22 = vadd.f32 %v1941_v10, %v1595_v18 }
 0xefc   :  { %v1607_v24 = vmul.f32 0.044715, %v1601_v16  ;;  %v1605_v37 = vmul.f32 0.5, %v1601_v16 }
 0xefd   :  { %v1606_v25 = vmul.f32 0.044715, %v1596_v22  ;;  %v1604_v39 = vmul.f32 0.5, %v1596_v22 }
 0xefe   :  { %v1609_v29 = vmul.f32 %v1607_v24, %v1601_v16 }
 0xeff   :  { %v1608_v30 = vmul.f32 %v1606_v25, %v1596_v22 }
 0xf00   :  { %v1611_v12 = vmul.f32 %v1609_v29, %v1601_v16 }
 0xf01   :  { %v1610_v9 = vmul.f32 %v1608_v30, %v1596_v22 }
 0xf02   :  { %v1613_v31 = vadd.f32 %v1611_v12, %v1601_v16 }
 0xf03   :  { %v1612_v32 = vadd.f32 %v1610_v9, %v1596_v22 }
 0xf04   :  { %v1615_v33 = vmul.f32 0.7978846, %v1613_v31  ;;  %v1967_v31 = vsel %vm1844_vm11, 1.0, %v2456_v13 }
 0xf05   :  { %v1614_v34 = vmul.f32 0.7978846, %v1612_v32  ;;  %v1968_v32 = vsel %vm1845_vm10, 1.0, %v2456_v13 }
 0xf06   :  { %2412 = vtanh.f32 %v1615_v33  ;;  %v1869_v33 = vsel %vm1854_vm12, %v1968_v32, 0.0 }
 0xf07   :  { %2414 = vtanh.f32 %v1614_v34 }
 0xf10   :  { %v2413_v35 = vpop.eup %2412 }
 0xf11   :  { %v2415_v36 = vpop.eup %2414  ;;  %v1619_v38 = vadd.f32 1.0, %v2413_v35 }
 0xf12   :  { %v1618_v40 = vadd.f32 1.0, %v2415_v36 }
 0xf13   :  { %v1621_v41 = vmul.f32 %v1619_v38, %v1605_v37 }
 0xf14   :  { %v1620_v43 = vmul.f32 %v1618_v40, %v1604_v39 }
 0xf15   :  { %v1627_v42 = vsel %vm202_vm2, %v1621_v41, 0.0 }
 0xf16   :  { %1628 = vadd.xlane.f32.xlu1 %v1627_v42  ;;  %v1624_v44 = vsel %vm202_vm2, %v1620_v43, 0.0 }
 0xf17   :  { %1625 = vadd.xlane.f32.xlu0 %v1624_v44 }
 0xfa3   :  { %v1629_v6 = vpop.xlane.xlu1 %1628 }
 0xfa4   :  { %v1631_v7 = vmul.f32 0.03125, %v1629_v6  ;;  %v1626_v11 = vpop.xlane.xlu0 %1625 }
 0xfa5   :  { %v1630_v14 = vmul.f32 0.03125, %v1626_v11 }
 0xfa6   :  { %v1633_v17 = vsub.f32 %v1621_v41, %v1631_v7 }
 0xfa7   :  { %v1632_v20 = vsub.f32 %v1620_v43, %v1630_v14 }
 0xfa8   :  { %v1635_v46 = vmul.f32 %v1633_v17, %v1633_v17 }
 0xfa9   :  { %v1634_v47 = vmul.f32 %v1632_v20, %v1632_v20 }
 0xfaa   :  { %v1639_v48 = vsel %vm202_vm2, %v1635_v46, 0.0 }
 0xfab   :  { %1640 = vadd.xlane.f32.xlu1 %v1639_v48  ;;  %v1636_v23 = vsel %vm202_vm2, %v1634_v47, 0.0 }
 0xfac   :  { %1637 = vadd.xlane.f32.xlu0 %v1636_v23 }
0x1038   :  { %v1641_v49 = vpop.xlane.xlu1 %1640 }
0x1039   :  { %v1643_v51 = vmul.f32 0.03125, %v1641_v49  ;;  %v1638_v50 = vpop.xlane.xlu0 %1637 }
0x103a   :  { %v1642_v27 = vmul.f32 0.03125, %v1638_v50 }
0x103b   :  { %v1645_v52 = vadd.f32 1e-12, %v1643_v51 }
0x103c   :  { %v1644_v26 = vadd.f32 1e-12, %v1642_v27 }
0x103d   :  { %2416 = vrsqrt.f32 %v1645_v52 }
0x103e   :  { %2418 = vrsqrt.f32 %v1644_v26 }
0x1047   :  { %v2417_v53 = vpop.eup %2416 }
0x1048   :  { %v2419_v21 = vpop.eup %2418  ;;  %v1649_v54 = vmul.f32 %v2417_v53, %v1633_v17 }
0x1049   :  { %v1648_v55 = vmul.f32 %v2419_v21, %v1632_v20 }
0x104a   :  { %v1657_v57 = vmul.f32 %v1944_v19, %v1649_v54 }
0x104b   :  { %v1656_v58 = vmul.f32 %v1944_v19, %v1648_v55 }
0x104c   :  { %v1665_v60 = vadd.f32 %v1945_v56, %v1657_v57 }
0x104d   :  { %v1664_v59 = vadd.f32 %v1945_v56, %v1656_v58 }
0x104f   :  { %2230 = vmatprep.mubr.msk.f32.mxu1 %vm202_vm2, %v1664_v59 }
0x1050   :  { %2231 = vmatmul.mubr.msk.f32.vlgmr.msra.gmra.mrb[12].mxu1 %vm202_vm2, %v1665_v60 }
0x1123   :  { %v2232_v62 = vpop.f32.mrb[12].mxu1 }
0x1124   :  { %v1799_v63 = vadd.f32 %v2232_v62, %v1946_v61  ;;  %v1793_v0 = vpop.f32.mrb[13].mxu1 }
0x1125   :  { %v1794_v1 = vadd.f32 %v1946_v61, %v1793_v0 }
0x1126   :  { %1803 = vst [vmem:[%s3030_s25 + $0x8] sm:$0xff] %v1799_v63  ;;  %1808 = vmax.xlane.f32.xlu1 %v1799_v63 }
0x1127   :  { %1802 = vst [vmem:[%s3030_s25] sm:$0xff] %v1794_v1  ;;  %1806 = vmax.xlane.f32.xlu0 %v1794_v1 }
0x1137   :  { %1830 = vperm.xlu1 %2379, %v1805_v2  }
0x113d   :  { %1827 = vperm.xlu0 %2378, %v1804_v3  }
0x11b3   :  { %v1809_v4 = vpop.xlane.xlu1 %1808 }
0x11b4   :  { %v1811_v5 = vsub.f32 %v1799_v63, %v1809_v4  ;;  %v1807_v8 = vpop.xlane.xlu0 %1806 }
0x11b5   :  { %v1810_v10 = vsub.f32 %v1794_v1, %v1807_v8 }
0x11b6   :  { %v1814_v15 = vmul.f32 1.442695, %v1811_v5 }
0x11b7   :  { %v1812_v16 = vmul.f32 1.442695, %v1810_v10  ;;  %v1831_v22 = vpop.permute.xlu1 %1830 }
0x11b8   :  { %2420 = vpow2.f32 %v1814_v15  ;;  %vm1833_vm9 = vcmp.eq.s32.totalorder %v2687_v28, %v1831_v22 }
0x11b9   :  { %2422 = vpow2.f32 %v1812_v16  ;;  %v1966_v30 = vsel %vm1833_vm9, 1.0, %v2456_v13 }
0x11ba   :  { %v1839_v9 = vmul.f32 %v1966_v30, %v1799_v63 }
0x11bc   :  { %v1828_v18 = vpop.permute.xlu0 %1827 }
0x11bd   :  { %vm1832_vm8 = vcmp.eq.s32.totalorder %v2687_v28, %v1828_v18  ;;  %v1868_v28 = vsel %vm1854_vm12, %v1967_v31, 0.0 }
0x11be   :  { %v1965_v25 = vsel %vm1832_vm8, 1.0, %v2456_v13  ;;  %v1870_v34 = vadd.f32 %v1869_v33, %v1868_v28 }
0x11bf   :  { %v1838_v12 = vmul.f32 %v1965_v25, %v1794_v1 }
0x11c2   :  { %v2421_v24 = vpop.eup %2420 }
0x11c3   :  { %v2423_v29 = vpop.eup %2422  ;;  %1818 = vadd.xlane.f32.xlu0 %v2421_v24 }
0x11c4   :  { %1816 = vadd.xlane.f32.xlu1 %v2423_v29 }
0x11c7   :  { %1840 = vadd.xlane.f32.xlu0 %v1838_v12 }
0x11c8   :  { %1842 = vadd.xlane.f32.xlu1 %v1839_v9 }
0x11cc   :  { %1871 = vadd.xlane.f32.xlu1 %v1870_v34 }
0x1250   :  { %v1819_v35 = vpop.xlane.xlu0 %1818 }
0x1251   :  { %2424 = vlog2.f32 %v1819_v35  ;;  %v1817_v36 = vpop.xlane.xlu1 %1816 }
0x1252   :  { %2426 = vlog2.f32 %v1817_v36 }
0x1254   :  { %v1841_v44 = vpop.xlane.xlu0 %1840 }
0x1255   :  { %v1843_v42 = vpop.xlane.xlu1 %1842 }
0x1259   :  { %v1872_v20 = vpop.xlane.xlu1 %1871 }
0x125a   :  { %v1873_v46 = vrot.slane %v1872_v20, 4 }
0x125b   :  { %v2425_v37 = vpop.eup %2424 }
0x125c   :  { %v2427_v38 = vpop.eup %2426  ;;  %v1823_v39 = vmul.f32 0.6931472, %v2425_v37  ;;  %v1874_v47 = vadd.f32 %v1873_v46, %v1872_v20 }
0x125d   :  { %v1821_v40 = vmul.f32 0.6931472, %v2427_v38 }
0x125e   :  { %v1825_v41 = vadd.f32 %v1823_v39, %v1809_v4  ;;  %v1875_v48 = vrot.slane %v1874_v47, 2 }
0x125f   :  { %v1824_v43 = vadd.f32 %v1821_v40, %v1807_v8 }
0x1260   :  { %v1851_v13 = vsub.f32 %v1825_v41, %v1843_v42  ;;  %v1876_v50 = vadd.f32 %v1875_v48, %v1874_v47 }
0x1261   :  { %v1850_v45 = vsub.f32 %v1824_v43, %v1841_v44 }
0x1262   :  { %v1853_v6 = vmul.f32 %v1968_v32, %v1851_v13  ;;  %v1877_v26 = vrot.slane %v1876_v50, 1 }
0x1263   :  { %v1852_v7 = vmul.f32 %v1967_v31, %v1850_v45 }
0x1264   :  { %v1856_v11 = vsel %vm1854_vm12, %v1853_v6, 0.0  ;;  %v1878_v21 = vadd.f32 %v1877_v26, %v1876_v50 }
0x1265   :  { %v1855_v14 = vsel %vm1854_vm12, %v1852_v7, 0.0 }
0x1266   :  { %v1857_v17 = vadd.f32 %v1856_v11, %v1855_v14 }
0x1268   :  { %1858 = vadd.xlane.f32.xlu0 %v1857_v17 }
0x12f5   :  { %v1859_v23 = vpop.xlane.xlu0 %1858 }
0x12f6   :  { %v1860_v49 = vrot.slane %v1859_v23, 4 }
0x12f8   :  { %v1861_v51 = vadd.f32 %v1860_v49, %v1859_v23 }
0x12fa   :  { %v1862_v27 = vrot.slane %v1861_v51, 2 }
0x12fc   :  { %v1863_v52 = vadd.f32 %v1862_v27, %v1861_v51 }
0x12fe   :  { %v1864_v53 = vrot.slane %v1863_v52, 1 }
0x1300   :  { %v1865_v19 = vadd.f32 %v1864_v53, %v1863_v52 }
0x1302   :  { %2363 = vpush %v1865_v19 }
0x1303   :  { %2365 = vpush %v1878_v21 }
0x1333   :  { %s2364_s25 = spop %2363 }
0x1334   :  { %s2366_s14 = spop %2365  ;;  %v1867_v57 = vstv %s2364_s25 }
0x1335   :  { %v1880_v54 = vstv %s2366_s14 }
0x1336   :  { %v1881_v55 = vmax.f32 %v1880_v54, 1.0 }
0x1338   :  { %2428 = vrcp.f32 %v1881_v55 }
0x1342   :  { %v2429_v56 = vpop.eup %2428 }
0x1343   :  { %v1883_v58 = vmul.f32 %v2429_v56, %v1867_v57 }
0x1345   :  { %1885 = vst.msk [vmem:[#allocation2] sm:$0x1] %vm1884_vm13, %v1883_v58 }
0x1346   :  { %2441 = shalt.err (!%p2438_p4)
}
0x1347   :  { %s2442_s27 = scalar_lea.hbm %s3031_s26, 16 }
0x1348   :  { %p2443_p5 = scmp.ne.s32.totalorder %s3031_s26, %s2442_s27  ;;  %p2446_p6 = scmp.lt.u32.totalorder %s2442_s27, %s3031_s26 }
0x134a   :  { %p2448_p7 = pnand %p2446_p6, %p2443_p5 }
0x134c   :  { %2451 = shalt.err (!%p2448_p7)
}
0x134d   :  { %1897 = dma.vmem_to_hbm [thread:$0]  %s1895_s5, 16, %s3031_s26, [#allocation3]  }
0x134e   :  { %2452 = dma.done.wait [#allocation3], 16  }
0x134f   :  { %2453 = vsyncadd [#allocation3], 4294967280 }
0x1350   :  { %1903 = vsyncpa [#allocation3], 1 }

// kernel: electra_forward.3
= control target key start
LH: loop header
LB: loop body
LE: loop exit
PB: predicated region body
PF: predicated region fallthrough
CT: control target
= control target key end

     0   :  { %s2652_s0 = inlined_call_operand.vmem [shape: s32[16,1], index: 0, kind: input, shape index: {}]   ;;  %s2653_s1 = inlined_call_operand.vmem [shape: f32[16,1], index: 1, kind: input, shape index: {}]   ;;  %s2654_s2 = inlined_call_operand.vmem [shape: f32[16,1], index: 2, kind: input, shape index: {}]   ;;  %s2655_s3 = inlined_call_operand.vmem [shape: f32[2,8], index: 3, kind: input, shape index: {}]   ;;  %s2656_s4 = inlined_call_operand.vmem [shape: f32[128,32], index: 4, kind: input, shape index: {}]   ;;  %s2657_s5 = inlined_call_operand.vmem [shape: f32[8,32], index: 5, kind: input, shape index: {}]   ;;  %s2658_s6 = inlined_call_operand.vmem [shape: f32[1,32], index: 6, kind: input, shape index: {}]   ;;  %s2659_s7 = inlined_call_operand.vmem [shape: f32[1,32], index: 7, kind: input, shape index: {}]   ;;  %s2660_s8 = inlined_call_operand.vmem [shape: f32[1,32], index: 8, kind: input, shape index: {}]   ;;  %s2661_s9 = inlined_call_operand.vmem [shape: f32[1,32,96], index: 9, kind: input, shape index: {}]   ;;  %s2662_s10 = inlined_call_operand.vmem [shape: f32[1,1,96], index: 10, kind: input, shape index: {}]   ;;  %s2663_s11 = inlined_call_operand.vmem [shape: f32[1,32,32], index: 11, kind: input, shape index: {}]   ;;  %s2664_s12 = inlined_call_operand.vmem [shape: f32[1,1,32], index: 12, kind: input, shape index: {}]   ;;  %s2665_s13 = inlined_call_operand.vmem [shape: f32[1,1,32], index: 13, kind: input, shape index: {}]   ;;  %s2666_s14 = inlined_call_operand.vmem [shape: f32[1,1,32], index: 14, kind: input, shape index: {}]   ;;  %s2667_s15 = inlined_call_operand.vmem [shape: f32[1,32,64], index: 15, kind: input, shape index: {}]   ;;  %s2668_s16 = inlined_call_operand.vmem [shape: f32[1,1,64], index: 16, kind: input, shape index: {}]   ;;  %s2669_s17 = inlined_call_operand.vmem [shape: f32[1,64,32], index: 17, kind: input, shape index: {}]   ;;  %s2670_s18 = inlined_call_operand.vmem [shape: f32[1,1,32], index: 18, kind: input, shape index: {}]   ;;  %s2671_s19 = inlined_call_operand.vmem [shape: f32[1,1,32], index: 19, kind: input, shape index: {}]   ;;  %s2672_s20 = inlined_call_operand.vmem [shape: f32[1,1,32], index: 20, kind: input, shape index: {}]   ;;  %s2673_s21 = inlined_call_operand.vmem [shape: f32[32,32], index: 21, kind: input, shape index: {}]   ;;  %s2674_s22 = inlined_call_operand.vmem [shape: f32[1,32], index: 22, kind: input, shape index: {}]   ;;  %s2675_s23 = inlined_call_operand.vmem [shape: f32[1,32], index: 23, kind: input, shape index: {}]   ;;  %s2676_s24 = inlined_call_operand.<no memory space> [shape: f32[1,1], index: 24, kind: input, shape index: {}]   ;;  %s2677_s25 = inlined_call_operand.vmem [shape: f32[16,1], index: 25, kind: output, shape index: {0}]   ;;  %s2678_s26 = inlined_call_operand.hbm [shape: f32[1,1], index: 26, kind: output, shape index: {1}]  }
   0x1   :  { %2684 = sst [smem:[#allocation6_spill]] %s2652_s0  ;;  %v32_v0 = vstv %s2676_s24 }
   0x2   :  { %2685 = sst [smem:[#allocation7_spill]] %s2653_s1  ;;  %33 = vst [vmem:[#allocation2] sm:$0x1] %v32_v0 }
   0x3   :  { %2686 = sst [smem:[#allocation8_spill]] %s2654_s2 }
   0x4   :  { %2687 = sst [smem:[#allocation9_spill]] %s2655_s3 }
   0x5   :  { %2688 = sst [smem:[#allocation10_spill]] %s2656_s4 }
   0x6   :  { %2689 = sst [smem:[#allocation11_spill]] %s2657_s5 }
   0x7   :  { %2690 = sst [smem:[#allocation12_spill]] %s2658_s6 }
   0x8   :  { %2691 = sst [smem:[#allocation13_spill]] %s2659_s7 }
   0x9   :  { %2692 = sst [smem:[#allocation14_spill]] %s2660_s8 }
   0xa   :  { %2693 = sst [smem:[#allocation15_spill]] %s2661_s9 }
   0xb   :  { %2694 = sst [smem:[#allocation16_spill]] %s2662_s10 }
   0xc   :  { %s2695_s8 = sld [smem:[#allocation6_spill]]  ;;  %s2696_s0 = sld [smem:[#allocation10_spill]]  ;;  %v2183_v3 = vmov 0  }
   0xd   :  { %2104 = vset.pattern.permute.xlu0 %v2183_v3 }
  0x12   :  { %v101_v1 = vld [vmem:[%s2695_s8] sm:$0xff]  ;;  %v86_v4 = vld [vmem:[%s2696_s0 + $0x8] sm:$0xff]  ;;  %v87_v5 = vld [vmem:[%s2696_s0 + $0x10] sm:$0xff] }
  0x13   :  { %v85_v2 = vld [vmem:[%s2696_s0] sm:$0xff]  ;;  %v88_v6 = vld [vmem:[%s2696_s0 + $0x18] sm:$0xff]  ;;  %110 = vperm.xlu0 %2104, %v101_v1   ;;  %v102_v9 = vld [vmem:[%s2695_s8 + $0x8] sm:$0xff] }
  0x14   :  { %v2007_v7 = vpack.c.bf16 %v86_v4, %v85_v2  ;;  %v2011_v8 = vpack.c.bf16 %v88_v6, %v87_v5  ;;  %v89_v10 = vld [vmem:[%s2696_s0 + $0x20] sm:$0xff]  ;;  %v90_v11 = vld [vmem:[%s2696_s0 + $0x28] sm:$0xff] }
  0x15   :  { %v2015_v12 = vpack.c.bf16 %v90_v11, %v89_v10 }
  0x16   :  { %2008 = vmatprep.subr.bf16.mxu0 %v2007_v7 }
  0x17   :  { %2010 = vmatpush3.bf16.msra.mxu0 %v2007_v7  ;;  %113 = vperm.xlu0 %2104, %v102_v9  }
  0x18   :  { %2012 = vmatprep.subr.bf16.mxu0 %v2011_v8 }
  0x19   :  { %34 = vsyncpa [#allocation4], 0  ;;  %v91_v13 = vld [vmem:[%s2696_s0 + $0x30] sm:$0xff]  ;;  %v92_v14 = vld [vmem:[%s2696_s0 + $0x38] sm:$0xff]  ;;  %v107_v28 = vlaneseq  ;;  %v2184_v31 = vmov 1.0   ;;  %s2697_s24 = sld [smem:[#allocation11_spill]] }
  0x1a   :  { %v2019_v15 = vpack.c.bf16 %v92_v14, %v91_v13  ;;  %v93_v16 = vld [vmem:[%s2696_s0 + $0x40] sm:$0xff]  ;;  %v94_v17 = vld [vmem:[%s2696_s0 + $0x48] sm:$0xff]  ;;  %v95_v19 = vld [vmem:[%s2696_s0 + $0x50] sm:$0xff]  ;;  %s2698_s6 = sld [smem:[#allocation12_spill]]  ;;  %vm204_vm2 = vcmask 261120   ;;  %s2699_s3 = sld [smem:[#allocation15_spill]] }
  0x1b   :  { %2014 = vmatpush3.bf16.msra.mxu0 %v2011_v8  ;;  %v2023_v18 = vpack.c.bf16 %v94_v17, %v93_v16  ;;  %v96_v20 = vld [vmem:[%s2696_s0 + $0x58] sm:$0xff]  ;;  %v97_v22 = vld [vmem:[%s2696_s0 + $0x60] sm:$0xff]  ;;  %v98_v23 = vld [vmem:[%s2696_s0 + $0x68] sm:$0xff]  ;;  %v108_v29 = vand.u32 127, %v107_v28  ;;  %s2700_s5 = sld [smem:[#allocation13_spill]]  ;;  %s2701_s10 = sld [smem:[#allocation14_spill]] }
  0x1c   :  { %2016 = vmatprep.subr.bf16.mxu0 %v2015_v12  ;;  %v2027_v21 = vpack.c.bf16 %v96_v20, %v95_v19  ;;  %v2031_v24 = vpack.c.bf16 %v98_v23, %v97_v22  ;;  %v99_v25 = vld [vmem:[%s2696_s0 + $0x70] sm:$0xff]  ;;  %v100_v26 = vld [vmem:[%s2696_s0 + $0x78] sm:$0xff]  ;;  %v2185_v11 = vmov 0.0   ;;  %vm2186_vm3 = vmmov 0   ;;  %s2702_s27 = sld [smem:[#allocation16_spill]]  ;;  %s2188_s7 = smov 96  }
  0x1d   :  { %v2035_v27 = vpack.c.bf16 %v100_v26, %v99_v25  ;;  %vm404_vm4 = vcmask 130048   ;;  %v2189_v22 = vmov 1966171168   ;;  %s2703_s29 = sld [smem:[#allocation9_spill]]  ;;  %vm558_vm5 = vcmask 64512   ;;  %s2190_s9 = smov 80  }
  0x1e   :  { %v370_v23 = vunpack.c.l.s4 %v2189_v22  ;;  %s2191_s8 = smov 112   ;;  %s2192_s30 = smov 48   ;;  %vm1388_vm6 = vcmask 523264   ;;  %vm1648_vm7 = vcmask 7168   ;;  %vm1734_vm8 = vcmask 0  }
  0x1f   :  { %2018 = vmatpush3.bf16.msra.mxu0 %v2015_v12  ;;  %v103_v33 = vld [vmem:[%s2697_s24] sm:$0xff]  ;;  %s2705_s2 = sld [smem:[#allocation7_spill]] }
  0x20   :  { %2020 = vmatprep.subr.bf16.mxu0 %v2019_v15  ;;  %v1758_v36 = vld [vmem:[%s2698_s6] ss:$0 sm:$0xff]  ;;  %v252_v54 = vld [vmem:[%s2699_s3 + $0x8] sm:$0xff]  ;;  %v253_v55 = vld [vmem:[%s2699_s3 + $0x10] sm:$0xff]  ;;  %v371_v26 = vunpack.c.0.s8 %v370_v23 }
  0x21   :  { %v251_v53 = vld [vmem:[%s2699_s3] sm:$0xff]  ;;  %v254_v57 = vld [vmem:[%s2699_s3 + $0x18] sm:$0xff]  ;;  %s2187_s3 = smov 64  }
  0x22   :  { %v2039_v56 = vpack.c.bf16 %v252_v54, %v251_v53  ;;  %v2043_v58 = vpack.c.bf16 %v254_v57, %v253_v55  ;;  %v1759_v2 = vld [vmem:[%s2700_s5] ss:$0 sm:$0xff] }
  0x23   :  { %2022 = vmatpush3.bf16.msra.mxu0 %v2019_v15  ;;  %v1760_v4 = vld [vmem:[%s2701_s10] ss:$0 sm:$0xff] }
  0x24   :  { %2024 = vmatprep.subr.bf16.mxu0 %v2023_v18  ;;  %2040 = vmatprep.subr.bf16.mxu1 %v2039_v56  ;;  %v1761_v12 = vld [vmem:[%s2702_s27] ss:$0 sm:$0xff] }
  0x25   :  { %2042 = vmatpush3.bf16.msra.mxu1 %v2039_v56 }
  0x26   :  { %2044 = vmatprep.subr.bf16.mxu1 %v2043_v58 }
  0x27   :  { %2026 = vmatpush3.bf16.msra.mxu0 %v2023_v18 }
  0x28   :  { %2028 = vmatprep.subr.bf16.mxu0 %v2027_v21 }
  0x29   :  { %2046 = vmatpush3.bf16.msra.mxu1 %v2043_v58 }
  0x2a   :  { %1912 = vmatprep.subr.mxu1 %v2185_v11 }
  0x2b   :  { %2030 = vmatpush3.bf16.msra.mxu0 %v2027_v21 }
  0x2c   :  { %2032 = vmatprep.subr.bf16.mxu0 %v2031_v24 }
  0x2f   :  { %2034 = vmatpush3.bf16.msra.mxu0 %v2031_v24  ;;  %v248_v24 = vld [vmem:[%s2703_s29] sm:$0x3] }
  0x30   :  { %2036 = vmatprep.subr.bf16.mxu0 %v2035_v27  ;;  %v249_v25 = vsub.f32 1.0, %v248_v24 }
  0x33   :  { %2038 = vmatpush3.bf16.msra.mxu0 %v2035_v27  ;;  %v373_v27 = vshrl.u32 %v107_v28, 7 }
  0x92   :  { %v111_v30 = vpop.permute.xlu0 %110 }
  0x93   :  { %vm115_vm0 = vcmp.eq.s32.totalorder %v108_v29, %v111_v30  ;;  %v374_v30 = vsub.s32 %v371_v26, %v373_v27 }
  0x94   :  { %1898 = vmatprep.mubr.msk.f32.mxu0 %vm115_vm0, %v2184_v31 }
  0x96   :  { %v114_v32 = vpop.permute.xlu0 %113 }
  0x97   :  { %vm116_vm1 = vcmp.eq.s32.totalorder %v108_v29, %v114_v32  ;;  %v250_v29 = vmul.f32 -1e+09, %v249_v25 }
  0x98   :  { %1899 = vmatmul.mubr.msk.f32.vlgmr.msra.gmra.mrb[0].mxu0 %vm116_vm1, %v2184_v31 }
  0x99   :  { %v375_v31 = vrot.slane %v250_v29, %v374_v30 }
  0x9b   :  { %v383_v32 = vrot.slane %v375_v31, %v374_v30 }
 0x16b   :  { %v1900_v34 = vpop.f32.mrb[0].mxu0 }
 0x16c   :  { %v187_v35 = vpop.f32.mrb[1].mxu0  ;;  %v193_v37 = vadd.f32 %v1900_v34, %v103_v33  ;;  %v376_v34 = vcombine.high %v375_v31, %v375_v31 }
 0x16d   :  { %v188_v38 = vadd.f32 %v187_v35, %v103_v33  ;;  %v393_v33 = vsub.s32 0, %v373_v27 }
 0x16e   :  { %v203_v41 = vadd.f32 %v1758_v36, %v193_v37 }
 0x16f   :  { %v202_v39 = vadd.f32 %v1758_v36, %v188_v38  ;;  %v2454_v35 = vrot.slane %v383_v32, %v393_v33  ;;  %v390_v36 = vrot.slane %v376_v34, %v374_v30 }
 0x170   :  { %v208_v42 = vsel %vm204_vm2, %v203_v41, 0.0 }
 0x171   :  { %v205_v40 = vsel %vm204_vm2, %v202_v39, 0.0 }
 0x172   :  { %206 = vadd.xlane.f32.xlu1 %v205_v40  ;;  %v2457_v40 = vrot.slane %v390_v36, %v393_v33 }
 0x176   :  { %209 = vadd.xlane.f32.xlu1 %v208_v42 }
 0x1ff   :  { %v207_v43 = vpop.xlane.xlu1 %206 }
 0x200   :  { %v212_v44 = vmul.f32 0.03125, %v207_v43 }
 0x202   :  { %v214_v45 = vsub.f32 %v202_v39, %v212_v44 }
 0x203   :  { %v210_v46 = vpop.xlane.xlu1 %209 }
 0x204   :  { %v213_v47 = vmul.f32 0.03125, %v210_v46  ;;  %v216_v48 = vmul.f32 %v214_v45, %v214_v45 }
 0x206   :  { %v215_v49 = vsub.f32 %v203_v41, %v213_v47  ;;  %v218_v50 = vsel %vm204_vm2, %v216_v48, 0.0 }
 0x207   :  { %219 = vadd.xlane.f32.xlu0 %v218_v50 }
 0x208   :  { %v217_v51 = vmul.f32 %v215_v49, %v215_v49 }
 0x20a   :  { %v221_v52 = vsel %vm204_vm2, %v217_v51, 0.0 }
 0x20b   :  { %222 = vadd.xlane.f32.xlu1 %v221_v52 }
 0x294   :  { %v220_v59 = vpop.xlane.xlu0 %219 }
 0x295   :  { %v224_v60 = vmul.f32 0.03125, %v220_v59 }
 0x297   :  { %v226_v61 = vadd.f32 1e-12, %v224_v60 }
 0x298   :  { %v223_v62 = vpop.xlane.xlu1 %222 }
 0x299   :  { %2105 = vrsqrt.f32 %v226_v61  ;;  %v225_v63 = vmul.f32 0.03125, %v223_v62 }
 0x29b   :  { %v227_v0 = vadd.f32 1e-12, %v225_v63 }
 0x29d   :  { %2107 = vrsqrt.f32 %v227_v0 }
 0x2a3   :  { %v2106_v1 = vpop.eup %2105 }
 0x2a4   :  { %v230_v3 = vmul.f32 %v2106_v1, %v214_v45 }
 0x2a6   :  { %v238_v5 = vmul.f32 %v1759_v2, %v230_v3 }
 0x2a7   :  { %v2108_v6 = vpop.eup %2107 }
 0x2a8   :  { %v231_v7 = vmul.f32 %v2108_v6, %v215_v49  ;;  %v2415_v8 = vadd.f32 %v1760_v4, %v238_v5 }
 0x2aa   :  { %v239_v9 = vmul.f32 %v1759_v2, %v231_v7  ;;  %1909 = vmatprep.mubr.msk.f32.mxu1 %vm204_vm2, %v2415_v8 }
 0x2ac   :  { %v2419_v10 = vadd.f32 %v1760_v4, %v239_v9 }
 0x2ae   :  { %1910 = vmatmul.mubr.msk.f32.vlgmr.msra.gmra.mrb[0].mxu1 %vm204_vm2, %v2419_v10 }
 0x2af   :  { %1914 = vmatprep.mubr.msk.f32.mxu1 %vm2186_vm3, %v2185_v11 }
 0x381   :  { %v1911_v13 = vpop.f32.mrb[0].mxu1 }
 0x382   :  { %v357_v14 = vpop.f32.mrb[1].mxu1  ;;  %v2434_v16 = vadd.f32 %v1911_v13, %v1761_v12 }
 0x383   :  { %v2429_v15 = vadd.f32 %v1761_v12, %v357_v14 }
 0x384   :  { %v367_v20 = vmul.f32 0.25, %v2434_v16 }
 0x385   :  { %581 = vrot.lane.b32.xlu0 %v2429_v15, %s2187_s3  ;;  %402 = vrot.lane.b32.xlu1 %v2429_v15, %s2188_s7  ;;  %v366_v18 = vmul.f32 0.25, %v2429_v15 }
 0x389   :  { %481 = vrot.lane.b32.xlu1 %v2434_v16, %s2188_s7 }
 0x3f7   :  { %v403_v17 = vpop.permute.xlu1 %402  ;;  %v582_v21 = vpop.permute.xlu0 %581 }
 0x3f8   :  { %1913 = vmatpush3.xpose.msk.msra.mxu1 %vm404_vm4, %v403_v17 }
 0x3f9   :  { %1917 = vmatprep.subr.mxu1 %v2185_v11 }
 0x3fb   :  { %v482_v19 = vpop.permute.xlu1 %481  ;;  %1915 = vmatmul.mubr.msk.f32.vlgmr.msra.gmra.mrb[2].mxu1 %vm404_vm4, %v366_v18 }
 0x3fc   :  { %1918 = vmatpush3.xpose.msk.msra.mxu1 %vm404_vm4, %v482_v19  ;;  %1919 = vmatprep.mubr.msk.f32.mxu1 %vm2186_vm3, %v2185_v11 }
 0x3fd   :  { %1922 = vmatprep.subr.mxu1 %v2185_v11 }
 0x3ff   :  { %1920 = vmatmul.mubr.msk.f32.vlgmr.msra.gmra.mrb[4].mxu1 %vm404_vm4, %v367_v20 }
 0x400   :  { %1923 = vmatpush3.msra.mxu1 %v582_v21  ;;  %1924 = vmatprep.mubr.msk.f32.mxu1 %vm2186_vm3, %v2185_v11 }
 0x401   :  { %1927 = vmatprep.subr.mxu1 %v2185_v11 }
 0x4ce   :  { %v476_v37 = vpop.f32.mrb[2].mxu1 }
 0x4cf   :  { %v477_v38 = vadd.f32 %v476_v37, %v2454_v35  ;;  %v1916_v39 = vpop.f32.mrb[3].mxu1  ;;  %v259_v37 = vld [vmem:[%s2663_s11 + $0x18] sm:$0xff] }
 0x4d0   :  { %v256_v39 = vld [vmem:[%s2663_s11] sm:$0xff] }
 0x4d1   :  { %v559_v41 = vsel %vm558_vm5, %v477_v38, -inf }
 0x4d2   :  { %560 = vmax.xlane.f32.xlu1 %v559_v41  ;;  %v554_v28 = vpop.f32.mrb[4].mxu1 }
 0x4d3   :  { %v555_v42 = vadd.f32 %v554_v28, %v2457_v40  ;;  %v1921_v43 = vpop.f32.mrb[5].mxu1 }
 0x4d5   :  { %v562_v44 = vsel %vm558_vm5, %v555_v42, -inf }
 0x4d6   :  { %563 = vmax.xlane.f32.xlu0 %v562_v44  ;;  %v1780_v44 = vld [vmem:[%s2664_s12] ss:$0 sm:$0xff]  ;;  %s2704_s12 = sld [smem:[#allocation8_spill]] }
 0x4e3   :  { %657 = vrot.lane.b32.xlu1 %v2434_v16, %s2187_s3 }
 0x4ec   :  { %735 = vrot.lane.b32.xlu0 %v2429_v15, %s2190_s9 }
 0x55f   :  { %v561_v45 = vpop.xlane.xlu1 %560 }
 0x560   :  { %v565_v46 = vsub.f32 %v477_v38, %v561_v45 }
 0x562   :  { %v567_v47 = vmul.f32 1.442695, %v565_v46 }
 0x563   :  { %v564_v50 = vpop.xlane.xlu0 %563  ;;  %v658_v59 = vpop.permute.xlu1 %657 }
 0x564   :  { %2109 = vpow2.f32 %v567_v47  ;;  %v566_v51 = vsub.f32 %v555_v42, %v564_v50 }
 0x566   :  { %v569_v52 = vmul.f32 1.442695, %v566_v51 }
 0x567   :  { %v736_v55 = vpop.permute.xlu0 %735 }
 0x568   :  { %2111 = vpow2.f32 %v569_v52 }
 0x56e   :  { %v2110_v48 = vpop.eup %2109 }
 0x56f   :  { %v571_v49 = vsel %vm558_vm5, %v2110_v48, 0.0 }
 0x570   :  { %572 = vadd.xlane.f32.xlu0 %v571_v49 }
 0x572   :  { %v2112_v53 = vpop.eup %2111 }
 0x573   :  { %v574_v54 = vsel %vm558_vm5, %v2112_v53, 0.0 }
 0x586   :  { %733 = vrot.lane.b32.xlu0 %v366_v18, %s2191_s8 }
 0x5a5   :  { %575 = vadd.xlane.f32.xlu0 %v574_v54 }
 0x5bb   :  { %813 = vrot.lane.b32.xlu0 %v2434_v16, %s2190_s9 }
 0x5bf   :  { %811 = vrot.lane.b32.xlu0 %v367_v20, %s2191_s8 }
 0x5fd   :  { %v573_v56 = vpop.xlane.xlu0 %572 }
 0x5fe   :  { %2113 = vrcp.f32 %v573_v56 }
 0x601   :  { %v734_v60 = vpop.permute.xlu0 %733 }
 0x608   :  { %v2114_v57 = vpop.eup %2113 }
 0x609   :  { %v579_v58 = vmul.f32 %v2114_v57, %v2110_v48 }
 0x60b   :  { %1925 = vmatmul.mubr.msk.f32.vlgmr.msra.gmra.mrb[6].mxu1 %vm558_vm5, %v579_v58 }
 0x60c   :  { %1928 = vmatpush3.msra.mxu1 %v658_v59  ;;  %1929 = vmatprep.mubr.msk.f32.mxu1 %vm2186_vm3, %v2185_v11 }
 0x60d   :  { %1932 = vmatprep.subr.mxu1 %v2185_v11 }
 0x632   :  { %v576_v61 = vpop.xlane.xlu0 %575 }
 0x633   :  { %2115 = vrcp.f32 %v576_v61 }
 0x636   :  { %v814_v0 = vpop.permute.xlu0 %813 }
 0x63a   :  { %v812_v1 = vpop.permute.xlu0 %811 }
 0x63d   :  { %v2116_v62 = vpop.eup %2115 }
 0x63e   :  { %v580_v63 = vmul.f32 %v2116_v62, %v2112_v53  ;;  %v264_v62 = vld [vmem:[%s2667_s15 + $0x8] sm:$0xff] }
 0x640   :  { %1930 = vmatmul.mubr.msk.f32.vlgmr.msra.gmra.mrb[8].mxu1 %vm558_vm5, %v580_v63 }
 0x641   :  { %1933 = vmatpush3.xpose.msk.msra.mxu1 %vm404_vm4, %v736_v55  ;;  %1934 = vmatprep.mubr.msk.f32.mxu1 %vm2186_vm3, %v2185_v11 }
 0x642   :  { %1937 = vmatprep.subr.mxu1 %v2185_v11 }
 0x644   :  { %1935 = vmatmul.mubr.msk.f32.vlgmr.msra.gmra.mrb[10].mxu1 %vm404_vm4, %v734_v60 }
 0x645   :  { %1938 = vmatpush3.xpose.msk.msra.mxu1 %vm404_vm4, %v814_v0  ;;  %1939 = vmatprep.mubr.msk.f32.mxu1 %vm2186_vm3, %v2185_v11  ;;  %v265_v0 = vld [vmem:[%s2667_s15 + $0x10] sm:$0xff] }
 0x646   :  { %1942 = vmatprep.subr.mxu1 %v2185_v11 }
 0x648   :  { %1940 = vmatmul.mubr.msk.f32.vlgmr.msra.gmra.mrb[12].mxu1 %vm404_vm4, %v812_v1  ;;  %v266_v1 = vld [vmem:[%s2667_s15 + $0x18] sm:$0xff] }
 0x649   :  { %1944 = vmatprep.mubr.msk.f32.mxu1 %vm2186_vm3, %v2185_v11 }
 0x6de   :  { %v2485_v2 = vpop.f32.mrb[6].mxu1 }
 0x6df   :  { %v1926_v3 = vpop.f32.mrb[7].mxu1 }
 0x713   :  { %v729_v4 = vpop.f32.mrb[8].mxu1 }
 0x714   :  { %v1931_v5 = vpop.f32.mrb[9].mxu1 }
 0x717   :  { %v807_v6 = vpop.f32.mrb[10].mxu1 }
 0x718   :  { %v808_v7 = vadd.f32 %v807_v6, %v2454_v35  ;;  %v1936_v9 = vpop.f32.mrb[11].mxu1 }
 0x71a   :  { %v889_v12 = vsel %vm558_vm5, %v808_v7, -inf }
 0x71b   :  { %890 = vmax.xlane.f32.xlu1 %v889_v12  ;;  %v885_v13 = vpop.f32.mrb[12].mxu1 }
 0x71c   :  { %v886_v14 = vadd.f32 %v885_v13, %v2457_v40  ;;  %v1941_v17 = vpop.f32.mrb[13].mxu1  ;;  %v1781_v13 = vld [vmem:[%s2665_s13] ss:$0 sm:$0xff] }
 0x71e   :  { %v892_v18 = vsel %vm558_vm5, %v886_v14, -inf }
 0x71f   :  { %893 = vmax.xlane.f32.xlu0 %v892_v18 }
 0x7a8   :  { %v891_v19 = vpop.xlane.xlu1 %890 }
 0x7a9   :  { %v895_v20 = vsub.f32 %v808_v7, %v891_v19  ;;  %v1782_v19 = vld [vmem:[%s2666_s14] ss:$0 sm:$0xff] }
 0x7ab   :  { %v897_v21 = vmul.f32 1.442695, %v895_v20 }
 0x7ac   :  { %v894_v22 = vpop.xlane.xlu0 %893 }
 0x7ad   :  { %2117 = vpow2.f32 %v897_v21  ;;  %v896_v23 = vsub.f32 %v886_v14, %v894_v22 }
 0x7af   :  { %v899_v24 = vmul.f32 1.442695, %v896_v23 }
 0x7b1   :  { %2119 = vpow2.f32 %v899_v24  ;;  %v268_v24 = vld [vmem:[%s2669_s17] sm:$0xff] }
 0x7b7   :  { %v2118_v25 = vpop.eup %2117 }
 0x7b8   :  { %v901_v26 = vsel %vm558_vm5, %v2118_v25, 0.0 }
 0x7b9   :  { %902 = vadd.xlane.f32.xlu0 %v901_v26 }
 0x7bb   :  { %v2120_v27 = vpop.eup %2119 }
 0x7bc   :  { %v904_v29 = vsel %vm558_vm5, %v2120_v27, 0.0 }
 0x7bd   :  { %905 = vadd.xlane.f32.xlu1 %v904_v29  ;;  %v271_v29 = vld [vmem:[%s2669_s17 + $0x18] sm:$0xff] }
 0x7ce   :  { %987 = vrot.lane.b32.xlu1 %v2434_v16, %s2192_s30 }
 0x7cf   :  { %911 = vrot.lane.b32.xlu0 %v2429_v15, %s2192_s30  ;;  %v258_v15 = vld [vmem:[%s2663_s11 + $0x10] sm:$0xff] }
 0x7d0   :  { %v2047_v38 = vpack.c.bf16 %v259_v37, %v258_v15 }
 0x7d2   :  { %2048 = vmatprep.subr.bf16.mxu0 %v2047_v38 }
 0x7d3   :  { %2050 = vmatpush3.bf16.msra.mxu0 %v2047_v38 }
 0x846   :  { %v903_v30 = vpop.xlane.xlu0 %902 }
 0x847   :  { %2121 = vrcp.f32 %v903_v30 }
 0x84a   :  { %v906_v31 = vpop.xlane.xlu1 %905  ;;  %v912_v32 = vpop.permute.xlu0 %911 }
 0x84b   :  { %2123 = vrcp.f32 %v906_v31  ;;  %1943 = vmatpush3.msra.mxu1 %v912_v32  ;;  %v272_v31 = vld [vmem:[%s2669_s17 + $0x20] sm:$0xff]  ;;  %v273_v32 = vld [vmem:[%s2669_s17 + $0x28] sm:$0xff] }
 0x84c   :  { %1947 = vmatprep.subr.mxu1 %v2185_v11 }
 0x84e   :  { %v988_v35 = vpop.permute.xlu1 %987 }
 0x851   :  { %v2122_v33 = vpop.eup %2121 }
 0x852   :  { %v909_v34 = vmul.f32 %v2122_v33, %v2118_v25  ;;  %v269_v25 = vld [vmem:[%s2669_s17 + $0x8] sm:$0xff]  ;;  %v2071_v33 = vpack.c.bf16 %v273_v32, %v272_v31  ;;  %v1790_v32 = vld [vmem:[%s2672_s20] ss:$0 sm:$0xff] }
 0x853   :  { %v2063_v26 = vpack.c.bf16 %v269_v25, %v268_v24 }
 0x854   :  { %1945 = vmatmul.mubr.msk.f32.vlgmr.msra.gmra.mrb[14].mxu1 %vm558_vm5, %v909_v34  ;;  %v274_v34 = vld [vmem:[%s2669_s17 + $0x30] sm:$0xff] }
 0x855   :  { %v2124_v36 = vpop.eup %2123  ;;  %1948 = vmatpush3.msra.mxu1 %v988_v35  ;;  %1949 = vmatprep.mubr.msk.f32.mxu1 %vm2186_vm3, %v2185_v11  ;;  %v257_v11 = vld [vmem:[%s2663_s11 + $0x8] sm:$0xff]  ;;  %v275_v35 = vld [vmem:[%s2669_s17 + $0x38] sm:$0xff] }
 0x856   :  { %v910_v16 = vmul.f32 %v2124_v36, %v2120_v27  ;;  %v2051_v40 = vpack.c.bf16 %v257_v11, %v256_v39  ;;  %v270_v27 = vld [vmem:[%s2669_s17 + $0x10] sm:$0xff]  ;;  %v2075_v36 = vpack.c.bf16 %v275_v35, %v274_v34 }
 0x857   :  { %v2067_v30 = vpack.c.bf16 %v271_v29, %v270_v27  ;;  %v1789_v27 = vld [vmem:[%s2671_s19] ss:$0 sm:$0xff] }
 0x858   :  { %1950 = vmatmul.mubr.msk.f32.vlgmr.msra.gmra.mrb[16].mxu1 %vm558_vm5, %v910_v16  ;;  %2052 = vmatprep.subr.bf16.mxu0 %v2051_v40  ;;  %v1783_v16 = vld [vmem:[%s2668_s16] ss:$0 sm:$0xff] }
 0x927   :  { %v983_v41 = vpop.f32.mrb[14].mxu1 }
 0x928   :  { %v1946_v28 = vpop.f32.mrb[15].mxu1  ;;  %1956 = vmatprep.mubr.msk.f32.mxu0 %vm404_vm4, %v983_v41 }
 0x92b   :  { %v1059_v42 = vpop.f32.mrb[16].mxu1 }
 0x92c   :  { %v1951_v43 = vpop.f32.mrb[17].mxu1  ;;  %1957 = vmatmul.mubr.msk.f32.vlgmr.msra.gmra.mrb[2].mxu0 %vm404_vm4, %v1059_v42 }
 0x92d   :  { %2054 = vmatpush3.bf16.msra.mxu0 %v2051_v40  ;;  %1963 = vmatprep.mubr.msk.f32.mxu0 %vm404_vm4, %v2485_v2  ;;  %v2059_v2 = vpack.c.bf16 %v266_v1, %v265_v0 }
 0x92e   :  { %2064 = vmatprep.subr.bf16.mxu0 %v2063_v26 }
 0x934   :  { %1964 = vmatmul.mubr.msk.f32.vlgmr.msra.gmra.mrb[2].mxu0 %vm404_vm4, %v729_v4 }
 0x935   :  { %2066 = vmatpush3.bf16.msra.mxu0 %v2063_v26 }
 0x936   :  { %2068 = vmatprep.subr.bf16.mxu0 %v2067_v30 }
 0x939   :  { %2070 = vmatpush3.bf16.msra.mxu0 %v2067_v30 }
 0x93a   :  { %2072 = vmatprep.subr.bf16.mxu0 %v2071_v33 }
 0x93d   :  { %2074 = vmatpush3.bf16.msra.mxu0 %v2071_v33 }
 0x93e   :  { %2076 = vmatprep.subr.bf16.mxu0 %v2075_v36 }
 0x941   :  { %2078 = vmatpush3.bf16.msra.mxu0 %v2075_v36 }
 0xa07   :  { %v1965_v45 = vpop.f32.mrb[2].mxu0 }
 0xa08   :  { %v1232_v46 = vadd.f32 %v1965_v45, %v1780_v44  ;;  %v1216_v47 = vpop.f32.mrb[3].mxu0 }
 0xa09   :  { %v1231_v48 = vadd.f32 %v1780_v44, %v1216_v47 }
 0xa0a   :  { %v1234_v49 = vadd.f32 %v1232_v46, %v2419_v10 }
 0xa0b   :  { %v1233_v50 = vadd.f32 %v1231_v48, %v2415_v8  ;;  %v263_v8 = vld [vmem:[%s2667_s15] sm:$0xff]  ;;  %s2193_s15 = smov [#allocation3]  }
 0xa0c   :  { %v1238_v51 = vsel %vm204_vm2, %v1234_v49, 0.0  ;;  %v2055_v63 = vpack.c.bf16 %v264_v62, %v263_v8  ;;  %s1744_s24 = sshll.u32 %s2193_s15, 4  ;;  %s1745_s24 = int_to_ptr.vmem [resolvable:$true] %s1744_s24 }
 0xa0d   :  { %1239 = vadd.xlane.f32.xlu0 %v1238_v51  ;;  %v1235_v52 = vsel %vm204_vm2, %v1233_v50, 0.0  ;;  %s2159_s0 = scalar_lea.vmem %s1745_s24, 16  ;;  %s2163_s10 = scalar_lea.vmem %s1745_s24, 32 }
 0xa0e   :  { %1236 = vadd.xlane.f32.xlu1 %v1235_v52  ;;  %2056 = vmatprep.subr.bf16.mxu1 %v2055_v63  ;;  %p2160_p0 = scmp.ne.s32.totalorder %s1745_s24, %s2159_s0  ;;  %p2164_p1 = scmp.lt.s32.totalorder %s1745_s24, %s1745_s24 }
 0xa0f   :  { %2058 = vmatpush3.bf16.msra.mxu1 %v2055_v63  ;;  %p2165_p2 = scmp.lt.s32.totalorder %s2163_s10, %s2159_s0 }
 0xa10   :  { %2060 = vmatprep.subr.bf16.mxu1 %v2059_v2 }
 0xa11   :  { %p2166_p3 = por %p2165_p2, %p2164_p1 }
 0xa13   :  { %2062 = vmatpush3.bf16.msra.mxu1 %v2059_v2  ;;  %p2167_p4 = pnand %p2166_p3, %p2160_p0 }
 0xa9a   :  { %v1240_v53 = vpop.xlane.xlu0 %1239 }
 0xa9b   :  { %v1242_v54 = vmul.f32 0.03125, %v1240_v53  ;;  %v1237_v55 = vpop.xlane.xlu1 %1236 }
 0xa9c   :  { %v1241_v56 = vmul.f32 0.03125, %v1237_v55 }
 0xa9d   :  { %v1244_v57 = vsub.f32 %v1234_v49, %v1242_v54 }
 0xa9e   :  { %v1243_v58 = vsub.f32 %v1233_v50, %v1241_v56  ;;  %v1786_v56 = vld [vmem:[%s2670_s18] ss:$0 sm:$0xff] }
 0xa9f   :  { %v1246_v59 = vmul.f32 %v1244_v57, %v1244_v57 }
 0xaa0   :  { %v1245_v60 = vmul.f32 %v1243_v58, %v1243_v58 }
 0xaa1   :  { %v1250_v61 = vsel %vm204_vm2, %v1246_v59, 0.0 }
 0xaa2   :  { %1251 = vadd.xlane.f32.xlu1 %v1250_v61  ;;  %v1247_v10 = vsel %vm204_vm2, %v1245_v60, 0.0 }
 0xaa3   :  { %1248 = vadd.xlane.f32.xlu0 %v1247_v10 }
 0xb2f   :  { %v1252_v3 = vpop.xlane.xlu1 %1251 }
 0xb30   :  { %v1254_v4 = vmul.f32 0.03125, %v1252_v3  ;;  %v1249_v5 = vpop.xlane.xlu0 %1248 }
 0xb31   :  { %v1253_v6 = vmul.f32 0.03125, %v1249_v5 }
 0xb32   :  { %v1256_v7 = vadd.f32 1e-12, %v1254_v4 }
 0xb33   :  { %v1255_v9 = vadd.f32 1e-12, %v1253_v6 }
 0xb34   :  { %2125 = vrsqrt.f32 %v1256_v7 }
 0xb35   :  { %2127 = vrsqrt.f32 %v1255_v9 }
 0xb3e   :  { %v2126_v12 = vpop.eup %2125 }
 0xb3f   :  { %v2128_v14 = vpop.eup %2127  ;;  %v1260_v17 = vmul.f32 %v2126_v12, %v1244_v57  ;;  %v1514_v12 = vld [vmem:[%s2673_s21] sm:$0xff] }
 0xb40   :  { %v1259_v18 = vmul.f32 %v2128_v14, %v1243_v58 }
 0xb41   :  { %v1268_v20 = vmul.f32 %v1781_v13, %v1260_v17  ;;  %v1516_v17 = vld [vmem:[%s2673_s21 + $0x10] sm:$0xff] }
 0xb42   :  { %v1267_v21 = vmul.f32 %v1781_v13, %v1259_v18  ;;  %v1515_v13 = vld [vmem:[%s2673_s21 + $0x8] sm:$0xff]  ;;  %v1517_v18 = vld [vmem:[%s2673_s21 + $0x18] sm:$0xff] }
 0xb43   :  { %v1276_v23 = vadd.f32 %v1782_v19, %v1268_v20  ;;  %v2079_v14 = vpack.c.bf16 %v1515_v13, %v1514_v12 }
 0xb44   :  { %v1275_v22 = vadd.f32 %v1782_v19, %v1267_v21  ;;  %v2083_v19 = vpack.c.bf16 %v1517_v18, %v1516_v17 }
 0xb45   :  { %2080 = vmatprep.subr.bf16.mxu1 %v2079_v14 }
 0xb46   :  { %1974 = vmatprep.mubr.msk.f32.mxu1 %vm204_vm2, %v1275_v22 }
 0xb47   :  { %1975 = vmatmul.mubr.msk.f32.vlgmr.msra.gmra.mrb[18].mxu1 %vm204_vm2, %v1276_v23 }
 0xb48   :  { %2082 = vmatpush3.bf16.msra.mxu1 %v2079_v14 }
 0xb49   :  { %2084 = vmatprep.subr.bf16.mxu1 %v2083_v19 }
 0xb4c   :  { %2086 = vmatpush3.bf16.msra.mxu1 %v2083_v19 }
 0xc1a   :  { %v1976_v15 = vpop.f32.mrb[18].mxu1 }
 0xc1b   :  { %v1361_v37 = vadd.f32 %v1976_v15, %v1783_v16  ;;  %v1355_v38 = vpop.f32.mrb[19].mxu1 }
 0xc1c   :  { %v1356_v39 = vadd.f32 %v1783_v16, %v1355_v38  ;;  %v1791_v16 = vld [vmem:[%s2674_s22] ss:$0 sm:$0xff] }
 0xc1d   :  { %v1367_v11 = vmul.f32 0.044715, %v1361_v37  ;;  %v1365_v53 = vmul.f32 0.5, %v1361_v37 }
 0xc1e   :  { %v1366_v40 = vmul.f32 0.044715, %v1356_v39  ;;  %v1364_v51 = vmul.f32 0.5, %v1356_v39 }
 0xc1f   :  { %v1369_v41 = vmul.f32 %v1367_v11, %v1361_v37 }
 0xc20   :  { %v1368_v28 = vmul.f32 %v1366_v40, %v1356_v39 }
 0xc21   :  { %v1371_v42 = vmul.f32 %v1369_v41, %v1361_v37 }
 0xc22   :  { %v1370_v43 = vmul.f32 %v1368_v28, %v1356_v39 }
 0xc23   :  { %v1373_v44 = vadd.f32 %v1371_v42, %v1361_v37 }
 0xc24   :  { %v1372_v45 = vadd.f32 %v1370_v43, %v1356_v39 }
 0xc25   :  { %v1375_v46 = vmul.f32 0.7978846, %v1373_v44 }
 0xc26   :  { %v1374_v47 = vmul.f32 0.7978846, %v1372_v45 }
 0xc27   :  { %2129 = vtanh.f32 %v1375_v46 }
 0xc28   :  { %2131 = vtanh.f32 %v1374_v47 }
 0xc31   :  { %v2130_v48 = vpop.eup %2129 }
 0xc32   :  { %v2132_v49 = vpop.eup %2131  ;;  %v1379_v50 = vadd.f32 1.0, %v2130_v48 }
 0xc33   :  { %v1378_v52 = vadd.f32 1.0, %v2132_v49 }
 0xc34   :  { %v1381_v55 = vmul.f32 %v1379_v50, %v1365_v53 }
 0xc35   :  { %v1380_v54 = vmul.f32 %v1378_v52, %v1364_v51  ;;  %v1794_v52 = vld [vmem:[%s2675_s23] ss:$0 sm:$0xff] }
 0xc37   :  { %1993 = vmatprep.mubr.msk.f32.mxu0 %vm1388_vm6, %v1380_v54 }
 0xc38   :  { %1994 = vmatmul.mubr.msk.f32.vlgmr.msra.gmra.mrb[4].mxu0 %vm1388_vm6, %v1381_v55 }
 0xd0b   :  { %v1995_v57 = vpop.f32.mrb[4].mxu0 }
 0xd0c   :  { %v1467_v58 = vadd.f32 %v1995_v57, %v1786_v56  ;;  %v1461_v59 = vpop.f32.mrb[5].mxu0 }
 0xd0d   :  { %v1462_v60 = vadd.f32 %v1786_v56, %v1461_v59 }
 0xd0e   :  { %v1471_v61 = vadd.f32 %v1467_v58, %v1276_v23 }
 0xd0f   :  { %v1470_v10 = vadd.f32 %v1462_v60, %v1275_v22 }
 0xd10   :  { %v1475_v8 = vsel %vm204_vm2, %v1471_v61, 0.0 }
 0xd11   :  { %1476 = vadd.xlane.f32.xlu1 %v1475_v8  ;;  %v1472_v62 = vsel %vm204_vm2, %v1470_v10, 0.0 }
 0xd12   :  { %1473 = vadd.xlane.f32.xlu0 %v1472_v62 }
 0xd9e   :  { %v1477_v63 = vpop.xlane.xlu1 %1476 }
 0xd9f   :  { %v1479_v0 = vmul.f32 0.03125, %v1477_v63  ;;  %v1474_v1 = vpop.xlane.xlu0 %1473 }
 0xda0   :  { %v1478_v2 = vmul.f32 0.03125, %v1474_v1 }
 0xda1   :  { %v1481_v3 = vsub.f32 %v1471_v61, %v1479_v0  ;;  %v2611_v61 = vld [vmem:[%s2704_s12] sm:$0xff] }
 0xda2   :  { %v1480_v4 = vsub.f32 %v1470_v10, %v1478_v2  ;;  %v2616_v10 = vld [vmem:[%s2704_s12 + $0x8] sm:$0xff]  ;;  %v1718_v8 = vsel %vm1648_vm7, %v2611_v61, 0.0  ;;  %v1795_v0 = vld [vmem:[#allocation2] ss:$0 sm:$0xff] }
 0xda3   :  { %v1483_v5 = vmul.f32 %v1481_v3, %v1481_v3  ;;  %v1719_v62 = vsel %vm1648_vm7, %v2616_v10, 0.0 }
 0xda4   :  { %v1482_v6 = vmul.f32 %v1480_v4, %v1480_v4  ;;  %v1720_v63 = vadd.f32 %v1719_v62, %v1718_v8 }
 0xda5   :  { %v1487_v7 = vsel %vm204_vm2, %v1483_v5, 0.0 }
 0xda6   :  { %1488 = vadd.xlane.f32.xlu1 %v1487_v7  ;;  %v1484_v9 = vsel %vm204_vm2, %v1482_v6, 0.0 }
 0xda7   :  { %1485 = vadd.xlane.f32.xlu0 %v1484_v9 }
 0xe33   :  { %v1489_v20 = vpop.xlane.xlu1 %1488 }
 0xe34   :  { %v1491_v21 = vmul.f32 0.03125, %v1489_v20  ;;  %v1486_v22 = vpop.xlane.xlu0 %1485 }
 0xe35   :  { %v1490_v23 = vmul.f32 0.03125, %v1486_v22 }
 0xe36   :  { %v1493_v24 = vadd.f32 1e-12, %v1491_v21 }
 0xe37   :  { %v1492_v25 = vadd.f32 1e-12, %v1490_v23 }
 0xe38   :  { %2133 = vrsqrt.f32 %v1493_v24 }
 0xe39   :  { %2135 = vrsqrt.f32 %v1492_v25 }
 0xe42   :  { %v2134_v26 = vpop.eup %2133 }
 0xe43   :  { %v2136_v29 = vpop.eup %2135  ;;  %v1497_v30 = vmul.f32 %v2134_v26, %v1481_v3 }
 0xe44   :  { %v1496_v31 = vmul.f32 %v2136_v29, %v1480_v4  ;;  %v1652_v29 = vld [vmem:[%s2705_s2 + $0x8] sm:$0xff] }
 0xe45   :  { %v1505_v33 = vmul.f32 %v1789_v27, %v1497_v30  ;;  %v1651_v30 = vld [vmem:[%s2705_s2] sm:$0xff] }
 0xe46   :  { %v1504_v34 = vmul.f32 %v1789_v27, %v1496_v31  ;;  %v1692_v31 = vsub.f32 1.0, %v1652_v29 }
 0xe47   :  { %v1513_v36 = vadd.f32 %v1790_v32, %v1505_v33  ;;  %v1691_v33 = vsub.f32 1.0, %v1651_v30 }
 0xe48   :  { %v1512_v35 = vadd.f32 %v1790_v32, %v1504_v34 }
 0xe4a   :  { %2004 = vmatprep.mubr.msk.f32.mxu1 %vm204_vm2, %v1512_v35 }
 0xe4b   :  { %2005 = vmatmul.mubr.msk.f32.vlgmr.msra.gmra.mrb[20].mxu1 %vm204_vm2, %v1513_v36 }
 0xf1e   :  { %v2006_v15 = vpop.f32.mrb[20].mxu1 }
 0xf1f   :  { %v1603_v37 = vadd.f32 %v2006_v15, %v1791_v16  ;;  %v1597_v38 = vpop.f32.mrb[21].mxu1 }
 0xf20   :  { %v1598_v39 = vadd.f32 %v1791_v16, %v1597_v38 }
 0xf21   :  { %v1609_v11 = vmul.f32 0.044715, %v1603_v37  ;;  %v1607_v50 = vmul.f32 0.5, %v1603_v37 }
 0xf22   :  { %v1608_v40 = vmul.f32 0.044715, %v1598_v39  ;;  %v1606_v53 = vmul.f32 0.5, %v1598_v39 }
 0xf23   :  { %v1611_v41 = vmul.f32 %v1609_v11, %v1603_v37 }
 0xf24   :  { %v1610_v28 = vmul.f32 %v1608_v40, %v1598_v39 }
 0xf25   :  { %v1613_v42 = vmul.f32 %v1611_v41, %v1603_v37 }
 0xf26   :  { %v1612_v43 = vmul.f32 %v1610_v28, %v1598_v39 }
 0xf27   :  { %v1615_v44 = vadd.f32 %v1613_v42, %v1603_v37 }
 0xf28   :  { %v1614_v45 = vadd.f32 %v1612_v43, %v1598_v39 }
 0xf29   :  { %v1617_v46 = vmul.f32 0.7978846, %v1615_v44 }
 0xf2a   :  { %v1616_v47 = vmul.f32 0.7978846, %v1614_v45 }
 0xf2b   :  { %2137 = vtanh.f32 %v1617_v46 }
 0xf2c   :  { %2139 = vtanh.f32 %v1616_v47 }
 0xf35   :  { %v2138_v48 = vpop.eup %2137 }
 0xf36   :  { %v2140_v49 = vpop.eup %2139  ;;  %v1621_v51 = vadd.f32 1.0, %v2138_v48 }
 0xf37   :  { %v1620_v54 = vadd.f32 1.0, %v2140_v49 }
 0xf38   :  { %v1623_v55 = vmul.f32 %v1621_v51, %v1607_v50 }
 0xf39   :  { %v1622_v56 = vmul.f32 %v1620_v54, %v1606_v53 }
 0xf3a   :  { %v1632_v57 = vmul.f32 %v1794_v52, %v1623_v55 }
 0xf3b   :  { %v1631_v58 = vmul.f32 %v1794_v52, %v1622_v56 }
 0xf3c   :  { %v1636_v59 = vsel %vm204_vm2, %v1632_v57, 0.0 }
 0xf3d   :  { %1637 = vadd.xlane.f32.xlu1 %v1636_v59  ;;  %v1633_v60 = vsel %vm204_vm2, %v1631_v58, 0.0 }
 0xf3e   :  { %1634 = vadd.xlane.f32.xlu0 %v1633_v60 }
 0xf41   :  { %1721 = vadd.xlane.f32.xlu1 %v1720_v63 }
 0xfca   :  { %v1638_v1 = vpop.xlane.xlu1 %1637 }
 0xfcb   :  { %v1647_v2 = vadd.f32 %v1795_v0, %v1638_v1  ;;  %v1635_v3 = vpop.xlane.xlu0 %1634 }
 0xfcc   :  { %v1646_v4 = vadd.f32 %v1795_v0, %v1635_v3 }
 0xfcd   :  { %v1662_v5 = vand.u32 2147483647, %v1647_v2  ;;  %v1678_v6 = vsub.f32 0.0, %v1647_v2  ;;  %1650 = vst.msk [vmem:[%s2677_s25 + $0x8] sm:$0xff] %vm1648_vm7, %v1647_v2  ;;  %v1656_v37 = vmax.f32 %v1647_v2, 0.0  ;;  %v1658_v38 = vmul.f32 %v1652_v29, %v1647_v2 }
 0xfce   :  { %v1661_v7 = vand.u32 2147483647, %v1646_v4  ;;  %v1677_v9 = vsub.f32 0.0, %v1646_v4  ;;  %1649 = vst.msk [vmem:[%s2677_s25] sm:$0xff] %vm1648_vm7, %v1646_v4  ;;  %v1655_v40 = vmax.f32 %v1646_v4, 0.0  ;;  %v1657_v41 = vmul.f32 %v1651_v30, %v1646_v4  ;;  %v1722_v62 = vpop.xlane.xlu1 %1721 }
 0xfcf   :  { %v1664_v12 = vsub.f32 0.0, %v1662_v5  ;;  %v1681_v13 = vmul.f32 1.442695, %v1678_v6  ;;  %v1660_v47 = vsub.f32 %v1656_v37, %v1658_v38  ;;  %v1723_v63 = vrot.slane %v1722_v62, 4 }
 0xfd0   :  { %v1663_v14 = vsub.f32 0.0, %v1661_v7  ;;  %v1679_v17 = vmul.f32 1.442695, %v1677_v9  ;;  %v1659_v49 = vsub.f32 %v1655_v40, %v1657_v41 }
 0xfd1   :  { %v1667_v18 = vmul.f32 1.442695, %v1664_v12  ;;  %2141 = vpow2.f32 %v1681_v13  ;;  %v1724_v0 = vadd.f32 %v1723_v63, %v1722_v62 }
 0xfd2   :  { %v1665_v19 = vmul.f32 1.442695, %v1663_v14  ;;  %2143 = vpow2.f32 %v1679_v17 }
 0xfd3   :  { %2145 = vpow2.f32 %v1667_v18  ;;  %v1725_v1 = vrot.slane %v1724_v0, 2 }
 0xfd4   :  { %2147 = vpow2.f32 %v1665_v19 }
 0xfd5   :  { %v1726_v5 = vadd.f32 %v1725_v1, %v1724_v0 }
 0xfd7   :  { %v1727_v9 = vrot.slane %v1726_v5, 1 }
 0xfdb   :  { %v2142_v20 = vpop.eup %2141 }
 0xfdc   :  { %v2144_v21 = vpop.eup %2143  ;;  %v1684_v22 = vadd.f32 1.0, %v2142_v20 }
 0xfdd   :  { %v2146_v23 = vpop.eup %2145  ;;  %v1683_v24 = vadd.f32 1.0, %v2144_v21 }
 0xfde   :  { %v2148_v25 = vpop.eup %2147  ;;  %2149 = vrcp.f32 %v1684_v22  ;;  %v1670_v26 = vadd.f32 1.0, %v2146_v23 }
 0xfdf   :  { %2151 = vrcp.f32 %v1683_v24  ;;  %v1669_v27 = vadd.f32 1.0, %v2148_v25 }
 0xfe0   :  { %2153 = vlog2.f32 %v1670_v26 }
 0xfe1   :  { %2155 = vlog2.f32 %v1669_v27 }
 0xfe8   :  { %v2150_v32 = vpop.eup %2149 }
 0xfe9   :  { %v2152_v34 = vpop.eup %2151  ;;  %v1690_v35 = vsub.f32 1.0, %v2150_v32  ;;  %v1688_v39 = vmul.f32 %v2150_v32, %v1652_v29 }
 0xfea   :  { %v2154_v36 = vpop.eup %2153  ;;  %v1689_v16 = vsub.f32 1.0, %v2152_v34  ;;  %v1687_v28 = vmul.f32 %v2152_v34, %v1651_v30 }
 0xfeb   :  { %v2156_v15 = vpop.eup %2155  ;;  %v1694_v11 = vmul.f32 %v1692_v31, %v1690_v35  ;;  %v1674_v43 = vmul.f32 0.6931472, %v2154_v36 }
 0xfec   :  { %v1693_v42 = vmul.f32 %v1691_v33, %v1689_v16  ;;  %v1672_v45 = vmul.f32 0.6931472, %v2156_v15 }
 0xfed   :  { %v1696_v44 = vadd.f32 %v1694_v11, %v1688_v39  ;;  %v1676_v51 = vadd.f32 %v1674_v43, %v1660_v47 }
 0xfee   :  { %v1695_v46 = vadd.f32 %v1693_v42, %v1687_v28  ;;  %v1675_v53 = vadd.f32 %v1672_v45, %v1659_v49 }
 0xfef   :  { %v1698_v48 = vsub.f32 1.0, %v1696_v44 }
 0xff0   :  { %v1697_v50 = vsub.f32 1.0, %v1695_v46 }
 0xff1   :  { %v1700_v52 = vmul.f32 %v1698_v48, %v1698_v48 }
 0xff2   :  { %v1699_v54 = vmul.f32 %v1697_v50, %v1697_v50 }
 0xff3   :  { %v1702_v55 = vmul.f32 %v1700_v52, %v1676_v51 }
 0xff4   :  { %v1701_v56 = vmul.f32 %v1699_v54, %v1675_v53 }
 0xff5   :  { %v1704_v57 = vmul.f32 %v1702_v55, %v2616_v10 }
 0xff6   :  { %v1703_v58 = vmul.f32 %v1701_v56, %v2611_v61  ;;  %v1728_v61 = vadd.f32 %v1727_v9, %v1726_v5 }
 0xff7   :  { %v1706_v59 = vsel %vm1648_vm7, %v1704_v57, 0.0 }
 0xff8   :  { %v1705_v60 = vsel %vm1648_vm7, %v1703_v58, 0.0 }
 0xff9   :  { %v1707_v8 = vadd.f32 %v1706_v59, %v1705_v60 }
 0xffb   :  { %1708 = vadd.xlane.f32.xlu0 %v1707_v8 }
0x1088   :  { %v1709_v2 = vpop.xlane.xlu0 %1708 }
0x1089   :  { %v1710_v3 = vrot.slane %v1709_v2, 4 }
0x108b   :  { %v1711_v4 = vadd.f32 %v1710_v3, %v1709_v2 }
0x108d   :  { %v1712_v6 = vrot.slane %v1711_v4, 2 }
0x108f   :  { %v1713_v7 = vadd.f32 %v1712_v6, %v1711_v4 }
0x1091   :  { %v1714_v10 = vrot.slane %v1713_v7, 1 }
0x1093   :  { %v1715_v12 = vadd.f32 %v1714_v10, %v1713_v7 }
0x1095   :  { %2089 = vpush %v1715_v12 }
0x1096   :  { %2091 = vpush %v1728_v61 }
0x10c6   :  { %s2090_s18 = spop %2089 }
0x10c7   :  { %s2092_s5 = spop %2091  ;;  %v1717_v18 = vstv %s2090_s18 }
0x10c8   :  { %v1730_v13 = vstv %s2092_s5 }
0x10c9   :  { %v1731_v14 = vmax.f32 %v1730_v13, 1.0 }
0x10cb   :  { %2157 = vrcp.f32 %v1731_v14 }
0x10d5   :  { %v2158_v17 = vpop.eup %2157 }
0x10d6   :  { %v1733_v19 = vmul.f32 %v2158_v17, %v1717_v18 }
0x10d8   :  { %1735 = vst.msk [vmem:[#allocation3] sm:$0x1] %vm1734_vm8, %v1733_v19 }
0x10d9   :  { %2170 = shalt.err (!%p2167_p4)
}
0x10da   :  { %s2171_s1 = scalar_lea.hbm %s2678_s26, 16 }
0x10db   :  { %p2172_p5 = scmp.ne.s32.totalorder %s2678_s26, %s2171_s1  ;;  %p2175_p6 = scmp.lt.u32.totalorder %s2171_s1, %s2678_s26 }
0x10dd   :  { %p2177_p7 = pnand %p2175_p6, %p2172_p5 }
0x10df   :  { %2180 = shalt.err (!%p2177_p7)
}
0x10e0   :  { %1747 = dma.vmem_to_hbm [thread:$0]  %s1745_s24, 16, %s2678_s26, [#allocation4]  }
0x10e1   :  { %2181 = dma.done.wait [#allocation4], 16  }
0x10e2   :  { %2182 = vsyncadd [#allocation4], 4294967280 }
0x10e3   :  { %1753 = vsyncpa [#allocation4], 1 }

</bundles_post_ra>
